<compile_context>
chip_gen: v7x
topology: tpu7x:2x2x1
jax: 0.10.0
libtpu: 0.0.40
codegen_flags: <defaults>
</compile_context>

<pallas_src>
import functools

import jax
import jax.numpy as jnp
from jax import lax
from jax.experimental import pallas as pl
from jax.experimental.pallas import tpu as pltpu


def sgcn_kernel(T, xim_ref, adx_ref, ady_ref,
                w1_ref, b1_ref,
                wxy_ref, bxy_ref,
                wz1_ref, bz1_ref,
                wz2_ref, bz2_ref,
                wz3_ref, bz3_ref,
                out_ref):
    B, VT, _ = out_ref.shape          # (B, V*T, 48)
    M = B * VT
    bf16, f32 = jnp.bfloat16, jnp.float32

    # bf16 operands on the MXU, f32 accumulation.
    mm = lambda a, b: jnp.dot(a, b, preferred_element_type=f32)
    relu = lambda v: jnp.maximum(v, 0.0)

    def im2col(padded3, ntaps):
        # padded3: (B, (V + ntaps - 1)*T, C) bf16 -> (M, ntaps*C) im2col slab.
        # Tap kk starts at row kk*T (multiple of 8 for T=8 -> sublane-aligned).
        taps = [padded3[:, kk * T: kk * T + VT, :] for kk in range(ntaps)]
        return jnp.concatenate(taps, axis=-1).reshape(M, -1)

    def pad_v(rows3, p):
        z = jnp.zeros((B, p * T, rows3.shape[-1]), rows3.dtype)
        return jnp.concatenate([z, rows3, z], axis=1)

    xim = xim_ref[...].reshape(M, -1)                  # (M, 9*C_in) bf16, wrapper im2col
    C_in = xim.shape[-1] // 9
    x_rows = xim[:, 4 * C_in:5 * C_in]                 # center tap == unpadded input

    # ---- k1 = relu(Conv2d(C_in -> 64, (9,1), pad=(4,0))(Input)): one K=9*C_in matmul
    k1 = relu(mm(xim, w1_ref[...]) + b1_ref[...])      # (M, 64) f32

    # ---- k = cat(Input, k1); x1/y1 fused: one (M, C_in+64)@(C_in+64, 128) matmul
    kcat = jnp.concatenate([x_rows, k1.astype(bf16)], axis=-1)       # (M, C_in+64) bf16
    xy = relu(mm(kcat, wxy_ref[...]) + bxy_ref[...])                 # (M, 128) = [x1||y1]
    xy = xy.astype(bf16).reshape(B, VT, 128)

    # ---- gcn_x1 = einsum('vw,ncwt->ncvt', AD, x1) (and AD2/y1) via ADexp = kron(AD, I_T)
    # One aligned (VT,VT)@(VT,64) matmul per adjacency per batch element; B is capped
    # small by the wrapper so the unroll is tiny.
    adx = adx_ref[...]
    ady = ady_ref[...]
    gparts = []
    for b in range(B):
        gparts.append(jnp.concatenate(
            [mm(adx, xy[b, :, :64]), mm(ady, xy[b, :, 64:])], axis=-1))
    gcn = jnp.concatenate(gparts, axis=0).reshape(B, VT, 128).astype(bf16)  # [gx || gy]

    # ---- z1 = relu(Conv2d(128 -> 16, (9,1), pad=(4,0))(gcn)): single K=1152 matmul
    z1 = relu(mm(im2col(pad_v(gcn, 4), 9), wz1_ref[...]) + bz1_ref[...])    # (M, 16)
    # Dropout2d(p=0.25): identity at inference.

    # ---- z2 = relu(Conv2d(16 -> 16, (15,1), pad=(7,0))(z1))
    z2 = relu(mm(im2col(pad_v(z1.astype(bf16).reshape(B, VT, 16), 7), 15),
                 wz2_ref[...]) + bz2_ref[...])                              # (M, 16)

    # ---- z3 = relu(Conv2d(16 -> 16, (19,1), pad=(9,0))(z2))
    z3 = relu(mm(im2col(pad_v(z2.astype(bf16).reshape(B, VT, 16), 9), 19),
                 wz3_ref[...]) + bz3_ref[...])                              # (M, 16)

    # ---- z = cat(z1, z2, z3): single store of the 48-channel slab (consumer wants 48ch f32)
    out_ref[...] = jnp.concatenate([z1, z2, z3], axis=-1).reshape(B, VT, 48)


def sgcn_forward(x_nvtc, AD, AD2, params, block_b=None):
    """x_nvtc: (N, V, T, C_in); returns (N, V, T, 48)."""
    N, V, T, C_in = x_nvtc.shape
    # In-kernel tap slices start at kk*T rows; keep them sublane-aligned.
    assert T % 8 == 0, "T must be a multiple of 8 for aligned im2col tap slices"
    if block_b is None:
        # Small batch block: M=VT already fills the MXU M-dim at B=1, and >=2 grid
        # steps are needed to shard across v7x's 2 TensorCores / double-buffer DMA.
        block_b = max((d for d in (4, 2, 1) if N % d == 0 and N // d >= 2), default=1)
    B = block_b
    assert N % B == 0, "batch block size must divide N"
    VT = V * T

    (W1, b1, Wx, bx, Wy, by, Wz1, bz1, Wz2, bz2, Wz3, bz3) = params
    bf16, f32 = jnp.bfloat16, jnp.float32

    # conv1 pad + im2col done ONCE in XLA: (N, V, T, C) -> (N, VT, 9*C) bf16.
    x_pad = jnp.pad(x_nvtc.astype(bf16), ((0, 0), (4, 4), (0, 0), (0, 0)))
    taps = [x_pad[:, kk:kk + V, :, :] for kk in range(9)]
    x_im = jnp.concatenate(taps, axis=-1).reshape(N, VT, 9 * C_in)

    # Expanded adjacencies: kron(AD, I_T) acts on (v, t)-indexed rows directly.
    eye_t = jnp.eye(T, dtype=f32)
    adx = jnp.kron(AD.astype(f32), eye_t).astype(bf16)        # (V*T, V*T)
    ady = jnp.kron(AD2.astype(f32), eye_t).astype(bf16)

    rs = lambda w: w.reshape(-1, w.shape[-1]).astype(bf16)    # (K,Cin,Co)->(K*Cin,Co)
    bb = lambda b: b.reshape(1, -1).astype(f32)

    # Fuse the two 1x1 convs: [Wx | Wy] -> (C_in+64, 128), [bx | by] -> (1, 128).
    Wxy = jnp.concatenate([Wx, Wy], axis=-1).astype(bf16)
    bxy = jnp.concatenate([bb(bx), bb(by)], axis=-1)

    inputs = (x_im, adx, ady,
              rs(W1), bb(b1),
              Wxy, bxy,
              rs(Wz1), bb(bz1),
              rs(Wz2), bb(bz2),
              rs(Wz3), bb(bz3))

    def full_spec(a):
        nd = a.ndim
        return pl.BlockSpec(a.shape, lambda n, _nd=nd: (0,) * _nd)

    in_specs = [pl.BlockSpec((B, VT, 9 * C_in), lambda n: (n, 0, 0))]
    in_specs += [full_spec(a) for a in inputs[1:]]
    out_spec = pl.BlockSpec((B, VT, 48), lambda n: (n, 0, 0))

    out = pl.pallas_call(
        functools.partial(sgcn_kernel, T),
        out_shape=jax.ShapeDtypeStruct((N, VT, 48), f32),
        grid_spec=pltpu.PrefetchScalarGridSpec(
            num_scalar_prefetch=0, grid=(N // B,),
            in_specs=in_specs, out_specs=out_spec),
        compiler_params=pltpu.CompilerParams(
            dimension_semantics=("parallel",),        # batch blocks are independent
            vmem_limit_bytes=32 * 1024 * 1024),       # explicit; safe on v5e/v6e/v7x
    )(*inputs)
    return out.reshape(N, V, T, 48)


def ref_forward(x_nchw, AD, AD2, params):
    """Pure-JAX NCHW reference matching the PyTorch forward semantics (f32)."""
    (W1, b1, Wx, bx, Wy, by, Wz1, bz1, Wz2, bz2, Wz3, bz3) = params

    def conv(x, w_kio, b, pad):
        w = jnp.transpose(w_kio, (2, 1, 0))[..., None]      # (K, Cin, Cout) -> OIHW
        y = lax.conv_general_dilated(
            x, w, (1, 1), [(pad, pad), (0, 0)],
            dimension_numbers=('NCHW', 'OIHW', 'NCHW'),
            precision=lax.Precision.HIGHEST)
        return y + b.reshape(1, -1, 1, 1)

    relu = jax.nn.relu
    k1 = relu(conv(x_nchw, W1, b1, 4))
    k = jnp.concatenate([x_nchw, k1], axis=1)
    x1 = relu(conv(k, Wx[None], bx, 0))
    y1 = relu(conv(k, Wy[None], by, 0))
    gx = jnp.einsum('vw,ncwt->ncvt', AD, x1, precision=lax.Precision.HIGHEST)
    gy = jnp.einsum('vw,ncwt->ncvt', AD2, y1, precision=lax.Precision.HIGHEST)
    g = jnp.concatenate([gx, gy], axis=1)
    z1 = relu(conv(g, Wz1, bz1, 4))
    z2 = relu(conv(z1, Wz2, bz2, 7))
    z3 = relu(conv(z2, Wz3, bz3, 9))
    return jnp.concatenate([z1, z2, z3], axis=1)


if __name__ == "__main__":
    key = jax.random.PRNGKey(0)
    N, C_in, V, T = 2, 4, 16, 8          # small shapes; V plays the role of num_joints
    ks = jax.random.split(key, 15)

    x_nchw = jax.random.normal(ks[0], (N, C_in, V, T), jnp.float32)
    AD = jax.random.normal(ks[1], (V, V), jnp.float32) * 0.1
    AD2 = jax.random.normal(ks[2], (V, V), jnp.float32) * 0.1
    # bias_mat_1 / bias_mat_2 are unused in the PyTorch forward; omitted here.

    def w(k, shape, s=0.1):
        return jax.random.normal(k, shape, jnp.float32) * s

    # weights stored as (K, C_in, C_out); PyTorch OIHW weight[o,i,kh,0] == W[kh,i,o]
    params = (
        w(ks[3], (9, C_in, 64)),     w(ks[4], (1, 64)),      # conv1 (9,1)
        w(ks[5], (C_in + 64, 64)),   w(ks[6], (1, 64)),      # x1 1x1
        w(ks[7], (C_in + 64, 64)),   w(ks[8], (1, 64)),      # y1 1x1
        w(ks[9], (9, 128, 16)),      w(ks[10], (1, 16)),     # z1 (9,1) on [gx||gy]
        w(ks[11], (15, 16, 16)),     w(ks[12], (1, 16)),     # z2 (15,1)
        w(ks[13], (19, 16, 16)),     w(ks[14], (1, 16)),     # z3 (19,1)
    )

    x_nvtc = jnp.transpose(x_nchw, (0, 2, 3, 1))             # NCHW -> (N, V, T, C)
    out = jax.block_until_ready(sgcn_forward(x_nvtc, AD, AD2, params))
    out_nchw = jnp.transpose(out, (0, 3, 1, 2))

    ref = ref_forward(x_nchw, AD, AD2, params)
    assert out_nchw.shape == ref.shape == (N, 48, V, T), (out_nchw.shape, ref.shape)
    max_err = float(jnp.max(jnp.abs(out_nchw - ref)))
    # Kernel matmuls run with bf16 operands on the MXU (f32 accumulation); tolerance
    # sized for ~0.2-0.4% operand rounding compounded through the 6-matmul-deep
    # network vs. the f32 reference.
    assert jnp.allclose(out_nchw, ref, rtol=2e-2, atol=3e-2), max_err
    print("KERNEL_OK")
</pallas_src>

<mosaic_0001>
module attributes {stable_mosaic.version = 11 : i64} {
  func.func @sgcn_kernel(%arg0: i32, %arg1: memref<1x128x36xbf16, #tpu.memory_space<vmem>>, %arg2: memref<128x128xbf16, #tpu.memory_space<vmem>>, %arg3: memref<128x128xbf16, #tpu.memory_space<vmem>>, %arg4: memref<36x64xbf16, #tpu.memory_space<vmem>>, %arg5: memref<1x64xf32, #tpu.memory_space<vmem>>, %arg6: memref<68x128xbf16, #tpu.memory_space<vmem>>, %arg7: memref<1x128xf32, #tpu.memory_space<vmem>>, %arg8: memref<1152x16xbf16, #tpu.memory_space<vmem>>, %arg9: memref<1x16xf32, #tpu.memory_space<vmem>>, %arg10: memref<240x16xbf16, #tpu.memory_space<vmem>>, %arg11: memref<1x16xf32, #tpu.memory_space<vmem>>, %arg12: memref<304x16xbf16, #tpu.memory_space<vmem>>, %arg13: memref<1x16xf32, #tpu.memory_space<vmem>>, %arg14: memref<1x128x48xf32, #tpu.memory_space<vmem>>) attributes {dimension_semantics = [#tpu.dimension_semantics<parallel>], iteration_bounds = array<i64: 2>, scalar_prefetch = 0 : i64, scratch_operands = 0 : i64, tpu.core_type = #tpu.core_type<tc>, window_params = [{transform_indices = @transform_0, window_bounds = array<i64: 1, 128, 36>}, {pipeline_mode = #tpu.pipeline_mode<synchronous>, transform_indices = @transform_1, window_bounds = array<i64: 128, 128>}, {pipeline_mode = #tpu.pipeline_mode<synchronous>, transform_indices = @transform_2, window_bounds = array<i64: 128, 128>}, {pipeline_mode = #tpu.pipeline_mode<synchronous>, transform_indices = @transform_3, window_bounds = array<i64: 36, 64>}, {pipeline_mode = #tpu.pipeline_mode<synchronous>, transform_indices = @transform_4, window_bounds = array<i64: 1, 64>}, {pipeline_mode = #tpu.pipeline_mode<synchronous>, transform_indices = @transform_5, window_bounds = array<i64: 68, 128>}, {pipeline_mode = #tpu.pipeline_mode<synchronous>, transform_indices = @transform_6, window_bounds = array<i64: 1, 128>}, {pipeline_mode = #tpu.pipeline_mode<synchronous>, transform_indices = @transform_7, window_bounds = array<i64: 1152, 16>}, {pipeline_mode = #tpu.pipeline_mode<synchronous>, transform_indices = @transform_8, window_bounds = array<i64: 1, 16>}, {pipeline_mode = #tpu.pipeline_mode<synchronous>, transform_indices = @transform_9, window_bounds = array<i64: 240, 16>}, {pipeline_mode = #tpu.pipeline_mode<synchronous>, transform_indices = @transform_10, window_bounds = array<i64: 1, 16>}, {pipeline_mode = #tpu.pipeline_mode<synchronous>, transform_indices = @transform_11, window_bounds = array<i64: 304, 16>}, {pipeline_mode = #tpu.pipeline_mode<synchronous>, transform_indices = @transform_12, window_bounds = array<i64: 1, 16>}, {transform_indices = @transform_13, window_bounds = array<i64: 1, 128, 48>}]} {
    %c0 = arith.constant 0 : index
    %c0_0 = arith.constant 0 : index
    %c0_1 = arith.constant 0 : index
    %0 = vector.load %arg1[%c0, %c0_0, %c0_1] : memref<1x128x36xbf16, #tpu.memory_space<vmem>>, vector<1x128x36xbf16>
    %1 = vector.shape_cast %0 : vector<1x128x36xbf16> to vector<128x36xbf16>
    %2 = vector.extract_strided_slice %1 {offsets = [0, 16], sizes = [128, 4], strides = [1, 1]} : vector<128x36xbf16> to vector<128x4xbf16>
    %c0_2 = arith.constant 0 : index
    %c0_3 = arith.constant 0 : index
    %3 = vector.load %arg4[%c0_2, %c0_3] : memref<36x64xbf16, #tpu.memory_space<vmem>>, vector<36x64xbf16>
    %cst = arith.constant dense<0.000000e+00> : vector<128x64xf32>
    %4 = tpu.matmul %1, %3, %cst {dimension_numbers = #tpu.dot_dimension_numbers<[1], [0], [0], [1], [0, 0, 1, 1], [], []>} : vector<128x36xbf16>, vector<36x64xbf16>, vector<128x64xf32> -> vector<128x64xf32>
    %c0_4 = arith.constant 0 : index
    %c0_5 = arith.constant 0 : index
    %5 = vector.load %arg5[%c0_4, %c0_5] : memref<1x64xf32, #tpu.memory_space<vmem>>, vector<1x64xf32>
    %6 = vector.broadcast %5 : vector<1x64xf32> to vector<128x64xf32>
    %7 = arith.addf %4, %6 : vector<128x64xf32>
    %cst_6 = arith.constant 0.000000e+00 : f32
    %8 = vector.broadcast %cst_6 : f32 to vector<128x64xf32>
    %9 = arith.maximumf %7, %8 : vector<128x64xf32>
    %10 = arith.truncf %9 : vector<128x64xf32> to vector<128x64xbf16>
    %11 = tpu.concatenate %2, %10 in 1 : vector<128x4xbf16>, vector<128x64xbf16> -> vector<128x68xbf16>
    %c0_7 = arith.constant 0 : index
    %c0_8 = arith.constant 0 : index
    %12 = vector.load %arg6[%c0_7, %c0_8] : memref<68x128xbf16, #tpu.memory_space<vmem>>, vector<68x128xbf16>
    %cst_9 = arith.constant dense<0.000000e+00> : vector<128x128xf32>
    %13 = tpu.matmul %11, %12, %cst_9 {dimension_numbers = #tpu.dot_dimension_numbers<[1], [0], [0], [1], [0, 0, 1, 1], [], []>} : vector<128x68xbf16>, vector<68x128xbf16>, vector<128x128xf32> -> vector<128x128xf32>
    %c0_10 = arith.constant 0 : index
    %c0_11 = arith.constant 0 : index
    %14 = vector.load %arg7[%c0_10, %c0_11] : memref<1x128xf32, #tpu.memory_space<vmem>>, vector<1x128xf32>
    %15 = vector.broadcast %14 : vector<1x128xf32> to vector<128x128xf32>
    %16 = arith.addf %13, %15 : vector<128x128xf32>
    %cst_12 = arith.constant 0.000000e+00 : f32
    %17 = vector.broadcast %cst_12 : f32 to vector<128x128xf32>
    %18 = arith.maximumf %16, %17 : vector<128x128xf32>
    %19 = arith.truncf %18 : vector<128x128xf32> to vector<128x128xbf16>
    %20 = vector.shape_cast %19 : vector<128x128xbf16> to vector<1x128x128xbf16>
    %c0_13 = arith.constant 0 : index
    %c0_14 = arith.constant 0 : index
    %21 = vector.load %arg2[%c0_13, %c0_14] : memref<128x128xbf16, #tpu.memory_space<vmem>>, vector<128x128xbf16>
    %c0_15 = arith.constant 0 : index
    %c0_16 = arith.constant 0 : index
    %22 = vector.load %arg3[%c0_15, %c0_16] : memref<128x128xbf16, #tpu.memory_space<vmem>>, vector<128x128xbf16>
    %23 = vector.extract_strided_slice %20 {offsets = [0, 0, 0], sizes = [1, 128, 64], strides = [1, 1, 1]} : vector<1x128x128xbf16> to vector<1x128x64xbf16>
    %24 = vector.shape_cast %23 : vector<1x128x64xbf16> to vector<128x64xbf16>
    %cst_17 = arith.constant dense<0.000000e+00> : vector<128x64xf32>
    %25 = tpu.matmul %21, %24, %cst_17 {dimension_numbers = #tpu.dot_dimension_numbers<[1], [0], [0], [1], [0, 0, 1, 1], [], []>} : vector<128x128xbf16>, vector<128x64xbf16>, vector<128x64xf32> -> vector<128x64xf32>
    %26 = vector.extract_strided_slice %20 {offsets = [0, 0, 64], sizes = [1, 128, 64], strides = [1, 1, 1]} : vector<1x128x128xbf16> to vector<1x128x64xbf16>
    %27 = vector.shape_cast %26 : vector<1x128x64xbf16> to vector<128x64xbf16>
    %cst_18 = arith.constant dense<0.000000e+00> : vector<128x64xf32>
    %28 = tpu.matmul %22, %27, %cst_18 {dimension_numbers = #tpu.dot_dimension_numbers<[1], [0], [0], [1], [0, 0, 1, 1], [], []>} : vector<128x128xbf16>, vector<128x64xbf16>, vector<128x64xf32> -> vector<128x64xf32>
    %29 = tpu.concatenate %25, %28 in 1 : vector<128x64xf32>, vector<128x64xf32> -> vector<128x128xf32>
    %30 = vector.shape_cast %29 : vector<128x128xf32> to vector<1x128x128xf32>
    %31 = arith.truncf %30 : vector<1x128x128xf32> to vector<1x128x128xbf16>
    %cst_19 = arith.constant 0.000000e+00 : bf16
    %32 = vector.broadcast %cst_19 : bf16 to vector<1x32x128xbf16>
    %33 = tpu.concatenate %32, %31, %32 in 1 : vector<1x32x128xbf16>, vector<1x128x128xbf16>, vector<1x32x128xbf16> -> vector<1x192x128xbf16>
    %34 = vector.extract_strided_slice %33 {offsets = [0, 0, 0], sizes = [1, 128, 128], strides = [1, 1, 1]} : vector<1x192x128xbf16> to vector<1x128x128xbf16>
    %35 = vector.extract_strided_slice %33 {offsets = [0, 8, 0], sizes = [1, 128, 128], strides = [1, 1, 1]} : vector<1x192x128xbf16> to vector<1x128x128xbf16>
    %36 = vector.extract_strided_slice %33 {offsets = [0, 16, 0], sizes = [1, 128, 128], strides = [1, 1, 1]} : vector<1x192x128xbf16> to vector<1x128x128xbf16>
    %37 = vector.extract_strided_slice %33 {offsets = [0, 24, 0], sizes = [1, 128, 128], strides = [1, 1, 1]} : vector<1x192x128xbf16> to vector<1x128x128xbf16>
    %38 = vector.extract_strided_slice %33 {offsets = [0, 32, 0], sizes = [1, 128, 128], strides = [1, 1, 1]} : vector<1x192x128xbf16> to vector<1x128x128xbf16>
    %39 = vector.extract_strided_slice %33 {offsets = [0, 40, 0], sizes = [1, 128, 128], strides = [1, 1, 1]} : vector<1x192x128xbf16> to vector<1x128x128xbf16>
    %40 = vector.extract_strided_slice %33 {offsets = [0, 48, 0], sizes = [1, 128, 128], strides = [1, 1, 1]} : vector<1x192x128xbf16> to vector<1x128x128xbf16>
    %41 = vector.extract_strided_slice %33 {offsets = [0, 56, 0], sizes = [1, 128, 128], strides = [1, 1, 1]} : vector<1x192x128xbf16> to vector<1x128x128xbf16>
    %42 = vector.extract_strided_slice %33 {offsets = [0, 64, 0], sizes = [1, 128, 128], strides = [1, 1, 1]} : vector<1x192x128xbf16> to vector<1x128x128xbf16>
    %43 = tpu.concatenate %34, %35, %36, %37, %38, %39, %40, %41, %42 in 2 : vector<1x128x128xbf16>, vector<1x128x128xbf16>, vector<1x128x128xbf16>, vector<1x128x128xbf16>, vector<1x128x128xbf16>, vector<1x128x128xbf16>, vector<1x128x128xbf16>, vector<1x128x128xbf16>, vector<1x128x128xbf16> -> vector<1x128x1152xbf16>
    %44 = vector.shape_cast %43 : vector<1x128x1152xbf16> to vector<128x1152xbf16>
    %c0_20 = arith.constant 0 : index
    %c0_21 = arith.constant 0 : index
    %45 = vector.load %arg8[%c0_20, %c0_21] : memref<1152x16xbf16, #tpu.memory_space<vmem>>, vector<1152x16xbf16>
    %cst_22 = arith.constant dense<0.000000e+00> : vector<128x16xf32>
    %46 = tpu.matmul %44, %45, %cst_22 {dimension_numbers = #tpu.dot_dimension_numbers<[1], [0], [0], [1], [0, 0, 1, 1], [], []>} : vector<128x1152xbf16>, vector<1152x16xbf16>, vector<128x16xf32> -> vector<128x16xf32>
    %c0_23 = arith.constant 0 : index
    %c0_24 = arith.constant 0 : index
    %47 = vector.load %arg9[%c0_23, %c0_24] : memref<1x16xf32, #tpu.memory_space<vmem>>, vector<1x16xf32>
    %48 = vector.broadcast %47 : vector<1x16xf32> to vector<128x16xf32>
    %49 = arith.addf %46, %48 : vector<128x16xf32>
    %cst_25 = arith.constant 0.000000e+00 : f32
    %50 = vector.broadcast %cst_25 : f32 to vector<128x16xf32>
    %51 = arith.maximumf %49, %50 : vector<128x16xf32>
    %52 = arith.truncf %51 : vector<128x16xf32> to vector<128x16xbf16>
    %53 = vector.shape_cast %52 : vector<128x16xbf16> to vector<1x128x16xbf16>
    %cst_26 = arith.constant 0.000000e+00 : bf16
    %54 = vector.broadcast %cst_26 : bf16 to vector<1x56x16xbf16>
    %55 = tpu.concatenate %54, %53, %54 in 1 : vector<1x56x16xbf16>, vector<1x128x16xbf16>, vector<1x56x16xbf16> -> vector<1x240x16xbf16>
    %56 = vector.extract_strided_slice %55 {offsets = [0, 0, 0], sizes = [1, 128, 16], strides = [1, 1, 1]} : vector<1x240x16xbf16> to vector<1x128x16xbf16>
    %57 = vector.extract_strided_slice %55 {offsets = [0, 8, 0], sizes = [1, 128, 16], strides = [1, 1, 1]} : vector<1x240x16xbf16> to vector<1x128x16xbf16>
    %58 = vector.extract_strided_slice %55 {offsets = [0, 16, 0], sizes = [1, 128, 16], strides = [1, 1, 1]} : vector<1x240x16xbf16> to vector<1x128x16xbf16>
    %59 = vector.extract_strided_slice %55 {offsets = [0, 24, 0], sizes = [1, 128, 16], strides = [1, 1, 1]} : vector<1x240x16xbf16> to vector<1x128x16xbf16>
    %60 = vector.extract_strided_slice %55 {offsets = [0, 32, 0], sizes = [1, 128, 16], strides = [1, 1, 1]} : vector<1x240x16xbf16> to vector<1x128x16xbf16>
    %61 = vector.extract_strided_slice %55 {offsets = [0, 40, 0], sizes = [1, 128, 16], strides = [1, 1, 1]} : vector<1x240x16xbf16> to vector<1x128x16xbf16>
    %62 = vector.extract_strided_slice %55 {offsets = [0, 48, 0], sizes = [1, 128, 16], strides = [1, 1, 1]} : vector<1x240x16xbf16> to vector<1x128x16xbf16>
    %63 = vector.extract_strided_slice %55 {offsets = [0, 56, 0], sizes = [1, 128, 16], strides = [1, 1, 1]} : vector<1x240x16xbf16> to vector<1x128x16xbf16>
    %64 = vector.extract_strided_slice %55 {offsets = [0, 64, 0], sizes = [1, 128, 16], strides = [1, 1, 1]} : vector<1x240x16xbf16> to vector<1x128x16xbf16>
    %65 = vector.extract_strided_slice %55 {offsets = [0, 72, 0], sizes = [1, 128, 16], strides = [1, 1, 1]} : vector<1x240x16xbf16> to vector<1x128x16xbf16>
    %66 = vector.extract_strided_slice %55 {offsets = [0, 80, 0], sizes = [1, 128, 16], strides = [1, 1, 1]} : vector<1x240x16xbf16> to vector<1x128x16xbf16>
    %67 = vector.extract_strided_slice %55 {offsets = [0, 88, 0], sizes = [1, 128, 16], strides = [1, 1, 1]} : vector<1x240x16xbf16> to vector<1x128x16xbf16>
    %68 = vector.extract_strided_slice %55 {offsets = [0, 96, 0], sizes = [1, 128, 16], strides = [1, 1, 1]} : vector<1x240x16xbf16> to vector<1x128x16xbf16>
    %69 = vector.extract_strided_slice %55 {offsets = [0, 104, 0], sizes = [1, 128, 16], strides = [1, 1, 1]} : vector<1x240x16xbf16> to vector<1x128x16xbf16>
    %70 = vector.extract_strided_slice %55 {offsets = [0, 112, 0], sizes = [1, 128, 16], strides = [1, 1, 1]} : vector<1x240x16xbf16> to vector<1x128x16xbf16>
    %71 = tpu.concatenate %56, %57, %58, %59, %60, %61, %62, %63, %64, %65, %66, %67, %68, %69, %70 in 2 : vector<1x128x16xbf16>, vector<1x128x16xbf16>, vector<1x128x16xbf16>, vector<1x128x16xbf16>, vector<1x128x16xbf16>, vector<1x128x16xbf16>, vector<1x128x16xbf16>, vector<1x128x16xbf16>, vector<1x128x16xbf16>, vector<1x128x16xbf16>, vector<1x128x16xbf16>, vector<1x128x16xbf16>, vector<1x128x16xbf16>, vector<1x128x16xbf16>, vector<1x128x16xbf16> -> vector<1x128x240xbf16>
    %72 = vector.shape_cast %71 : vector<1x128x240xbf16> to vector<128x240xbf16>
    %c0_27 = arith.constant 0 : index
    %c0_28 = arith.constant 0 : index
    %73 = vector.load %arg10[%c0_27, %c0_28] : memref<240x16xbf16, #tpu.memory_space<vmem>>, vector<240x16xbf16>
    %cst_29 = arith.constant dense<0.000000e+00> : vector<128x16xf32>
    %74 = tpu.matmul %72, %73, %cst_29 {dimension_numbers = #tpu.dot_dimension_numbers<[1], [0], [0], [1], [0, 0, 1, 1], [], []>} : vector<128x240xbf16>, vector<240x16xbf16>, vector<128x16xf32> -> vector<128x16xf32>
    %c0_30 = arith.constant 0 : index
    %c0_31 = arith.constant 0 : index
    %75 = vector.load %arg11[%c0_30, %c0_31] : memref<1x16xf32, #tpu.memory_space<vmem>>, vector<1x16xf32>
    %76 = vector.broadcast %75 : vector<1x16xf32> to vector<128x16xf32>
    %77 = arith.addf %74, %76 : vector<128x16xf32>
    %cst_32 = arith.constant 0.000000e+00 : f32
    %78 = vector.broadcast %cst_32 : f32 to vector<128x16xf32>
    %79 = arith.maximumf %77, %78 : vector<128x16xf32>
    %80 = arith.truncf %79 : vector<128x16xf32> to vector<128x16xbf16>
    %81 = vector.shape_cast %80 : vector<128x16xbf16> to vector<1x128x16xbf16>
    %cst_33 = arith.constant 0.000000e+00 : bf16
    %82 = vector.broadcast %cst_33 : bf16 to vector<1x72x16xbf16>
    %83 = tpu.concatenate %82, %81, %82 in 1 : vector<1x72x16xbf16>, vector<1x128x16xbf16>, vector<1x72x16xbf16> -> vector<1x272x16xbf16>
    %84 = vector.extract_strided_slice %83 {offsets = [0, 0, 0], sizes = [1, 128, 16], strides = [1, 1, 1]} : vector<1x272x16xbf16> to vector<1x128x16xbf16>
    %85 = vector.extract_strided_slice %83 {offsets = [0, 8, 0], sizes = [1, 128, 16], strides = [1, 1, 1]} : vector<1x272x16xbf16> to vector<1x128x16xbf16>
    %86 = vector.extract_strided_slice %83 {offsets = [0, 16, 0], sizes = [1, 128, 16], strides = [1, 1, 1]} : vector<1x272x16xbf16> to vector<1x128x16xbf16>
    %87 = vector.extract_strided_slice %83 {offsets = [0, 24, 0], sizes = [1, 128, 16], strides = [1, 1, 1]} : vector<1x272x16xbf16> to vector<1x128x16xbf16>
    %88 = vector.extract_strided_slice %83 {offsets = [0, 32, 0], sizes = [1, 128, 16], strides = [1, 1, 1]} : vector<1x272x16xbf16> to vector<1x128x16xbf16>
    %89 = vector.extract_strided_slice %83 {offsets = [0, 40, 0], sizes = [1, 128, 16], strides = [1, 1, 1]} : vector<1x272x16xbf16> to vector<1x128x16xbf16>
    %90 = vector.extract_strided_slice %83 {offsets = [0, 48, 0], sizes = [1, 128, 16], strides = [1, 1, 1]} : vector<1x272x16xbf16> to vector<1x128x16xbf16>
    %91 = vector.extract_strided_slice %83 {offsets = [0, 56, 0], sizes = [1, 128, 16], strides = [1, 1, 1]} : vector<1x272x16xbf16> to vector<1x128x16xbf16>
    %92 = vector.extract_strided_slice %83 {offsets = [0, 64, 0], sizes = [1, 128, 16], strides = [1, 1, 1]} : vector<1x272x16xbf16> to vector<1x128x16xbf16>
    %93 = vector.extract_strided_slice %83 {offsets = [0, 72, 0], sizes = [1, 128, 16], strides = [1, 1, 1]} : vector<1x272x16xbf16> to vector<1x128x16xbf16>
    %94 = vector.extract_strided_slice %83 {offsets = [0, 80, 0], sizes = [1, 128, 16], strides = [1, 1, 1]} : vector<1x272x16xbf16> to vector<1x128x16xbf16>
    %95 = vector.extract_strided_slice %83 {offsets = [0, 88, 0], sizes = [1, 128, 16], strides = [1, 1, 1]} : vector<1x272x16xbf16> to vector<1x128x16xbf16>
    %96 = vector.extract_strided_slice %83 {offsets = [0, 96, 0], sizes = [1, 128, 16], strides = [1, 1, 1]} : vector<1x272x16xbf16> to vector<1x128x16xbf16>
    %97 = vector.extract_strided_slice %83 {offsets = [0, 104, 0], sizes = [1, 128, 16], strides = [1, 1, 1]} : vector<1x272x16xbf16> to vector<1x128x16xbf16>
    %98 = vector.extract_strided_slice %83 {offsets = [0, 112, 0], sizes = [1, 128, 16], strides = [1, 1, 1]} : vector<1x272x16xbf16> to vector<1x128x16xbf16>
    %99 = vector.extract_strided_slice %83 {offsets = [0, 120, 0], sizes = [1, 128, 16], strides = [1, 1, 1]} : vector<1x272x16xbf16> to vector<1x128x16xbf16>
    %100 = vector.extract_strided_slice %83 {offsets = [0, 128, 0], sizes = [1, 128, 16], strides = [1, 1, 1]} : vector<1x272x16xbf16> to vector<1x128x16xbf16>
    %101 = vector.extract_strided_slice %83 {offsets = [0, 136, 0], sizes = [1, 128, 16], strides = [1, 1, 1]} : vector<1x272x16xbf16> to vector<1x128x16xbf16>
    %102 = vector.extract_strided_slice %83 {offsets = [0, 144, 0], sizes = [1, 128, 16], strides = [1, 1, 1]} : vector<1x272x16xbf16> to vector<1x128x16xbf16>
    %103 = tpu.concatenate %84, %85, %86, %87, %88, %89, %90, %91, %92, %93, %94, %95, %96, %97, %98, %99 in 2 : vector<1x128x16xbf16>, vector<1x128x16xbf16>, vector<1x128x16xbf16>, vector<1x128x16xbf16>, vector<1x128x16xbf16>, vector<1x128x16xbf16>, vector<1x128x16xbf16>, vector<1x128x16xbf16>, vector<1x128x16xbf16>, vector<1x128x16xbf16>, vector<1x128x16xbf16>, vector<1x128x16xbf16>, vector<1x128x16xbf16>, vector<1x128x16xbf16>, vector<1x128x16xbf16>, vector<1x128x16xbf16> -> vector<1x128x256xbf16>
    %104 = tpu.concatenate %100, %101, %102 in 2 : vector<1x128x16xbf16>, vector<1x128x16xbf16>, vector<1x128x16xbf16> -> vector<1x128x48xbf16>
    %105 = tpu.concatenate %103, %104 in 2 : vector<1x128x256xbf16>, vector<1x128x48xbf16> -> vector<1x128x304xbf16>
    %106 = vector.shape_cast %105 : vector<1x128x304xbf16> to vector<128x304xbf16>
    %c0_34 = arith.constant 0 : index
    %c0_35 = arith.constant 0 : index
    %107 = vector.load %arg12[%c0_34, %c0_35] : memref<304x16xbf16, #tpu.memory_space<vmem>>, vector<304x16xbf16>
    %cst_36 = arith.constant dense<0.000000e+00> : vector<128x16xf32>
    %108 = tpu.matmul %106, %107, %cst_36 {dimension_numbers = #tpu.dot_dimension_numbers<[1], [0], [0], [1], [0, 0, 1, 1], [], []>} : vector<128x304xbf16>, vector<304x16xbf16>, vector<128x16xf32> -> vector<128x16xf32>
    %c0_37 = arith.constant 0 : index
    %c0_38 = arith.constant 0 : index
    %109 = vector.load %arg13[%c0_37, %c0_38] : memref<1x16xf32, #tpu.memory_space<vmem>>, vector<1x16xf32>
    %110 = vector.broadcast %109 : vector<1x16xf32> to vector<128x16xf32>
    %111 = arith.addf %108, %110 : vector<128x16xf32>
    %cst_39 = arith.constant 0.000000e+00 : f32
    %112 = vector.broadcast %cst_39 : f32 to vector<128x16xf32>
    %113 = arith.maximumf %111, %112 : vector<128x16xf32>
    %114 = tpu.concatenate %51, %79, %113 in 1 : vector<128x16xf32>, vector<128x16xf32>, vector<128x16xf32> -> vector<128x48xf32>
    %115 = vector.shape_cast %114 : vector<128x48xf32> to vector<1x128x48xf32>
    %c0_40 = arith.constant 0 : index
    %c0_41 = arith.constant 0 : index
    %c0_42 = arith.constant 0 : index
    %116 = vector.load %arg14[%c0_40, %c0_41, %c0_42] : memref<1x128x48xf32, #tpu.memory_space<vmem>>, vector<1x128x48xf32>
    tpu.vector_store %arg14[%c0_40, %c0_41, %c0_42], %115 {strides = array<i32>} : memref<1x128x48xf32, #tpu.memory_space<vmem>>, vector<1x128x48xf32>,
    return
  }
  func.func @transform_0(%arg0: i32) -> (i32, i32, i32) {
    %c0_i32 = arith.constant 0 : i32
    %c0_i32_0 = arith.constant 0 : i32
    %c0_i32_1 = arith.constant 0 : i32
    return %arg0, %c0_i32, %c0_i32_0 : i32, i32, i32
  }
  func.func @transform_1(%arg0: i32) -> (i32, i32) {
    %c0_i32 = arith.constant 0 : i32
    %c0_i32_0 = arith.constant 0 : i32
    %c0_i32_1 = arith.constant 0 : i32
    return %c0_i32, %c0_i32_0 : i32, i32
  }
  func.func @transform_2(%arg0: i32) -> (i32, i32) {
    %c0_i32 = arith.constant 0 : i32
    %c0_i32_0 = arith.constant 0 : i32
    %c0_i32_1 = arith.constant 0 : i32
    return %c0_i32, %c0_i32_0 : i32, i32
  }
  func.func @transform_3(%arg0: i32) -> (i32, i32) {
    %c0_i32 = arith.constant 0 : i32
    %c0_i32_0 = arith.constant 0 : i32
    %c0_i32_1 = arith.constant 0 : i32
    return %c0_i32, %c0_i32_0 : i32, i32
  }
  func.func @transform_4(%arg0: i32) -> (i32, i32) {
    %c0_i32 = arith.constant 0 : i32
    %c0_i32_0 = arith.constant 0 : i32
    %c0_i32_1 = arith.constant 0 : i32
    return %c0_i32, %c0_i32_0 : i32, i32
  }
  func.func @transform_5(%arg0: i32) -> (i32, i32) {
    %c0_i32 = arith.constant 0 : i32
    %c0_i32_0 = arith.constant 0 : i32
    %c0_i32_1 = arith.constant 0 : i32
    return %c0_i32, %c0_i32_0 : i32, i32
  }
  func.func @transform_6(%arg0: i32) -> (i32, i32) {
    %c0_i32 = arith.constant 0 : i32
    %c0_i32_0 = arith.constant 0 : i32
    %c0_i32_1 = arith.constant 0 : i32
    return %c0_i32, %c0_i32_0 : i32, i32
  }
  func.func @transform_7(%arg0: i32) -> (i32, i32) {
    %c0_i32 = arith.constant 0 : i32
    %c0_i32_0 = arith.constant 0 : i32
    %c0_i32_1 = arith.constant 0 : i32
    return %c0_i32, %c0_i32_0 : i32, i32
  }
  func.func @transform_8(%arg0: i32) -> (i32, i32) {
    %c0_i32 = arith.constant 0 : i32
    %c0_i32_0 = arith.constant 0 : i32
    %c0_i32_1 = arith.constant 0 : i32
    return %c0_i32, %c0_i32_0 : i32, i32
  }
  func.func @transform_9(%arg0: i32) -> (i32, i32) {
    %c0_i32 = arith.constant 0 : i32
    %c0_i32_0 = arith.constant 0 : i32
    %c0_i32_1 = arith.constant 0 : i32
    return %c0_i32, %c0_i32_0 : i32, i32
  }
  func.func @transform_10(%arg0: i32) -> (i32, i32) {
    %c0_i32 = arith.constant 0 : i32
    %c0_i32_0 = arith.constant 0 : i32
    %c0_i32_1 = arith.constant 0 : i32
    return %c0_i32, %c0_i32_0 : i32, i32
  }
  func.func @transform_11(%arg0: i32) -> (i32, i32) {
    %c0_i32 = arith.constant 0 : i32
    %c0_i32_0 = arith.constant 0 : i32
    %c0_i32_1 = arith.constant 0 : i32
    return %c0_i32, %c0_i32_0 : i32, i32
  }
  func.func @transform_12(%arg0: i32) -> (i32, i32) {
    %c0_i32 = arith.constant 0 : i32
    %c0_i32_0 = arith.constant 0 : i32
    %c0_i32_1 = arith.constant 0 : i32
    return %c0_i32, %c0_i32_0 : i32, i32
  }
  func.func @transform_13(%arg0: i32) -> (i32, i32, i32) {
    %c0_i32 = arith.constant 0 : i32
    %c0_i32_0 = arith.constant 0 : i32
    %c0_i32_1 = arith.constant 0 : i32
    return %arg0, %c0_i32, %c0_i32_0 : i32, i32, i32
  }
}

</mosaic_0001>

<bundles_post_ra>
// kernel: tpu_custom_call.1
= control target key start
LH: loop header
LB: loop body
LE: loop exit
PB: predicated region body
PF: predicated region fallthrough
CT: control target
= control target key end

     0   :  { %s5124_s25 = smov 0   ;;  %s6957_s0 = inlined_call_operand.vmem [shape: bf16[2,128,36], index: 0, kind: input, shape index: {}]   ;;  %s6958_s1 = inlined_call_operand.vmem [shape: bf16[128,128], index: 1, kind: input, shape index: {}]   ;;  %s6959_s2 = inlined_call_operand.vmem [shape: bf16[128,128], index: 2, kind: input, shape index: {}]   ;;  %s6960_s3 = inlined_call_operand.vmem [shape: bf16[36,64], index: 3, kind: input, shape index: {}]   ;;  %s6961_s4 = inlined_call_operand.vmem [shape: f32[1,64], index: 4, kind: input, shape index: {}]   ;;  %s6962_s5 = inlined_call_operand.vmem [shape: bf16[68,128], index: 5, kind: input, shape index: {}]   ;;  %s6963_s6 = inlined_call_operand.vmem [shape: f32[1,128], index: 6, kind: input, shape index: {}]   ;;  %s6964_s7 = inlined_call_operand.vmem [shape: bf16[1152,16], index: 7, kind: input, shape index: {}]   ;;  %s6965_s8 = inlined_call_operand.vmem [shape: f32[1,16], index: 8, kind: input, shape index: {}]   ;;  %s6966_s9 = inlined_call_operand.vmem [shape: bf16[240,16], index: 9, kind: input, shape index: {}]   ;;  %s6967_s10 = inlined_call_operand.vmem [shape: f32[1,16], index: 10, kind: input, shape index: {}]   ;;  %s6968_s11 = inlined_call_operand.vmem [shape: bf16[304,16], index: 11, kind: input, shape index: {}]   ;;  %s6969_s12 = inlined_call_operand.vmem [shape: f32[1,16], index: 12, kind: input, shape index: {}]   ;;  %s6970_s13 = inlined_call_operand.vmem [shape: f32[2,128,48], index: 13, kind: output, shape index: {}]  }
   0x1 LB: > { %s4083_s26 = sadd.s32 4294967295, %s5043_s25   ;;  %p4087_p0 = scmp.ge.s32.totalorder %s5043_s25, 1  ;;  %s5043_s25 = sphi %s5124_s25, %s23_s25  }
   0x2   : > { %p387_p1 = scmp.lt.s32.totalorder %s5043_s25, 3 }
   0x4   : > { %p388_p2 = pnand %p4087_p0, %p387_p1 }
   0x6   : > { %391 = sbr.rel (%p388_p2) target bundleno = 2458 (0x99a), region = 72 }
   0xd   : > { %v4899_v0 = vld [vmem:[%s6960_s3] sm:$0xff]   ;;  %v4900_v1 = vld [vmem:[%s6960_s3 + $0x8] sm:$0xff]   ;;  %p431_p3 = scmp.lt.s32.totalorder %s4083_s26, 1  ;;  %v4901_v2 = vld [vmem:[%s6960_s3 + $0x10] ss:$0 sps:$4 sm:$0x33]  }
   0xe   : > { %4674 = vmatprep.subr.bf16.mxu0 %v4899_v0  ;;  %vm550_vm0 = vcmask 1041408   ;;  %vm525_vm1 = vcmask 293888   ;;  %s5045_s20 = smov 112   ;;  %v4910_v12 = vld [vmem:[%s6962_s5] sm:$0xff]   ;;  %v4911_v13 = vld [vmem:[%s6962_s5 + $0x8] sm:$0xff]   ;;  %v4912_v14 = vld [vmem:[%s6962_s5 + $0x10] sm:$0xff]  }
   0xf   : > { %4675 = vmatpush3.bf16.msra.mxu0 %v4899_v0  ;;  %s7045_s26 = smov (!%p431_p3, %s4083_s26), 1  ;;  %v552_v4 = vsel %vm550_vm0, %v4901_v2, 0  ;;  %4696 = vmatprep.subr.bf16.mxu1 %v4910_v12  ;;  %v4913_v15 = vld [vmem:[%s6962_s5 + $0x18] sm:$0xff]   ;;  %v4914_v16 = vld [vmem:[%s6962_s5 + $0x20] ss:$0 sps:$4 sm:$0x33]  }
  0x10   : > { %4676 = vmatprep.subr.bf16.mxu0 %v4900_v1  ;;  %s4269_s16 = sshll.u32 %s7045_s26, 6  ;;  %4697 = vmatpush3.bf16.msra.mxu1 %v4910_v12  ;;  %v801_v17 = vsel %vm550_vm0, %v4914_v16, 0  ;;  %v4092_v18 = vld [vmem:[%s6961_s4] ss:$0 sm:$0xff]  ;;  %s5046_s18 = smov 4   ;;  %vm715_vm2 = vcmask 31744  }
  0x11   : > { %s435_s19 = scalar_lea.vmem %s6957_s0, %s4269_s16  ;;  %4698 = vmatprep.subr.bf16.mxu1 %v4911_v13  ;;  %vm783_vm3 = vcmask 556032   ;;  %s5047_s22 = smov 64   ;;  %vm1342_vm4 = vcmask 523264   ;;  %vm1375_vm5 = vcmask 1043456   ;;  %vm2690_vm6 = vcmask 130048  }
  0x12   : > { %v4902_v3 = vld [vmem:[%s435_s19] sm:$0xff]   ;;  %v4903_v5 = vld [vmem:[%s435_s19 + $0x8] sm:$0xff]   ;;  %v4904_v6 = vld [vmem:[%s435_s19 + $0x10] sm:$0xff]   ;;  %s5049_s15 = smov 16   ;;  %s5050_s16 = smov 32   ;;  %vm2709_vm7 = vcmask 261120  }
  0x13   : > { %4677 = vmatpush3.bf16.msra.mxu0 %v4900_v1  ;;  %4680 = vmatprep.mubr.msk.bf16.mxu0 %vm525_vm1, %v4902_v3  ;;  %v5152_v7 = vld [vmem:[%s435_s19 + $0x18] sm:$0xff]   ;;  %v5154_v8 = vld [vmem:[%s435_s19 + $0x20] sm:$0xff]   ;;  %v5160_v9 = vld [vmem:[%s435_s19 + $0x28] sm:$0xff]   ;;  %s5051_s17 = smov 48   ;;  %s5052_s21 = smov 96   ;;  %vm2724_vm8 = vcmask 392192  }
  0x14   : > { %4840 = vmatprep.subr.msk.bf16.mxu0 %vm550_vm0, %v4901_v2  ;;  %v5162_v10 = vld [vmem:[%s435_s19 + $0x30] sm:$0xff]   ;;  %v5168_v11 = vld [vmem:[%s435_s19 + $0x38] sm:$0xff]   ;;  %677 = vrot.lane.b32.xlu1 %v4903_v5, %s5045_s20  ;;  %s5053_s29 = smov 80   ;;  %vm2757_vm9 = vcmask 654336   ;;  %vm2774_vm10 = vcmask 785408   ;;  %vm2791_vm11 = vcmask 916480  }
  0x15   : > { %675 = vrot.lane.b32.xlu0 %v4902_v3, %s5045_s20  ;;  %4699 = vmatpush3.bf16.msra.mxu1 %v4911_v13 }
  0x16   : > { %4700 = vmatprep.subr.bf16.mxu1 %v4912_v14 }
  0x17   : > { %4679 = vmatpush3.bf16.msra.mxu0 %v552_v4 }
  0x19   : > { %4701 = vmatpush3.bf16.msra.mxu1 %v4912_v14 }
  0x1a   : > { %4681 = vmatmul.mubr.msk.bf16.vlgmr.msra.gmra.mrb[0].mxu0 %vm525_vm1, %v4903_v5  ;;  %4702 = vmatprep.subr.bf16.mxu1 %v4913_v15 }
  0x1b   : > { %4684 = vmatprep.mubr.msk.bf16.mxu0 %vm525_vm1, %v4904_v6 }
  0x1d   : > { %4703 = vmatpush3.bf16.msra.mxu1 %v4913_v15 }
  0x1e   : > { %4841 = vmatprep.subr.msk.bf16.mxu1 %vm550_vm0, %v4914_v16 }
  0x21   : > { %4705 = vmatpush3.bf16.msra.mxu1 %v801_v17 }
  0x22   : > { %4685 = vmatmul.mubr.msk.bf16.gmra.mrb[4].mxu0 %vm525_vm1, %v5152_v7 }
  0x23   : > { %4688 = vmatprep.mubr.msk.bf16.mxu0 %vm525_vm1, %v5154_v8 }
  0x2a   : > { %4689 = vmatmul.mubr.msk.bf16.gmra.mrb[8].mxu0 %vm525_vm1, %v5160_v9 }
  0x2b   : > { %4692 = vmatprep.mubr.msk.bf16.mxu0 %vm525_vm1, %v5162_v10 }
  0x32   : > { %4693 = vmatmul.mubr.msk.bf16.gmra.mrb[12].mxu0 %vm525_vm1, %v5168_v11 }
  0x87   : > { %v676_v14 = vpop.permute.xlu0 %675 }
  0xed   : > { %v4682_v19 = vpop.f32.mrb[0].mxu0 }
  0xee   : > { %v597_v20 = vadd.f32 %v4682_v19, %v4092_v18  ;;  %v588_v21 = vpop.f32.mrb[1].mxu0 }
  0xef   : > { %v589_v22 = vadd.f32 %v4092_v18, %v588_v21  ;;  %v4683_v23 = vpop.f32.mrb[2].mxu0 }
  0xf0   : > { %v600_v24 = vadd.f32 %v4683_v23, %v4092_v18  ;;  %v591_v25 = vpop.f32.mrb[3].mxu0  ;;  %v653_v27 = vmax.f32 %v597_v20, 0.0 }
  0xf1   : > { %v592_v26 = vadd.f32 %v4092_v18, %v591_v25  ;;  %v651_v29 = vmax.f32 %v589_v22, 0.0 }
  0xf2   : > { %v654_v28 = vmax.f32 %v600_v24, 0.0 }
  0xf3   : > { %v652_v30 = vmax.f32 %v592_v26, 0.0 }
  0xf4   : > { %v668_v31 = vpack.c.bf16 %v654_v28, %v653_v27 }
  0xf5   : > { %v667_v32 = vpack.c.bf16 %v652_v30, %v651_v29  ;;  %v4686_v33 = vpop.f32.mrb[4].mxu0 }
  0xf6   : > { %v613_v34 = vadd.f32 %v4686_v33, %v4092_v18  ;;  %701 = vrot.lane.b32.xlu1 %v668_v31, %s5046_s18  ;;  %v604_v35 = vpop.f32.mrb[5].mxu0 }
  0xf7   : > { %v605_v36 = vadd.f32 %v4092_v18, %v604_v35  ;;  %v4687_v37 = vpop.f32.mrb[6].mxu0  ;;  %699 = vrot.lane.b32.xlu0 %v667_v32, %s5046_s18  ;;  %v5232_v35 = vld [vmem:[%s6963_s6] ss:$0 sm:$0xff] }
  0xf8   : > { %v616_v38 = vadd.f32 %v4687_v37, %v4092_v18  ;;  %v607_v39 = vpop.f32.mrb[7].mxu0  ;;  %v657_v41 = vmax.f32 %v613_v34, 0.0 }
  0xf9   : > { %v608_v40 = vadd.f32 %v4092_v18, %v607_v39  ;;  %v655_v43 = vmax.f32 %v605_v36, 0.0 }
  0xfa   : > { %v658_v42 = vmax.f32 %v616_v38, 0.0 }
  0xfb   : > { %v656_v44 = vmax.f32 %v608_v40, 0.0  ;;  %679 = vrot.lane.b32.xlu0 %v4904_v6, %s5045_s20 }
  0xfc   : > { %v670_v45 = vpack.c.bf16 %v658_v42, %v657_v41 }
  0xfd   : > { %v669_v46 = vpack.c.bf16 %v656_v44, %v655_v43  ;;  %v4690_v47 = vpop.f32.mrb[8].mxu0 }
  0xfe   : > { %v629_v48 = vadd.f32 %v4690_v47, %v4092_v18  ;;  %v620_v49 = vpop.f32.mrb[9].mxu0 }
  0xff   : > { %v621_v50 = vadd.f32 %v4092_v18, %v620_v49  ;;  %v4691_v51 = vpop.f32.mrb[10].mxu0  ;;  %703 = vrot.lane.b32.xlu1 %v669_v46, %s5046_s18  ;;  %681 = vrot.lane.b32.xlu0 %v5152_v7, %s5045_s20 }
 0x100   : > { %v632_v52 = vadd.f32 %v4691_v51, %v4092_v18  ;;  %v623_v53 = vpop.f32.mrb[11].mxu0  ;;  %v661_v55 = vmax.f32 %v629_v48, 0.0 }
 0x101   : > { %v624_v54 = vadd.f32 %v4092_v18, %v623_v53  ;;  %v659_v57 = vmax.f32 %v621_v50, 0.0 }
 0x102   : > { %v662_v56 = vmax.f32 %v632_v52, 0.0 }
 0x103   : > { %v660_v58 = vmax.f32 %v624_v54, 0.0  ;;  %705 = vrot.lane.b32.xlu1 %v670_v45, %s5046_s18  ;;  %683 = vrot.lane.b32.xlu0 %v5154_v8, %s5045_s20 }
 0x104   : > { %v672_v59 = vpack.c.bf16 %v662_v56, %v661_v55 }
 0x105   : > { %v671_v60 = vpack.c.bf16 %v660_v58, %v659_v57  ;;  %v4694_v61 = vpop.f32.mrb[12].mxu0 }
 0x106   : > { %v645_v62 = vadd.f32 %v4694_v61, %v4092_v18  ;;  %v636_v63 = vpop.f32.mrb[13].mxu0 }
 0x107   : > { %v637_v0 = vadd.f32 %v4092_v18, %v636_v63  ;;  %v4695_v1 = vpop.f32.mrb[14].mxu0  ;;  %707 = vrot.lane.b32.xlu1 %v671_v60, %s5046_s18  ;;  %685 = vrot.lane.b32.xlu0 %v5160_v9, %s5045_s20  ;;  %v678_v9 = vpop.permute.xlu1 %677 }
 0x108   : > { %v648_v2 = vadd.f32 %v4695_v1, %v4092_v18  ;;  %v639_v3 = vpop.f32.mrb[15].mxu0  ;;  %v665_v5 = vmax.f32 %v645_v62, 0.0 }
 0x109   : > { %v640_v4 = vadd.f32 %v4092_v18, %v639_v3  ;;  %v663_v7 = vmax.f32 %v637_v0, 0.0 }
 0x10a   : > { %v666_v6 = vmax.f32 %v648_v2, 0.0 }
 0x10b   : > { %v664_v12 = vmax.f32 %v640_v4, 0.0  ;;  %709 = vrot.lane.b32.xlu1 %v672_v59, %s5046_s18  ;;  %687 = vrot.lane.b32.xlu0 %v5162_v10, %s5045_s20 }
 0x10c   : > { %v674_v8 = vpack.c.bf16 %v666_v6, %v665_v5 }
 0x10d   : > { %v673_v13 = vpack.c.bf16 %v664_v12, %v663_v7 }
 0x10f   : > { %711 = vrot.lane.b32.xlu1 %v673_v13, %s5046_s18  ;;  %689 = vrot.lane.b32.xlu0 %v5168_v11, %s5045_s20 }
 0x113   : > { %713 = vrot.lane.b32.xlu1 %v674_v8, %s5046_s18 }
 0x168   : > { %v702_v15 = vpop.permute.xlu1 %701 }
 0x169   : > { %v700_v16 = vpop.permute.xlu0 %699  ;;  %v721_v18 = vsel %vm715_vm2, %v678_v9, %v702_v15 }
 0x16a   : > { %v718_v17 = vsel %vm715_vm2, %v676_v14, %v700_v16 }
 0x16b   : > { %4706 = vmatprep.mubr.msk.bf16.mxu1 %vm783_vm3, %v718_v17 }
 0x16c   : > { %4707 = vmatmul.mubr.msk.bf16.vlgmr.msra.gmra.mrb[0].mxu1 %vm783_vm3, %v721_v18 }
 0x16d   : > { %v680_v10 = vpop.permute.xlu0 %679 }
 0x171   : > { %v704_v19 = vpop.permute.xlu1 %703  ;;  %v682_v20 = vpop.permute.xlu0 %681 }
 0x172   : > { %v724_v11 = vsel %vm715_vm2, %v680_v10, %v704_v19 }
 0x173   : > { %4710 = vmatprep.mubr.msk.bf16.mxu1 %vm783_vm3, %v724_v11 }
 0x175   : > { %v706_v21 = vpop.permute.xlu1 %705  ;;  %v684_v22 = vpop.permute.xlu0 %683 }
 0x176   : > { %v727_v23 = vsel %vm715_vm2, %v682_v20, %v706_v21  ;;  %v4915_v20 = vld [vmem:[%s6959_s2] sm:$0xff]  }
 0x177   : > { %4711 = vmatmul.mubr.msk.bf16.gmra.mrb[4].mxu1 %vm783_vm3, %v727_v23 }
 0x179   : > { %v708_v24 = vpop.permute.xlu1 %707  ;;  %v686_v25 = vpop.permute.xlu0 %685 }
 0x17a   : > { %v730_v26 = vsel %vm715_vm2, %v684_v22, %v708_v24 }
 0x17b   : > { %4714 = vmatprep.mubr.msk.bf16.mxu1 %vm783_vm3, %v730_v26 }
 0x17d   : > { %v710_v27 = vpop.permute.xlu1 %709  ;;  %v688_v28 = vpop.permute.xlu0 %687 }
 0x17e   : > { %v733_v29 = vsel %vm715_vm2, %v686_v25, %v710_v27 }
 0x17f   : > { %4715 = vmatmul.mubr.msk.bf16.gmra.mrb[8].mxu1 %vm783_vm3, %v733_v29  ;;  %v4923_v29 = vld [vmem:[%s6958_s1] sm:$0xff]  }
 0x180   : > { %4738 = vmatprep.mubr.bf16.mxu0 %v4923_v29 }
 0x181   : > { %v712_v30 = vpop.permute.xlu1 %711  ;;  %v690_v32 = vpop.permute.xlu0 %689 }
 0x182   : > { %v736_v31 = vsel %vm715_vm2, %v688_v28, %v712_v30  ;;  %v4924_v30 = vld [vmem:[%s6958_s1 + $0x8] sm:$0xff]  }
 0x183   : > { %4718 = vmatprep.mubr.msk.bf16.mxu1 %vm783_vm3, %v736_v31  ;;  %v4925_v31 = vld [vmem:[%s6958_s1 + $0x10] sm:$0xff]  }
 0x185   : > { %v714_v33 = vpop.permute.xlu1 %713 }
 0x186   : > { %v739_v34 = vsel %vm715_vm2, %v690_v32, %v714_v33  ;;  %v4926_v32 = vld [vmem:[%s6958_s1 + $0x18] sm:$0xff]   ;;  %v4927_v33 = vld [vmem:[%s6958_s1 + $0x20] sm:$0xff]  }
 0x187   : > { %4719 = vmatmul.mubr.msk.bf16.gmra.mrb[12].mxu1 %vm783_vm3, %v739_v34  ;;  %v4928_v34 = vld [vmem:[%s6958_s1 + $0x28] sm:$0xff]  }
 0x188   : > { %4770 = vmatprep.mubr.bf16.mxu1 %v4915_v20  ;;  %v4955_v20 = vld [vmem:[%s6964_s7 + $0x78] sm:$0xff]  }
 0x23f   : > { %v4708_v36 = vpop.f32.mrb[0].mxu1 }
 0x240   : > { %v846_v37 = vadd.f32 %v4708_v36, %v5232_v35  ;;  %v837_v38 = vpop.f32.mrb[1].mxu1  ;;  %v4930_v36 = vld [vmem:[%s6958_s1 + $0x38] sm:$0xff]  }
 0x241   : > { %v838_v39 = vadd.f32 %v5232_v35, %v837_v38  ;;  %v4709_v40 = vpop.f32.mrb[2].mxu1 }
 0x242   : > { %v849_v41 = vadd.f32 %v4709_v40, %v5232_v35  ;;  %v840_v42 = vpop.f32.mrb[3].mxu1  ;;  %v902_v44 = vmax.f32 %v846_v37, 0.0 }
 0x243   : > { %v841_v43 = vadd.f32 %v5232_v35, %v840_v42  ;;  %v900_v46 = vmax.f32 %v838_v39, 0.0 }
 0x244   : > { %v903_v45 = vmax.f32 %v849_v41, 0.0 }
 0x245   : > { %v901_v47 = vmax.f32 %v841_v43, 0.0 }
 0x246   : > { %v917_v48 = vpack.c.bf16 %v903_v45, %v902_v44  ;;  %v4916_v45 = vld [vmem:[%s6959_s2 + $0x8] sm:$0xff]  }
 0x247   : > { %v916_v49 = vpack.c.bf16 %v901_v47, %v900_v46  ;;  %v4917_v46 = vld [vmem:[%s6959_s2 + $0x10] sm:$0xff]   ;;  %v4918_v47 = vld [vmem:[%s6959_s2 + $0x18] sm:$0xff]  }
 0x248   : > { %1159 = vrot.lane.b32.xlu1 %v917_v48, %s5047_s22 }
 0x249   : > { %1157 = vrot.lane.b32.xlu0 %v916_v49, %s5047_s22  ;;  %4722 = vmatprep.subr.bf16.mxu0 %v916_v49 }
 0x24a   : > { %v4712_v50 = vpop.f32.mrb[4].mxu1  ;;  %4723 = vmatpush3.bf16.msra.mxu0 %v916_v49  ;;  %v4920_v49 = vld [vmem:[%s6959_s2 + $0x28] sm:$0xff]  }
 0x24b   : > { %v862_v51 = vadd.f32 %v4712_v50, %v5232_v35  ;;  %v853_v52 = vpop.f32.mrb[5].mxu1  ;;  %4724 = vmatprep.subr.bf16.mxu0 %v917_v48  ;;  %v4921_v50 = vld [vmem:[%s6959_s2 + $0x30] sm:$0xff]  }
 0x24c   : > { %v854_v53 = vadd.f32 %v5232_v35, %v853_v52  ;;  %v4713_v54 = vpop.f32.mrb[6].mxu1  ;;  %v4931_v52 = vld [vmem:[%s6964_s7 + $0x40] sm:$0xff]  }
 0x24d   : > { %v865_v55 = vadd.f32 %v4713_v54, %v5232_v35  ;;  %v856_v56 = vpop.f32.mrb[7].mxu1  ;;  %v906_v58 = vmax.f32 %v862_v51, 0.0  ;;  %v4922_v51 = vld [vmem:[%s6959_s2 + $0x38] sm:$0xff]   ;;  %v4933_v54 = vld [vmem:[%s6964_s7 + $0x48] sm:$0xff]  }
 0x24e   : > { %v857_v57 = vadd.f32 %v5232_v35, %v856_v56  ;;  %4725 = vmatpush3.bf16.msra.mxu0 %v917_v48  ;;  %v904_v60 = vmax.f32 %v854_v53, 0.0  ;;  %v4919_v48 = vld [vmem:[%s6959_s2 + $0x20] sm:$0xff]  }
 0x24f   : > { %v907_v59 = vmax.f32 %v865_v55, 0.0  ;;  %v4932_v53 = vld [vmem:[%s6964_s7] sm:$0xff]  }
 0x250   : > { %v905_v61 = vmax.f32 %v857_v57, 0.0  ;;  %v5048_v57 = vmov 0  }
 0x251   : > { %v919_v62 = vpack.c.bf16 %v907_v59, %v906_v58  ;;  %v5320_v58 = vrot.slane %v5048_v57, 4  ;;  %v4937_v59 = vld [vmem:[%s6964_s7 + $0xc0] sm:$0xff]  }
 0x252   : > { %v918_v63 = vpack.c.bf16 %v905_v61, %v904_v60  ;;  %v4716_v0 = vpop.f32.mrb[8].mxu1  ;;  %v4938_v60 = vld [vmem:[%s6964_s7 + $0x80] sm:$0xff]  }
 0x253   : > { %v878_v1 = vadd.f32 %v4716_v0, %v5232_v35  ;;  %1163 = vrot.lane.b32.xlu1 %v919_v62, %s5047_s22  ;;  %v869_v2 = vpop.f32.mrb[9].mxu1  ;;  %v4935_v0 = vld [vmem:[%s6964_s7 + $0x50] sm:$0xff]  }
 0x254   : > { %v870_v3 = vadd.f32 %v5232_v35, %v869_v2  ;;  %1161 = vrot.lane.b32.xlu0 %v918_v63, %s5047_s22  ;;  %v4717_v4 = vpop.f32.mrb[10].mxu1  ;;  %4726 = vmatprep.subr.bf16.mxu0 %v918_v63  ;;  %v4945_v2 = vld [vmem:[%s6964_s7 + $0xd0] sm:$0xff]  }
 0x255   : > { %v881_v5 = vadd.f32 %v4717_v4, %v5232_v35  ;;  %v872_v6 = vpop.f32.mrb[11].mxu1  ;;  %4727 = vmatpush3.bf16.msra.mxu0 %v918_v63  ;;  %v910_v12 = vmax.f32 %v878_v1, 0.0  ;;  %v4941_v63 = vld [vmem:[%s6964_s7 + $0xc8] sm:$0xff]   ;;  %v4939_v4 = vld [vmem:[%s6964_s7 + $0x58] sm:$0xff]  }
 0x256   : > { %v873_v7 = vadd.f32 %v5232_v35, %v872_v6  ;;  %4728 = vmatprep.subr.bf16.mxu0 %v919_v62  ;;  %v908_v13 = vmax.f32 %v870_v3, 0.0  ;;  %v4942_v1 = vld [vmem:[%s6964_s7 + $0x88] sm:$0xff]   ;;  %v4936_v3 = vld [vmem:[%s6964_s7 + $0x10] sm:$0xff]   ;;  %v4949_v6 = vld [vmem:[%s6964_s7 + $0xd8] sm:$0xff]  }
 0x257   : > { %v911_v8 = vmax.f32 %v881_v5, 0.0  ;;  %v4946_v5 = vld [vmem:[%s6964_s7 + $0x90] sm:$0xff]  }
 0x258   : > { %v909_v9 = vmax.f32 %v873_v7, 0.0  ;;  %v4940_v7 = vld [vmem:[%s6964_s7 + $0x18] sm:$0xff]  }
 0x259   : > { %v921_v14 = vpack.c.bf16 %v911_v8, %v910_v12  ;;  %4729 = vmatpush3.bf16.msra.mxu0 %v919_v62  ;;  %v4934_v62 = vld [vmem:[%s6964_s7 + $0x8] sm:$0xff]   ;;  %v4943_v12 = vld [vmem:[%s6964_s7 + $0x60] sm:$0xff]   ;;  %v4950_v8 = vld [vmem:[%s6964_s7 + $0x98] sm:$0xff]  }
 0x25a   : > { %v920_v15 = vpack.c.bf16 %v909_v9, %v908_v13  ;;  %v4720_v16 = vpop.f32.mrb[12].mxu1  ;;  %v4953_v13 = vld [vmem:[%s6964_s7 + $0xe0] sm:$0xff]  }
 0x25b   : > { %v894_v17 = vadd.f32 %v4720_v16, %v5232_v35  ;;  %1167 = vrot.lane.b32.xlu1 %v921_v14, %s5047_s22  ;;  %v885_v18 = vpop.f32.mrb[13].mxu1  ;;  %v4944_v9 = vld [vmem:[%s6964_s7 + $0x20] sm:$0xff]   ;;  %v4957_v16 = vld [vmem:[%s6964_s7 + $0xe8] sm:$0xff]  }
 0x25c   : > { %v886_v10 = vadd.f32 %v5232_v35, %v885_v18  ;;  %1165 = vrot.lane.b32.xlu0 %v920_v15, %s5047_s22  ;;  %v4721_v19 = vpop.f32.mrb[14].mxu1  ;;  %4730 = vmatprep.subr.bf16.mxu0 %v920_v15  ;;  %v4951_v18 = vld [vmem:[%s6964_s7 + $0x70] sm:$0xff]  }
 0x25d   : > { %v897_v11 = vadd.f32 %v4721_v19, %v5232_v35  ;;  %v888_v21 = vpop.f32.mrb[15].mxu1  ;;  %4731 = vmatpush3.bf16.msra.mxu0 %v920_v15  ;;  %v914_v23 = vmax.f32 %v894_v17, 0.0  ;;  %v4954_v15 = vld [vmem:[%s6964_s7 + $0xa0] sm:$0xff]   ;;  %v4948_v17 = vld [vmem:[%s6964_s7 + $0x28] sm:$0xff]   ;;  %v4952_v19 = vld [vmem:[%s6964_s7 + $0x30] sm:$0xff]  }
 0x25e   : > { %v889_v22 = vadd.f32 %v5232_v35, %v888_v21  ;;  %4732 = vmatprep.subr.bf16.mxu0 %v921_v14  ;;  %v912_v25 = vmax.f32 %v886_v10, 0.0  ;;  %v4929_v35 = vld [vmem:[%s6958_s1 + $0x30] sm:$0xff]   ;;  %v4958_v10 = vld [vmem:[%s6964_s7 + $0xa8] sm:$0xff]  }
 0x25f   : > { %v915_v24 = vmax.f32 %v897_v11, 0.0  ;;  %v4956_v11 = vld [vmem:[%s6964_s7 + $0x38] sm:$0xff]  }
 0x260   : > { %v913_v26 = vmax.f32 %v889_v22, 0.0  ;;  %v4959_v22 = vld [vmem:[%s6964_s7 + $0xf0] sm:$0xff]  }
 0x261   : > { %v923_v27 = vpack.c.bf16 %v915_v24, %v914_v23  ;;  %4733 = vmatpush3.bf16.msra.mxu0 %v921_v14  ;;  %v4947_v14 = vld [vmem:[%s6964_s7 + $0x68] sm:$0xff]   ;;  %v4961_v23 = vld [vmem:[%s6964_s7 + $0xb0] sm:$0xff]   ;;  %v4960_v24 = vld [vmem:[%s6964_s7 + $0x140] sm:$0xff]  }
 0x262   : > { %v922_v28 = vpack.c.bf16 %v913_v26, %v912_v25  ;;  %v4962_v25 = vld [vmem:[%s6964_s7 + $0x100] sm:$0xff]   ;;  %v4963_v26 = vld [vmem:[%s6964_s7 + $0xf8] sm:$0xff]  }
 0x263   : > { %1171 = vrot.lane.b32.xlu1 %v923_v27, %s5047_s22 }
 0x264   : > { %1169 = vrot.lane.b32.xlu0 %v922_v28, %s5047_s22  ;;  %4734 = vmatprep.subr.bf16.mxu0 %v922_v28 }
 0x265   : > { %4735 = vmatpush3.bf16.msra.mxu0 %v922_v28  ;;  %v4964_v28 = vld [vmem:[%s6964_s7 + $0xb8] sm:$0xff]  }
 0x266   : > { %4736 = vmatprep.subr.bf16.mxu0 %v923_v27 }
 0x269   : > { %4737 = vmatpush3.bf16.msra.mxu0 %v923_v27 }
 0x26a   : > { %4327 = vmatprep.subr.bf16.mxu0 %v4931_v52 }
 0x26c   : > { %4739 = vmatmul.mubr.bf16.vlgmr.msra.gmra.mrb[16].mxu0 %v4924_v30 }
 0x26d   : > { %4742 = vmatprep.mubr.bf16.mxu0 %v4925_v31  ;;  %4328 = vmatpush3.bf16.msra.mxu0 %v4932_v53 }
 0x26e   : > { %4329 = vmatprep.subr.bf16.mxu0 %v4933_v54 }
 0x271   : > { %4330 = vmatpush3.bf16.msra.mxu0 %v4934_v62 }
 0x272   : > { %4331 = vmatprep.subr.bf16.mxu0 %v4935_v0 }
 0x274   : > { %4743 = vmatmul.mubr.bf16.gmra.mrb[20].mxu0 %v4926_v32 }
 0x275   : > { %4746 = vmatprep.mubr.bf16.mxu0 %v4927_v33  ;;  %4332 = vmatpush3.bf16.msra.mxu0 %v4936_v3 }
 0x276   : > { %4333 = vmatprep.subr.bf16.mxu0 %v4939_v4 }
 0x279   : > { %4334 = vmatpush3.bf16.msra.mxu0 %v4940_v7 }
 0x27a   : > { %4335 = vmatprep.subr.bf16.mxu0 %v4943_v12  ;;  %v4971_v12 = vld [vmem:[%s6964_s7 + $0x160] sm:$0xff]  }
 0x27c   : > { %4747 = vmatmul.mubr.bf16.gmra.mrb[24].mxu0 %v4928_v34 }
 0x27d   : > { %4750 = vmatprep.mubr.bf16.mxu0 %v4929_v35  ;;  %4336 = vmatpush3.bf16.msra.mxu0 %v4944_v9  ;;  %v4972_v9 = vld [vmem:[%s6964_s7 + $0x120] sm:$0xff]  }
 0x27e   : > { %4337 = vmatprep.subr.bf16.mxu0 %v4947_v14 }
 0x281   : > { %4338 = vmatpush3.bf16.msra.mxu0 %v4948_v17  ;;  %v4975_v17 = vld [vmem:[%s6964_s7 + $0x128] sm:$0xff]  }
 0x282   : > { %4339 = vmatprep.subr.bf16.mxu0 %v4951_v18  ;;  %v4979_v18 = vld [vmem:[%s6964_s7 + $0x170] sm:$0xff]  }
 0x284   : > { %4751 = vmatmul.mubr.bf16.gmra.mrb[28].mxu0 %v4930_v36 }
 0x285   : > { %2021 = vmatprep.mubr.bf16.mxu0 %v5320_v58  ;;  %4340 = vmatpush3.bf16.msra.mxu0 %v4952_v19  ;;  %v4985_v19 = vld [vmem:[%s6964_s7 + $0x178] sm:$0xff]  }
 0x286   : > { %4341 = vmatprep.subr.bf16.mxu0 %v4955_v20  ;;  %v4987_v20 = vld [vmem:[%s6964_s7 + $0x138] sm:$0xff]  }
 0x289   : > { %4342 = vmatpush3.bf16.msra.mxu0 %v4956_v11  ;;  %v5501_v11 = vld [vmem:[%s6964_s7 + $0x200] sm:$0xff]  }
 0x28a   : > { %4455 = vmatprep.subr.bf16.mxu0 %v4960_v24 }
 0x28c   : > { %2022 = vmatmul.mubr.bf16.vlgmr.msra.gmra.mrb[32].mxu0 %v5048_v57 }
 0x28d   : > { %4456 = vmatpush3.bf16.msra.mxu0 %v4962_v25 }
 0x2ba   : > { %v1160_v38 = vpop.permute.xlu1 %1159 }
 0x2bb   : > { %v1158_v37 = vpop.permute.xlu0 %1157 }
 0x2bc   : > { %4754 = vmatprep.subr.bf16.mxu1 %v1158_v37 }
 0x2bd   : > { %4755 = vmatpush3.bf16.msra.mxu1 %v1158_v37 }
 0x2be   : > { %4756 = vmatprep.subr.bf16.mxu1 %v1160_v38 }
 0x2c1   : > { %4757 = vmatpush3.bf16.msra.mxu1 %v1160_v38  ;;  %v4965_v38 = vld [vmem:[%s6964_s7 + $0x148] sm:$0xff]  }
 0x2c2   : > { %4457 = vmatprep.subr.bf16.mxu0 %v4965_v38 }
 0x2c5   : > { %v1164_v40 = vpop.permute.xlu1 %1163 }
 0x2c6   : > { %v1162_v39 = vpop.permute.xlu0 %1161 }
 0x2c7   : > { %4758 = vmatprep.subr.bf16.mxu1 %v1162_v39 }
 0x2c8   : > { %4759 = vmatpush3.bf16.msra.mxu1 %v1162_v39  ;;  %v4966_v39 = vld [vmem:[%s6964_s7 + $0x108] sm:$0xff]  }
 0x2c9   : > { %4760 = vmatprep.subr.bf16.mxu1 %v1164_v40  ;;  %4458 = vmatpush3.bf16.msra.mxu0 %v4966_v39 }
 0x2cc   : > { %4761 = vmatpush3.bf16.msra.mxu1 %v1164_v40 }
 0x2cd   : > { %v1168_v42 = vpop.permute.xlu1 %1167 }
 0x2ce   : > { %v1166_v41 = vpop.permute.xlu0 %1165 }
 0x2cf   : > { %4762 = vmatprep.subr.bf16.mxu1 %v1166_v41 }
 0x2d0   : > { %4763 = vmatpush3.bf16.msra.mxu1 %v1166_v41 }
 0x2d1   : > { %4764 = vmatprep.subr.bf16.mxu1 %v1168_v42 }
 0x2d4   : > { %4765 = vmatpush3.bf16.msra.mxu1 %v1168_v42 }
 0x2d5   : > { %v1172_v44 = vpop.permute.xlu1 %1171 }
 0x2d6   : > { %v1170_v43 = vpop.permute.xlu0 %1169 }
 0x2d7   : > { %4766 = vmatprep.subr.bf16.mxu1 %v1170_v43 }
 0x2d8   : > { %4767 = vmatpush3.bf16.msra.mxu1 %v1170_v43 }
 0x2d9   : > { %4768 = vmatprep.subr.bf16.mxu1 %v1172_v44 }
 0x2dc   : > { %4769 = vmatpush3.bf16.msra.mxu1 %v1172_v44 }
 0x2dd   : > { %4391 = vmatprep.subr.bf16.mxu1 %v4937_v59  ;;  %v4969_v59 = vld [vmem:[%s6964_s7 + $0x158] sm:$0xff]  }
 0x2df   : > { %4771 = vmatmul.mubr.bf16.vlgmr.msra.gmra.mrb[16].mxu1 %v4916_v45 }
 0x2e0   : > { %4774 = vmatprep.mubr.bf16.mxu1 %v4917_v46  ;;  %4392 = vmatpush3.bf16.msra.mxu1 %v4938_v60 }
 0x2e1   : > { %4393 = vmatprep.subr.bf16.mxu1 %v4941_v63  ;;  %v4970_v63 = vld [vmem:[%s6964_s7 + $0x118] sm:$0xff]  }
 0x2e4   : > { %4394 = vmatpush3.bf16.msra.mxu1 %v4942_v1 }
 0x2e5   : > { %4395 = vmatprep.subr.bf16.mxu1 %v4945_v2 }
 0x2e7   : > { %4775 = vmatmul.mubr.bf16.gmra.mrb[20].mxu1 %v4918_v47 }
 0x2e8   : > { %4778 = vmatprep.mubr.bf16.mxu1 %v4919_v48  ;;  %4396 = vmatpush3.bf16.msra.mxu1 %v4946_v5 }
 0x2e9   : > { %4397 = vmatprep.subr.bf16.mxu1 %v4949_v6 }
 0x2ec   : > { %4398 = vmatpush3.bf16.msra.mxu1 %v4950_v8 }
 0x2ed   : > { %4399 = vmatprep.subr.bf16.mxu1 %v4953_v13 }
 0x2ef   : > { %4779 = vmatmul.mubr.bf16.gmra.mrb[24].mxu1 %v4920_v49 }
 0x2f0   : > { %4782 = vmatprep.mubr.bf16.mxu1 %v4921_v50  ;;  %4400 = vmatpush3.bf16.msra.mxu1 %v4954_v15  ;;  %v4967_v50 = vld [vmem:[%s6964_s7 + $0x150] sm:$0xff]   ;;  %v4974_v15 = vld [vmem:[%s6964_s7 + $0x1c0] sm:$0xff]  }
 0x2f1   : > { %4401 = vmatprep.subr.bf16.mxu1 %v4957_v16  ;;  %4459 = vmatprep.subr.bf16.mxu0 %v4967_v50  ;;  %v4973_v16 = vld [vmem:[%s6964_s7 + $0x168] sm:$0xff]  }
 0x2f4   : > { %4402 = vmatpush3.bf16.msra.mxu1 %v4958_v10  ;;  %v4981_v10 = vld [vmem:[%s6964_s7 + $0x130] sm:$0xff]  }
 0x2f5   : > { %4403 = vmatprep.subr.bf16.mxu1 %v4959_v22 }
 0x2f7   : > { %4783 = vmatmul.mubr.bf16.gmra.mrb[28].mxu1 %v4922_v51  ;;  %v4968_v51 = vld [vmem:[%s6964_s7 + $0x110] sm:$0xff]  }
 0x2f8   : > { %4404 = vmatpush3.bf16.msra.mxu1 %v4961_v23  ;;  %4460 = vmatpush3.bf16.msra.mxu0 %v4968_v51 }
 0x2f9   : > { %4405 = vmatprep.subr.bf16.mxu1 %v4963_v26  ;;  %4461 = vmatprep.subr.bf16.mxu0 %v4969_v59 }
 0x2fc   : > { %4406 = vmatpush3.bf16.msra.mxu1 %v4964_v28  ;;  %4462 = vmatpush3.bf16.msra.mxu0 %v4970_v63 }
 0x2fd   : > { %4463 = vmatprep.subr.bf16.mxu0 %v4971_v12  ;;  %4519 = vmatprep.subr.bf16.mxu1 %v4974_v15 }
 0x300   : > { %4464 = vmatpush3.bf16.msra.mxu0 %v4972_v9 }
 0x301   : > { %4465 = vmatprep.subr.bf16.mxu0 %v4973_v16 }
 0x304   : > { %4466 = vmatpush3.bf16.msra.mxu0 %v4975_v17 }
 0x305   : > { %4467 = vmatprep.subr.bf16.mxu0 %v4979_v18 }
 0x308   : > { %4468 = vmatpush3.bf16.msra.mxu0 %v4981_v10 }
 0x309   : > { %4469 = vmatprep.subr.bf16.mxu0 %v4985_v19  ;;  %v4988_v19 = vld [vmem:[%s6964_s7 + $0x1a0] sm:$0xff]  }
 0x30c   : > { %4470 = vmatpush3.bf16.msra.mxu0 %v4987_v20 }
 0x30d   : > { %4786 = vmatprep.subr.bf16.mxu0 %v5501_v11 }
 0x33f   : > { %v5315_v55 = vpop.f32.mrb[16].mxu0 }
 0x340   : > { %v5317_v56 = vpop.f32.mrb[17].mxu0 }
 0x341   : > { %v5328_v61 = vpop.f32.mrb[18].mxu0 }
 0x342   : > { %v5401_v21 = vpop.f32.mrb[19].mxu0 }
 0x347   : > { %v5418_v27 = vpop.f32.mrb[20].mxu0 }
 0x348   : > { %v5423_v29 = vpop.f32.mrb[21].mxu0 }
 0x349   : > { %v5425_v32 = vpop.f32.mrb[22].mxu0 }
 0x34a   : > { %v5427_v34 = vpop.f32.mrb[23].mxu0 }
 0x34f   : > { %v5435_v40 = vpop.f32.mrb[24].mxu0 }
 0x350   : > { %v5438_v41 = vpop.f32.mrb[25].mxu0 }
 0x351   : > { %v5441_v44 = vpop.f32.mrb[26].mxu0 }
 0x352   : > { %v5443_v46 = vpop.f32.mrb[27].mxu0 }
 0x357   : > { %v5459_v0 = vpop.f32.mrb[28].mxu0 }
 0x358   : > { %v5461_v2 = vpop.f32.mrb[29].mxu0 }
 0x359   : > { %v5464_v3 = vpop.f32.mrb[30].mxu0 }
 0x35a   : > { %v5467_v4 = vpop.f32.mrb[31].mxu0 }
 0x3b2   : > { %v4772_v30 = vpop.f32.mrb[16].mxu1 }
 0x3b3   : > { %v1215_v31 = vpop.f32.mrb[17].mxu1 }
 0x3b4   : > { %v4773_v33 = vpop.f32.mrb[18].mxu1 }
 0x3b5   : > { %v4864_v35 = vpack.i.bf16 %v4773_v33, %v4772_v30  ;;  %v1218_v36 = vpop.f32.mrb[19].mxu1 }
 0x3b6   : > { %v4859_v37 = vpack.i.bf16 %v1218_v36, %v1215_v31 }
 0x3b7   : > { %4865 = vrot.lane.b32.xlu1 %v4864_v35, %s5047_s22 }
 0x3b8   : > { %4860 = vrot.lane.b32.xlu0 %v4859_v37, %s5047_s22 }
 0x3ba   : > { %v4776_v42 = vpop.f32.mrb[20].mxu1 }
 0x3bb   : > { %v1231_v43 = vpop.f32.mrb[21].mxu1 }
 0x3bc   : > { %v4777_v45 = vpop.f32.mrb[22].mxu1 }
 0x3bd   : > { %v4874_v47 = vpack.i.bf16 %v4777_v45, %v4776_v42  ;;  %v1234_v48 = vpop.f32.mrb[23].mxu1 }
 0x3be   : > { %v4869_v49 = vpack.i.bf16 %v1234_v48, %v1231_v43  ;;  %v4977_v48 = vld [vmem:[%s6964_s7 + $0x1c8] sm:$0xff]  }
 0x3bf   : > { %4875 = vrot.lane.b32.xlu1 %v4874_v47, %s5047_s22 }
 0x3c0   : > { %4870 = vrot.lane.b32.xlu0 %v4869_v49, %s5047_s22 }
 0x3c2   : > { %v4780_v52 = vpop.f32.mrb[24].mxu1 }
 0x3c3   : > { %v1247_v53 = vpop.f32.mrb[25].mxu1 }
 0x3c4   : > { %v4781_v54 = vpop.f32.mrb[26].mxu1 }
 0x3c5   : > { %v4884_v60 = vpack.i.bf16 %v4781_v54, %v4780_v52  ;;  %v1250_v62 = vpop.f32.mrb[27].mxu1 }
 0x3c6   : > { %v4879_v1 = vpack.i.bf16 %v1250_v62, %v1247_v53 }
 0x3c7   : > { %4885 = vrot.lane.b32.xlu1 %v4884_v60, %s5047_s22 }
 0x3c8   : > { %4880 = vrot.lane.b32.xlu0 %v4879_v1, %s5047_s22  ;;  %v4982_v1 = vld [vmem:[%s6964_s7 + $0x190] sm:$0xff]  }
 0x3ca   : > { %v4784_v5 = vpop.f32.mrb[28].mxu1 }
 0x3cb   : > { %v1263_v6 = vpop.f32.mrb[29].mxu1 }
 0x3cc   : > { %v4785_v7 = vpop.f32.mrb[30].mxu1 }
 0x3cd   : > { %v4894_v8 = vpack.i.bf16 %v4785_v7, %v4784_v5  ;;  %v1266_v13 = vpop.f32.mrb[31].mxu1  ;;  %v4983_v7 = vld [vmem:[%s6964_s7 + $0x1d8] sm:$0xff]  }
 0x3ce   : > { %v4889_v14 = vpack.i.bf16 %v1266_v13, %v1263_v6 }
 0x3cf   : > { %4895 = vrot.lane.b32.xlu1 %v4894_v8, %s5047_s22 }
 0x3d0   : > { %4890 = vrot.lane.b32.xlu0 %v4889_v14, %s5047_s22 }
 0x3d4   : > { %2540 = vrot.lane.b32.xlu0 %v5320_v58, %s5049_s15 }
 0x3d8   : > { %2554 = vrot.lane.b32.xlu0 %v5048_v57, %s5050_s16 }
 0x3dc   : > { %2570 = vrot.lane.b32.xlu0 %v5320_v58, %s5051_s17 }
 0x3e0   : > { %2586 = vrot.lane.b32.xlu0 %v5048_v57, %s5047_s22 }
 0x429   : > { %v4866_v22 = vpop.permute.xlu1 %4865 }
 0x42a   : > { %v4868_v23 = vunpack.i.h.bf16 %v4866_v22  ;;  %v4867_v24 = vunpack.i.l.bf16 %v4866_v22  ;;  %v4861_v25 = vpop.permute.xlu0 %4860 }
 0x42b   : > { %v4863_v26 = vunpack.i.h.bf16 %v4861_v25  ;;  %v4862_v28 = vunpack.i.l.bf16 %v4861_v25 }
 0x42c   : > { %v1346_v30 = vsel %vm1342_vm4, %v5328_v61, %v4868_v23  ;;  %v1345_v31 = vsel %vm1342_vm4, %v5315_v55, %v4867_v24  ;;  %v4989_v23 = vld [vmem:[%s6964_s7 + $0x1e8] sm:$0xff]  }
 0x42d   : > { %v5508_v33 = vpack.c.bf16 %v1346_v30, %v1345_v31  ;;  %v1344_v35 = vsel %vm1342_vm4, %v5401_v21, %v4863_v26  ;;  %v1343_v36 = vsel %vm1342_vm4, %v5317_v56, %v4862_v28  ;;  %v4976_v21 = vld [vmem:[%s6964_s7 + $0x180] sm:$0xff]  }
 0x42e   : > { %v5514_v37 = vpack.c.bf16 %v1344_v35, %v1343_v36  ;;  %v4343_v35 = vpop.f32.mrb[32].mxu0 }
 0x42f   : > { %v1380_v39 = vrot.slane %v5508_v33, 4 }
 0x430   : > { %v1378_v38 = vrot.slane %v5514_v37, 4 }
 0x431   : > { %v4876_v42 = vpop.permute.xlu1 %4875 }
 0x432   : > { %v4871_v61 = vpop.permute.xlu0 %4870  ;;  %v1379_v55 = vsel %vm1375_vm5, %v5320_v58, %v1378_v38  ;;  %v4878_v43 = vunpack.i.h.bf16 %v4876_v42  ;;  %v4877_v45 = vunpack.i.l.bf16 %v4876_v42  ;;  %v5529_v49 = vsel %vm1375_vm5, %v1378_v38, %v1380_v39  ;;  %v4991_v38 = vld [vmem:[%s6964_s7 + $0x1f0] sm:$0xff]  }
 0x433   : > { %v4873_v47 = vunpack.i.h.bf16 %v4871_v61  ;;  %v4872_v56 = vunpack.i.l.bf16 %v4871_v61  ;;  %2029 = vmatprep.mubr.bf16.mxu0 %v1379_v55  ;;  %2118 = vmatprep.mubr.bf16.mxu1 %v1379_v55  ;;  %v4993_v55 = vld [vmem:[%s6964_s7 + $0x1b0] sm:$0xff]  }
 0x434   : > { %2030 = vmatmul.mubr.bf16.gmra.mrb[36].mxu0 %v5048_v57  ;;  %2119 = vmatmul.mubr.bf16.vlgmr.msra.gmra.mrb[32].mxu1 %v5048_v57  ;;  %v1350_v50 = vsel %vm1342_vm4, %v5425_v32, %v4878_v43  ;;  %v1349_v51 = vsel %vm1342_vm4, %v5418_v27, %v4877_v45  ;;  %v4978_v32 = vld [vmem:[%s6964_s7 + $0x188] sm:$0xff]   ;;  %v4980_v27 = vld [vmem:[%s6964_s7 + $0x1d0] sm:$0xff]   ;;  %v4994_v43 = vld [vmem:[%s6964_s7 + $0x1f8] sm:$0xff]  }
 0x435   : > { %v1347_v52 = vsel %vm1342_vm4, %v5423_v29, %v4872_v56  ;;  %v1348_v53 = vsel %vm1342_vm4, %v5427_v34, %v4873_v47  ;;  %2037 = vmatprep.mubr.bf16.mxu0 %v5529_v49  ;;  %2126 = vmatprep.mubr.bf16.mxu1 %v5529_v49  ;;  %v5541_v54 = vpack.c.bf16 %v1350_v50, %v1349_v51 }
 0x436   : > { %v5543_v59 = vpack.c.bf16 %v1348_v53, %v1347_v52  ;;  %4520 = vmatpush3.bf16.msra.mxu1 %v4976_v21  ;;  %v4995_v21 = vld [vmem:[%s6964_s7 + $0x1b8] sm:$0xff]   ;;  %v4996_v53 = vld [vmem:[%s6964_s7 + $0x208] sm:$0xff]  }
 0x437   : > { %4521 = vmatprep.subr.bf16.mxu1 %v4977_v48 }
 0x438   : > { %v1382_v29 = vrot.slane %v5543_v59, 4 }
 0x439   : > { %v4886_v34 = vpop.permute.xlu1 %4885 }
 0x43a   : > { %v4881_v60 = vpop.permute.xlu0 %4880  ;;  %v4888_v62 = vunpack.i.h.bf16 %v4886_v34  ;;  %v4887_v63 = vunpack.i.l.bf16 %v4886_v34  ;;  %4522 = vmatpush3.bf16.msra.mxu1 %v4978_v32  ;;  %v5561_v12 = vsel %vm1375_vm5, %v1380_v39, %v1382_v29  ;;  %v4997_v32 = vld [vmem:[%s6964_s7 + $0x210] sm:$0xff]  }
 0x43b   : > { %v4883_v5 = vunpack.i.h.bf16 %v4881_v60  ;;  %v4882_v6 = vunpack.i.l.bf16 %v4881_v60  ;;  %4523 = vmatprep.subr.bf16.mxu1 %v4980_v27  ;;  %v5002_v27 = vld [vmem:[%s6964_s7 + $0x238] sm:$0xff]  }
 0x43c   : > { %2038 = vmatmul.mubr.bf16.gmra.mrb[40].mxu0 %v5514_v37  ;;  %2127 = vmatmul.mubr.bf16.gmra.mrb[36].mxu1 %v5514_v37  ;;  %v1354_v8 = vsel %vm1342_vm4, %v5441_v44, %v4888_v62  ;;  %v1353_v13 = vsel %vm1342_vm4, %v5435_v40, %v4887_v63  ;;  %v4984_v44 = vld [vmem:[%s6964_s7 + $0x198] sm:$0xff]   ;;  %v4986_v40 = vld [vmem:[%s6964_s7 + $0x1e0] sm:$0xff]  }
 0x43d   : > { %v1351_v9 = vsel %vm1342_vm4, %v5438_v41, %v4882_v6  ;;  %v1352_v14 = vsel %vm1342_vm4, %v5443_v46, %v4883_v5  ;;  %2045 = vmatprep.mubr.bf16.mxu0 %v5561_v12  ;;  %2134 = vmatprep.mubr.bf16.mxu1 %v5561_v12  ;;  %v5573_v15 = vpack.c.bf16 %v1354_v8, %v1353_v13  ;;  %v1384_v41 = vrot.slane %v5541_v54, 4 }
 0x43e   : > { %v5575_v16 = vpack.c.bf16 %v1352_v14, %v1351_v9  ;;  %4524 = vmatpush3.bf16.msra.mxu1 %v4982_v1 }
 0x43f   : > { %4525 = vmatprep.subr.bf16.mxu1 %v4983_v7  ;;  %v5593_v24 = vsel %vm1375_vm5, %v1382_v29, %v1384_v41  ;;  %v1388_v47 = vrot.slane %v5573_v15, 4 }
 0x441   : > { %v4896_v46 = vpop.permute.xlu1 %4895 }
 0x442   : > { %v4891_v17 = vpop.permute.xlu0 %4890  ;;  %v4898_v18 = vunpack.i.h.bf16 %v4896_v46  ;;  %v4897_v10 = vunpack.i.l.bf16 %v4896_v46  ;;  %4526 = vmatpush3.bf16.msra.mxu1 %v4984_v44 }
 0x443   : > { %v4893_v20 = vunpack.i.h.bf16 %v4891_v17  ;;  %v4892_v22 = vunpack.i.l.bf16 %v4891_v17  ;;  %4527 = vmatprep.subr.bf16.mxu1 %v4986_v40 }
 0x444   : > { %2046 = vmatmul.mubr.bf16.gmra.mrb[44].mxu0 %v5508_v33  ;;  %2135 = vmatmul.mubr.bf16.gmra.mrb[40].mxu1 %v5508_v33  ;;  %v1358_v25 = vsel %vm1342_vm4, %v5464_v3, %v4898_v18  ;;  %v1357_v26 = vsel %vm1342_vm4, %v5459_v0, %v4897_v10  ;;  %v4990_v0 = vld [vmem:[%s6964_s7 + $0x1a8] sm:$0xff]   ;;  %v4344_v3 = vpop.f32.mrb[33].mxu0 }
 0x445   : > { %2053 = vmatprep.mubr.bf16.mxu0 %v5593_v24  ;;  %2142 = vmatprep.mubr.bf16.mxu1 %v5593_v24  ;;  %v1355_v28 = vsel %vm1342_vm4, %v5461_v2, %v4892_v22  ;;  %v1356_v30 = vsel %vm1342_vm4, %v5467_v4, %v4893_v20  ;;  %v5605_v31 = vpack.c.bf16 %v1358_v25, %v1357_v26  ;;  %v4346_v39 = vpop.f32.mrb[34].mxu0  ;;  %v1386_v4 = vrot.slane %v5575_v16, 4 }
 0x446   : > { %v5607_v36 = vpack.c.bf16 %v1356_v30, %v1355_v28  ;;  %4528 = vmatpush3.bf16.msra.mxu1 %v4988_v19  ;;  %v5615_v2 = vadd.f32 %v4344_v3, %v4343_v35  ;;  %v4347_v42 = vpop.f32.mrb[35].mxu0 }
 0x447   : > { %4529 = vmatprep.subr.bf16.mxu1 %v4989_v23  ;;  %v5618_v61 = vadd.f32 %v4347_v42, %v4346_v39  ;;  %v1387_v45 = vsel %vm1375_vm5, %v1384_v41, %v1386_v4  ;;  %v1389_v56 = vsel %vm1375_vm5, %v1386_v4, %v1388_v47  ;;  %v1401_v51 = vrot.slane %v5605_v31, 4 }
 0x448   : > { %v1390_v48 = vrot.slane %v5607_v36, 4 }
 0x449   : > { %v1404_v29 = vsel %vm1375_vm5, %v1401_v51, %v5320_v58 }
 0x44a   : > { %4530 = vmatpush3.bf16.msra.mxu1 %v4990_v0  ;;  %v1391_v50 = vsel %vm1375_vm5, %v1388_v47, %v1390_v48  ;;  %v1402_v52 = vsel %vm1375_vm5, %v1390_v48, %v1401_v51 }
 0x44b   : > { %4531 = vmatprep.subr.bf16.mxu1 %v4991_v38 }
 0x44c   : > { %2054 = vmatmul.mubr.bf16.gmra.mrb[48].mxu0 %v5543_v59  ;;  %2143 = vmatmul.mubr.bf16.gmra.mrb[44].mxu1 %v5543_v59 }
 0x44d   : > { %2061 = vmatprep.mubr.bf16.mxu0 %v1387_v45  ;;  %2150 = vmatprep.mubr.bf16.mxu1 %v1387_v45 }
 0x44e   : > { %4532 = vmatpush3.bf16.msra.mxu1 %v4993_v55 }
 0x44f   : > { %4533 = vmatprep.subr.bf16.mxu1 %v4994_v43 }
 0x452   : > { %4534 = vmatpush3.bf16.msra.mxu1 %v4995_v21 }
 0x453   : > { %3003 = vmatprep.subr.bf16.mxu1 %v5048_v57 }
 0x454   : > { %2062 = vmatmul.mubr.bf16.gmra.mrb[52].mxu0 %v5541_v54  ;;  %2151 = vmatmul.mubr.bf16.gmra.mrb[48].mxu1 %v5541_v54 }
 0x455   : > { %2069 = vmatprep.mubr.bf16.mxu0 %v1389_v56  ;;  %2158 = vmatprep.mubr.bf16.mxu1 %v1389_v56 }
 0x45c   : > { %2070 = vmatmul.mubr.bf16.gmra.mrb[56].mxu0 %v5575_v16  ;;  %2159 = vmatmul.mubr.bf16.gmra.mrb[52].mxu1 %v5575_v16 }
 0x45d   : > { %2077 = vmatprep.mubr.bf16.mxu0 %v1391_v50  ;;  %2166 = vmatprep.mubr.bf16.mxu1 %v1391_v50 }
 0x464   : > { %2078 = vmatmul.mubr.bf16.gmra.mrb[60].mxu0 %v5573_v15  ;;  %2167 = vmatmul.mubr.bf16.gmra.mrb[56].mxu1 %v5573_v15 }
 0x465   : > { %2174 = vmatprep.mubr.bf16.mxu1 %v1402_v52  ;;  %2215 = vmatprep.mubr.bf16.mxu0 %v5529_v49  ;;  %v4998_v49 = vld [vmem:[%s6964_s7 + $0x218] sm:$0xff]  }
 0x46c   : > { %2175 = vmatmul.mubr.bf16.gmra.mrb[60].mxu1 %v5607_v36  ;;  %2216 = vmatmul.mubr.bf16.vlgmr.msra.gmra.mrb[64].mxu0 %v5514_v37  ;;  %v5000_v37 = vld [vmem:[%s6964_s7 + $0x228] sm:$0xff]  }
 0x46d   : > { %2223 = vmatprep.mubr.bf16.mxu0 %v5561_v12  ;;  %2312 = vmatprep.mubr.bf16.mxu1 %v5561_v12 }
 0x46e   : > { %4787 = vmatpush3.bf16.msra.mxu0 %v5501_v11  ;;  %v4999_v11 = vld [vmem:[%s6964_s7 + $0x220] sm:$0xff]  }
 0x46f   : > { %4788 = vmatprep.subr.bf16.mxu0 %v4996_v53 }
 0x472   : > { %4789 = vmatpush3.bf16.msra.mxu0 %v4996_v53 }
 0x473   : > { %4790 = vmatprep.subr.bf16.mxu0 %v4997_v32 }
 0x474   : > { %2224 = vmatmul.mubr.bf16.gmra.mrb[68].mxu0 %v5508_v33  ;;  %2313 = vmatmul.mubr.bf16.vlgmr.msra.gmra.mrb[64].mxu1 %v5508_v33  ;;  %v5001_v33 = vld [vmem:[%s6964_s7 + $0x230] sm:$0xff]  }
 0x475   : > { %2231 = vmatprep.mubr.bf16.mxu0 %v5593_v24  ;;  %2320 = vmatprep.mubr.bf16.mxu1 %v5593_v24 }
 0x476   : > { %4791 = vmatpush3.bf16.msra.mxu0 %v4997_v32 }
 0x477   : > { %4792 = vmatprep.subr.bf16.mxu0 %v4998_v49 }
 0x47a   : > { %4793 = vmatpush3.bf16.msra.mxu0 %v4998_v49 }
 0x47b   : > { %4794 = vmatprep.subr.bf16.mxu0 %v4999_v11 }
 0x47c   : > { %2232 = vmatmul.mubr.bf16.gmra.mrb[72].mxu0 %v5543_v59  ;;  %2321 = vmatmul.mubr.bf16.gmra.mrb[68].mxu1 %v5543_v59 }
 0x47d   : > { %2239 = vmatprep.mubr.bf16.mxu0 %v1387_v45  ;;  %2328 = vmatprep.mubr.bf16.mxu1 %v1387_v45 }
 0x47e   : > { %4795 = vmatpush3.bf16.msra.mxu0 %v4999_v11 }
 0x47f   : > { %4796 = vmatprep.subr.bf16.mxu0 %v5000_v37 }
 0x482   : > { %4797 = vmatpush3.bf16.msra.mxu0 %v5000_v37 }
 0x483   : > { %4798 = vmatprep.subr.bf16.mxu0 %v5001_v33 }
 0x484   : > { %2240 = vmatmul.mubr.bf16.gmra.mrb[76].mxu0 %v5541_v54  ;;  %2329 = vmatmul.mubr.bf16.gmra.mrb[72].mxu1 %v5541_v54 }
 0x485   : > { %2247 = vmatprep.mubr.bf16.mxu0 %v1389_v56  ;;  %2336 = vmatprep.mubr.bf16.mxu1 %v1389_v56 }
 0x486   : > { %4799 = vmatpush3.bf16.msra.mxu0 %v5001_v33 }
 0x487   : > { %4800 = vmatprep.subr.bf16.mxu0 %v5002_v27 }
 0x48a   : > { %4801 = vmatpush3.bf16.msra.mxu0 %v5002_v27 }
 0x48c   : > { %2248 = vmatmul.mubr.bf16.gmra.mrb[80].mxu0 %v5575_v16  ;;  %2337 = vmatmul.mubr.bf16.gmra.mrb[76].mxu1 %v5575_v16 }
 0x48d   : > { %2255 = vmatprep.mubr.bf16.mxu0 %v1391_v50  ;;  %2344 = vmatprep.mubr.bf16.mxu1 %v1391_v50 }
 0x494   : > { %2256 = vmatmul.mubr.bf16.gmra.mrb[84].mxu0 %v5573_v15  ;;  %2345 = vmatmul.mubr.bf16.gmra.mrb[80].mxu1 %v5573_v15 }
 0x495   : > { %2263 = vmatprep.mubr.bf16.mxu0 %v1402_v52  ;;  %2352 = vmatprep.mubr.bf16.mxu1 %v1402_v52 }
 0x49c   : > { %2264 = vmatmul.mubr.bf16.gmra.mrb[88].mxu0 %v5607_v36  ;;  %2353 = vmatmul.mubr.bf16.gmra.mrb[84].mxu1 %v5607_v36 }
 0x49d   : > { %2271 = vmatprep.mubr.bf16.mxu0 %v1404_v29  ;;  %2360 = vmatprep.mubr.bf16.mxu1 %v1404_v29 }
 0x4a4   : > { %2272 = vmatmul.mubr.bf16.gmra.mrb[92].mxu0 %v5605_v31  ;;  %2361 = vmatmul.mubr.bf16.gmra.mrb[88].mxu1 %v5605_v31 }
 0x4a5   : > { %4802 = vmatprep.mubr.bf16.mxu0 %v5543_v59  ;;  %2368 = vmatprep.mubr.bf16.mxu1 %v5320_v58 }
 0x4ac   : > { %2369 = vmatmul.mubr.bf16.gmra.mrb[92].mxu1 %v5048_v57  ;;  %4803 = vmatmul.mubr.bf16.vlgmr.msra.gmra.mrb[96].mxu0 %v5541_v54  ;;  %v5709_v54 = vld [vmem:[%s6965_s8] ss:$0 sm:$0xff] }
 0x4ad   : > { %4806 = vmatprep.mubr.bf16.mxu0 %v5575_v16  ;;  %v2024_v63 = vadd.f32 %v5615_v2, %v5709_v54  ;;  %v2027_v13 = vadd.f32 %v5618_v61, %v5709_v54 }
 0x4b4   : > { %4807 = vmatmul.mubr.bf16.gmra.mrb[100].mxu0 %v5573_v15 }
 0x4b5   : > { %4810 = vmatprep.mubr.bf16.mxu0 %v5607_v36 }
 0x4bc   : > { %4811 = vmatmul.mubr.bf16.gmra.mrb[104].mxu0 %v5605_v31 }
 0x4bd   : > { %4814 = vmatprep.mubr.bf16.mxu0 %v5048_v57 }
 0x4c4   : > { %4815 = vmatmul.mubr.bf16.gmra.mrb[108].mxu0 %v5048_v57 }
 0x507   : > { %v4349_v59 = vpop.f32.mrb[36].mxu0  ;;  %v4407_v34 = vpop.f32.mrb[32].mxu1 }
 0x508   : > { %v4350_v60 = vpop.f32.mrb[37].mxu0  ;;  %v4408_v62 = vpop.f32.mrb[33].mxu1 }
 0x509   : > { %v4351_v1 = vadd.f32 %v4350_v60, %v4349_v59  ;;  %v4409_v5 = vadd.f32 %v4408_v62, %v4407_v34  ;;  %v4352_v6 = vpop.f32.mrb[38].mxu0  ;;  %v4410_v7 = vpop.f32.mrb[34].mxu1 }
 0x50a   : > { %v4353_v12 = vpop.f32.mrb[39].mxu0  ;;  %v4411_v8 = vpop.f32.mrb[35].mxu1 }
 0x50b   : > { %v5717_v9 = vadd.f32 %v4409_v5, %v2024_v63  ;;  %v4354_v14 = vadd.f32 %v4353_v12, %v4352_v6  ;;  %v4412_v15 = vadd.f32 %v4411_v8, %v4410_v7  ;;  %v2032_v17 = vadd.f32 %v4351_v1, %v5709_v54 }
 0x50d   : > { %v5719_v16 = vadd.f32 %v4412_v15, %v2027_v13  ;;  %v2035_v24 = vadd.f32 %v4354_v14, %v5709_v54 }
 0x50f   : > { %v4355_v44 = vpop.f32.mrb[40].mxu0  ;;  %v4413_v40 = vpop.f32.mrb[36].mxu1 }
 0x510   : > { %v4356_v41 = vpop.f32.mrb[41].mxu0  ;;  %v4414_v46 = vpop.f32.mrb[37].mxu1 }
 0x511   : > { %v4357_v18 = vadd.f32 %v4356_v41, %v4355_v44  ;;  %v4415_v10 = vadd.f32 %v4414_v46, %v4413_v40  ;;  %v4358_v19 = vpop.f32.mrb[42].mxu0  ;;  %v4416_v20 = vpop.f32.mrb[38].mxu1 }
 0x512   : > { %v4359_v22 = vpop.f32.mrb[43].mxu0  ;;  %v4417_v23 = vpop.f32.mrb[39].mxu1 }
 0x513   : > { %v5723_v25 = vadd.f32 %v4415_v10, %v2032_v17  ;;  %v4360_v26 = vadd.f32 %v4359_v22, %v4358_v19  ;;  %v4418_v28 = vadd.f32 %v4417_v23, %v4416_v20  ;;  %v2040_v3 = vadd.f32 %v4357_v18, %v5709_v54 }
 0x515   : > { %v5725_v30 = vadd.f32 %v4418_v28, %v2035_v24  ;;  %v2043_v55 = vadd.f32 %v4360_v26, %v5709_v54 }
 0x517   : > { %v4361_v31 = vpop.f32.mrb[44].mxu0  ;;  %v4419_v35 = vpop.f32.mrb[40].mxu1 }
 0x518   : > { %v4362_v36 = vpop.f32.mrb[45].mxu0  ;;  %v4420_v0 = vpop.f32.mrb[41].mxu1 }
 0x519   : > { %v4363_v38 = vadd.f32 %v4362_v36, %v4361_v31  ;;  %v4421_v2 = vadd.f32 %v4420_v0, %v4419_v35  ;;  %v4364_v39 = vpop.f32.mrb[46].mxu0  ;;  %v4422_v4 = vpop.f32.mrb[42].mxu1 }
 0x51a   : > { %v4365_v42 = vpop.f32.mrb[47].mxu0  ;;  %v4423_v61 = vpop.f32.mrb[43].mxu1 }
 0x51b   : > { %v5729_v43 = vadd.f32 %v4421_v2, %v2040_v3  ;;  %v4366_v45 = vadd.f32 %v4365_v42, %v4364_v39  ;;  %v4424_v21 = vadd.f32 %v4423_v61, %v4422_v4  ;;  %v2048_v52 = vadd.f32 %v4363_v38, %v5709_v54 }
 0x51d   : > { %v5731_v47 = vadd.f32 %v4424_v21, %v2043_v55  ;;  %v2051_v27 = vadd.f32 %v4366_v45, %v5709_v54 }
 0x51f   : > { %v4367_v56 = vpop.f32.mrb[48].mxu0  ;;  %v4425_v48 = vpop.f32.mrb[44].mxu1 }
 0x520   : > { %v4368_v50 = vpop.f32.mrb[49].mxu0  ;;  %v4426_v51 = vpop.f32.mrb[45].mxu1 }
 0x521   : > { %v4369_v53 = vadd.f32 %v4368_v50, %v4367_v56  ;;  %v4427_v32 = vadd.f32 %v4426_v51, %v4425_v48  ;;  %v4370_v49 = vpop.f32.mrb[50].mxu0  ;;  %v4428_v11 = vpop.f32.mrb[46].mxu1 }
 0x522   : > { %v4371_v37 = vpop.f32.mrb[51].mxu0  ;;  %v4429_v33 = vpop.f32.mrb[47].mxu1 }
 0x523   : > { %v5735_v29 = vadd.f32 %v4427_v32, %v2048_v52  ;;  %v4372_v59 = vadd.f32 %v4371_v37, %v4370_v49  ;;  %v4430_v34 = vadd.f32 %v4429_v33, %v4428_v11  ;;  %v2056_v6 = vadd.f32 %v4369_v53, %v5709_v54 }
 0x525   : > { %v5737_v60 = vadd.f32 %v4430_v34, %v2051_v27  ;;  %v2059_v44 = vadd.f32 %v4372_v59, %v5709_v54 }
 0x527   : > { %v4373_v62 = vpop.f32.mrb[52].mxu0  ;;  %v4431_v63 = vpop.f32.mrb[48].mxu1 }
 0x528   : > { %v4374_v1 = vpop.f32.mrb[53].mxu0  ;;  %v4432_v5 = vpop.f32.mrb[49].mxu1 }
 0x529   : > { %v4375_v7 = vadd.f32 %v4374_v1, %v4373_v62  ;;  %v4433_v12 = vadd.f32 %v4432_v5, %v4431_v63  ;;  %v4376_v8 = vpop.f32.mrb[54].mxu0  ;;  %v4434_v13 = vpop.f32.mrb[50].mxu1 }
 0x52a   : > { %v4377_v14 = vpop.f32.mrb[55].mxu0  ;;  %v4435_v15 = vpop.f32.mrb[51].mxu1 }
 0x52b   : > { %v5741_v40 = vadd.f32 %v4433_v12, %v2056_v6  ;;  %v4378_v41 = vadd.f32 %v4377_v14, %v4376_v8  ;;  %v4436_v46 = vadd.f32 %v4435_v15, %v4434_v13  ;;  %v2064_v22 = vadd.f32 %v4375_v7, %v5709_v54 }
 0x52d   : > { %v5743_v17 = vadd.f32 %v4436_v46, %v2059_v44  ;;  %v2067_v36 = vadd.f32 %v4378_v41, %v5709_v54 }
 0x52f   : > { %v4379_v18 = vpop.f32.mrb[56].mxu0  ;;  %v4437_v10 = vpop.f32.mrb[52].mxu1 }
 0x530   : > { %v4380_v19 = vpop.f32.mrb[57].mxu0  ;;  %v4438_v20 = vpop.f32.mrb[53].mxu1 }
 0x531   : > { %v4381_v23 = vadd.f32 %v4380_v19, %v4379_v18  ;;  %v4439_v24 = vadd.f32 %v4438_v20, %v4437_v10  ;;  %v4382_v26 = vpop.f32.mrb[58].mxu0  ;;  %v4440_v28 = vpop.f32.mrb[54].mxu1 }
 0x532   : > { %v4383_v31 = vpop.f32.mrb[59].mxu0  ;;  %v4441_v35 = vpop.f32.mrb[55].mxu1 }
 0x533   : > { %v5747_v0 = vadd.f32 %v4439_v24, %v2064_v22  ;;  %v4384_v3 = vadd.f32 %v4383_v31, %v4382_v26  ;;  %v4442_v38 = vadd.f32 %v4441_v35, %v4440_v28  ;;  %v2072_v55 = vadd.f32 %v4381_v23, %v5709_v54 }
 0x535   : > { %v5749_v2 = vadd.f32 %v4442_v38, %v2067_v36  ;;  %v2075_v52 = vadd.f32 %v4384_v3, %v5709_v54 }
 0x537   : > { %v4385_v39 = vpop.f32.mrb[60].mxu0  ;;  %v4443_v4 = vpop.f32.mrb[56].mxu1 }
 0x538   : > { %v4386_v42 = vpop.f32.mrb[61].mxu0  ;;  %v4444_v61 = vpop.f32.mrb[57].mxu1 }
 0x539   : > { %v4387_v45 = vadd.f32 %v4386_v42, %v4385_v39  ;;  %v4445_v21 = vadd.f32 %v4444_v61, %v4443_v4  ;;  %v4388_v56 = vpop.f32.mrb[62].mxu0  ;;  %v4446_v48 = vpop.f32.mrb[58].mxu1 }
 0x53a   : > { %v4389_v50 = vpop.f32.mrb[63].mxu0  ;;  %v4447_v51 = vpop.f32.mrb[59].mxu1 }
 0x53b   : > { %v5753_v53 = vadd.f32 %v4445_v21, %v2072_v55  ;;  %v4390_v32 = vadd.f32 %v4389_v50, %v4388_v56  ;;  %v4448_v49 = vadd.f32 %v4447_v51, %v4446_v48  ;;  %v2080_v34 = vadd.f32 %v4387_v45, %v5709_v54 }
 0x53d   : > { %v5755_v11 = vadd.f32 %v4448_v49, %v2075_v52  ;;  %v2083_v6 = vadd.f32 %v4390_v32, %v5709_v54 }
 0x53f   : > { %v4449_v37 = vpop.f32.mrb[60].mxu1  ;;  %v4471_v33 = vpop.f32.mrb[64].mxu0 }
 0x540   : > { %v4450_v27 = vpop.f32.mrb[61].mxu1  ;;  %v4472_v59 = vpop.f32.mrb[65].mxu0 }
 0x541   : > { %v4451_v62 = vadd.f32 %v4450_v27, %v4449_v37  ;;  %v4473_v63 = vadd.f32 %v4472_v59, %v4471_v33  ;;  %v4452_v1 = vpop.f32.mrb[62].mxu1  ;;  %v4474_v5 = vpop.f32.mrb[66].mxu0 }
 0x542   : > { %v4453_v7 = vpop.f32.mrb[63].mxu1  ;;  %v4475_v12 = vpop.f32.mrb[67].mxu0 }
 0x543   : > { %v5759_v8 = vadd.f32 %v4451_v62, %v2080_v34  ;;  %v2218_v13 = vadd.f32 %v4473_v63, %v5717_v9  ;;  %v4454_v14 = vadd.f32 %v4453_v7, %v4452_v1  ;;  %v4476_v15 = vadd.f32 %v4475_v12, %v4474_v5 }
 0x545   : > { %v5762_v44 = vadd.f32 %v4454_v14, %v2083_v6  ;;  %v2221_v41 = vadd.f32 %v4476_v15, %v5719_v16 }
 0x547   : > { %v4477_v46 = vpop.f32.mrb[68].mxu0  ;;  %v4535_v18 = vpop.f32.mrb[64].mxu1 }
 0x548   : > { %v4478_v10 = vpop.f32.mrb[69].mxu0  ;;  %v4536_v19 = vpop.f32.mrb[65].mxu1 }
 0x549   : > { %v4479_v20 = vadd.f32 %v4478_v10, %v4477_v46  ;;  %v4537_v22 = vadd.f32 %v4536_v19, %v4535_v18  ;;  %v4480_v23 = vpop.f32.mrb[70].mxu0  ;;  %v4538_v54 = vpop.f32.mrb[66].mxu1 }
 0x54a   : > { %v4481_v24 = vpop.f32.mrb[71].mxu0  ;;  %v4539_v26 = vpop.f32.mrb[67].mxu1 }
 0x54b   : > { %v2226_v28 = vadd.f32 %v4479_v20, %v5723_v25  ;;  %v4482_v31 = vadd.f32 %v4481_v24, %v4480_v23  ;;  %v4540_v9 = vadd.f32 %v4539_v26, %v4538_v54  ;;  %v5766_v35 = vadd.f32 %v4537_v22, %v2218_v13 }
 0x54d   : > { %v2229_v36 = vadd.f32 %v4482_v31, %v5725_v30  ;;  %v5769_v3 = vadd.f32 %v4540_v9, %v2221_v41 }
 0x54f   : > { %v4483_v16 = vpop.f32.mrb[72].mxu0  ;;  %v4541_v38 = vpop.f32.mrb[68].mxu1 }
 0x550   : > { %v4484_v39 = vpop.f32.mrb[73].mxu0  ;;  %v4542_v4 = vpop.f32.mrb[69].mxu1 }
 0x551   : > { %v4485_v42 = vadd.f32 %v4484_v39, %v4483_v16  ;;  %v4543_v61 = vadd.f32 %v4542_v4, %v4541_v38  ;;  %v4486_v55 = vpop.f32.mrb[74].mxu0  ;;  %v4544_v45 = vpop.f32.mrb[70].mxu1 }
 0x552   : > { %v4487_v21 = vpop.f32.mrb[75].mxu0  ;;  %v4545_v56 = vpop.f32.mrb[71].mxu1 }
 0x553   : > { %v2234_v25 = vadd.f32 %v4485_v42, %v5729_v43  ;;  %v4488_v48 = vadd.f32 %v4487_v21, %v4486_v55  ;;  %v4546_v50 = vadd.f32 %v4545_v56, %v4544_v45  ;;  %v5772_v51 = vadd.f32 %v4543_v61, %v2226_v28 }
 0x555   : > { %v2237_v30 = vadd.f32 %v4488_v48, %v5731_v47  ;;  %v5775_v52 = vadd.f32 %v4546_v50, %v2229_v36 }
 0x557   : > { %v4489_v32 = vpop.f32.mrb[76].mxu0  ;;  %v4547_v49 = vpop.f32.mrb[72].mxu1 }
 0x558   : > { %v4490_v37 = vpop.f32.mrb[77].mxu0  ;;  %v4548_v33 = vpop.f32.mrb[73].mxu1 }
 0x559   : > { %v4491_v27 = vadd.f32 %v4490_v37, %v4489_v32  ;;  %v4549_v59 = vadd.f32 %v4548_v33, %v4547_v49  ;;  %v4492_v34 = vpop.f32.mrb[78].mxu0  ;;  %v4550_v62 = vpop.f32.mrb[74].mxu1 }
 0x55a   : > { %v4493_v63 = vpop.f32.mrb[79].mxu0  ;;  %v4551_v1 = vpop.f32.mrb[75].mxu1 }
 0x55b   : > { %v2242_v43 = vadd.f32 %v4491_v27, %v5735_v29  ;;  %v4494_v5 = vadd.f32 %v4493_v63, %v4492_v34  ;;  %v4552_v6 = vadd.f32 %v4551_v1, %v4550_v62  ;;  %v5778_v7 = vadd.f32 %v4549_v59, %v2234_v25 }
 0x55d   : > { %v2245_v47 = vadd.f32 %v4494_v5, %v5737_v60  ;;  %v5781_v12 = vadd.f32 %v4552_v6, %v2237_v30 }
 0x55f   : > { %v4495_v13 = vpop.f32.mrb[80].mxu0  ;;  %v4553_v14 = vpop.f32.mrb[76].mxu1 }
 0x560   : > { %v4496_v15 = vpop.f32.mrb[81].mxu0  ;;  %v4554_v41 = vpop.f32.mrb[77].mxu1 }
 0x561   : > { %v4497_v46 = vadd.f32 %v4496_v15, %v4495_v13  ;;  %v4555_v18 = vadd.f32 %v4554_v41, %v4553_v14  ;;  %v4498_v10 = vpop.f32.mrb[82].mxu0  ;;  %v4556_v19 = vpop.f32.mrb[78].mxu1 }
 0x562   : > { %v4499_v20 = vpop.f32.mrb[83].mxu0  ;;  %v4557_v22 = vpop.f32.mrb[79].mxu1 }
 0x563   : > { %v2250_v29 = vadd.f32 %v4497_v46, %v5741_v40  ;;  %v4500_v23 = vadd.f32 %v4499_v20, %v4498_v10  ;;  %v4558_v54 = vadd.f32 %v4557_v22, %v4556_v19  ;;  %v5784_v24 = vadd.f32 %v4555_v18, %v2242_v43 }
 0x565   : > { %v2253_v60 = vadd.f32 %v4500_v23, %v5743_v17  ;;  %v5787_v26 = vadd.f32 %v4558_v54, %v2245_v47 }
 0x567   : > { %v4501_v28 = vpop.f32.mrb[84].mxu0  ;;  %v4559_v31 = vpop.f32.mrb[80].mxu1 }
 0x568   : > { %v4502_v9 = vpop.f32.mrb[85].mxu0  ;;  %v4560_v36 = vpop.f32.mrb[81].mxu1 }
 0x569   : > { %v4503_v16 = vadd.f32 %v4502_v9, %v4501_v28  ;;  %v4561_v38 = vadd.f32 %v4560_v36, %v4559_v31  ;;  %v4504_v39 = vpop.f32.mrb[86].mxu0  ;;  %v4562_v4 = vpop.f32.mrb[82].mxu1 }
 0x56a   : > { %v4505_v42 = vpop.f32.mrb[87].mxu0  ;;  %v4563_v61 = vpop.f32.mrb[83].mxu1 }
 0x56b   : > { %v2258_v40 = vadd.f32 %v4503_v16, %v5747_v0  ;;  %v4506_v55 = vadd.f32 %v4505_v42, %v4504_v39  ;;  %v4564_v45 = vadd.f32 %v4563_v61, %v4562_v4  ;;  %v5790_v21 = vadd.f32 %v4561_v38, %v2250_v29 }
 0x56d   : > { %v2261_v17 = vadd.f32 %v4506_v55, %v5749_v2  ;;  %v5793_v56 = vadd.f32 %v4564_v45, %v2253_v60 }
 0x56f   : > { %v4507_v25 = vpop.f32.mrb[88].mxu0  ;;  %v4565_v48 = vpop.f32.mrb[84].mxu1 }
 0x570   : > { %v4508_v50 = vpop.f32.mrb[89].mxu0  ;;  %v4566_v30 = vpop.f32.mrb[85].mxu1 }
 0x571   : > { %v4509_v32 = vadd.f32 %v4508_v50, %v4507_v25  ;;  %v4567_v49 = vadd.f32 %v4566_v30, %v4565_v48  ;;  %v4510_v37 = vpop.f32.mrb[90].mxu0  ;;  %v4568_v33 = vpop.f32.mrb[86].mxu1 }
 0x572   : > { %v4511_v27 = vpop.f32.mrb[91].mxu0  ;;  %v4569_v59 = vpop.f32.mrb[87].mxu1 }
 0x573   : > { %v2266_v0 = vadd.f32 %v4509_v32, %v5753_v53  ;;  %v4512_v34 = vadd.f32 %v4511_v27, %v4510_v37  ;;  %v4570_v62 = vadd.f32 %v4569_v59, %v4568_v33  ;;  %v2355_v63 = vadd.f32 %v4567_v49, %v2258_v40 }
 0x575   : > { %v2269_v1 = vadd.f32 %v4512_v34, %v5755_v11  ;;  %v2358_v2 = vadd.f32 %v4570_v62, %v2261_v17  ;;  %v5003_v34 = vld [vmem:[%s6966_s9] sm:$0xff]  }
 0x576   : > { %3004 = vmatpush1.bf16.msra.mxu1 %v5003_v34 }
 0x577   : > { %v4513_v43 = vpop.f32.mrb[92].mxu0  ;;  %v4571_v5 = vpop.f32.mrb[88].mxu1  ;;  %3005 = vmatprep.subr.bf16.mxu1 %v5048_v57 }
 0x578   : > { %v4514_v6 = vpop.f32.mrb[93].mxu0  ;;  %v4572_v47 = vpop.f32.mrb[89].mxu1 }
 0x579   : > { %v4515_v13 = vadd.f32 %v4514_v6, %v4513_v43  ;;  %v4573_v14 = vadd.f32 %v4572_v47, %v4571_v5  ;;  %v4516_v15 = vpop.f32.mrb[94].mxu0  ;;  %v4574_v41 = vpop.f32.mrb[90].mxu1 }
 0x57a   : > { %v4517_v46 = vpop.f32.mrb[95].mxu0  ;;  %v4575_v18 = vpop.f32.mrb[91].mxu1 }
 0x57b   : > { %v2274_v10 = vadd.f32 %v4515_v13, %v5759_v8  ;;  %v4518_v19 = vadd.f32 %v4517_v46, %v4516_v15  ;;  %v4576_v53 = vadd.f32 %v4575_v18, %v4574_v41  ;;  %v5798_v20 = vadd.f32 %v4573_v14, %v2266_v0  ;;  %v5005_v46 = vld [vmem:[%s6966_s9 + $0x10] sm:$0xff]  }
 0x57d   : > { %v2277_v22 = vadd.f32 %v4518_v19, %v5762_v44  ;;  %v5801_v11 = vadd.f32 %v4576_v53, %v2269_v1 }
 0x57f   : > { %v4577_v29 = vpop.f32.mrb[92].mxu1  ;;  %v4804_v23 = vpop.f32.mrb[96].mxu0 }
 0x580   : > { %v5804_v54 = vadd.f32 %v4804_v23, %v5772_v51  ;;  %v4578_v60 = vpop.f32.mrb[93].mxu1  ;;  %v2411_v28 = vpop.f32.mrb[97].mxu0  ;;  %v5006_v23 = vld [vmem:[%s6966_s9 + $0x18] sm:$0xff]  }
 0x581   : > { %v4579_v31 = vadd.f32 %v4578_v60, %v4577_v29  ;;  %v5807_v9 = vadd.f32 %v2411_v28, %v5766_v35  ;;  %v4580_v8 = vpop.f32.mrb[94].mxu1  ;;  %v4805_v36 = vpop.f32.mrb[98].mxu0  ;;  %v5007_v28 = vld [vmem:[%s6966_s9 + $0x20] sm:$0xff]  }
 0x582   : > { %v5810_v16 = vadd.f32 %v4805_v36, %v5775_v52  ;;  %v4581_v38 = vpop.f32.mrb[95].mxu1  ;;  %v2414_v44 = vpop.f32.mrb[99].mxu0  ;;  %v6986_v61 = vmax.f32 %v5804_v54, 0.0  ;;  %v5008_v36 = vld [vmem:[%s6966_s9 + $0x28] sm:$0xff]  }
 0x583   : > { %v4582_v39 = vadd.f32 %v4581_v38, %v4580_v8  ;;  %v5813_v4 = vadd.f32 %v2414_v44, %v5769_v3  ;;  %v2371_v42 = vadd.f32 %v4579_v31, %v2274_v10  ;;  %v6984_v40 = vmax.f32 %v5807_v9, 0.0  ;;  %v5009_v44 = vld [vmem:[%s6966_s9 + $0x30] sm:$0xff]  }
 0x584   : > { %v6985_v51 = vmax.f32 %v5810_v16, 0.0 }
 0x585   : > { %v6983_v35 = vmax.f32 %v5813_v4, 0.0  ;;  %v2374_v55 = vadd.f32 %v4582_v39, %v2277_v22 }
 0x586   : > { %v5823_v52 = vpack.c.bf16 %v6985_v51, %v6986_v61 }
 0x587   : > { %v2490_v3 = vpack.c.bf16 %v6983_v35, %v6984_v40  ;;  %v4808_v45 = vpop.f32.mrb[100].mxu0 }
 0x588   : > { %v5830_v17 = vadd.f32 %v4808_v45, %v5784_v24  ;;  %v2427_v25 = vpop.f32.mrb[101].mxu0  ;;  %v2507_v37 = vrot.slane %v5823_v52, 4  ;;  %v5010_v52 = vld [vmem:[%s6966_s9 + $0x38] sm:$0xff]  }
 0x589   : > { %v2506_v48 = vrot.slane %v2490_v3, 4  ;;  %v5833_v50 = vadd.f32 %v2427_v25, %v5778_v7  ;;  %v4809_v30 = vpop.f32.mrb[102].mxu0 }
 0x58a   : > { %7002 = vst [vmem:[#allocation2_spill] sm:$0xff] %v5830_v17  ;;  %v5836_v32 = vadd.f32 %v4809_v30, %v5787_v26  ;;  %v2430_v49 = vpop.f32.mrb[103].mxu0  ;;  %v6980_v29 = vmax.f32 %v5830_v17, 0.0 }
 0x58b   : > { %v5840_v33 = vsel %vm1375_vm5, 0, %v2506_v48  ;;  %v5843_v27 = vadd.f32 %v2430_v49, %v5781_v12  ;;  %v5850_v24 = vsel %vm1375_vm5, %v2506_v48, %v2507_v37  ;;  %v6982_v14 = vmax.f32 %v5833_v50, 0.0  ;;  %v5011_v49 = vld [vmem:[%s6966_s9 + $0x40] sm:$0xff]  }
 0x58c   : > { %7003 = vst [vmem:[#allocation3_spill] sm:$0xff] %v5836_v32  ;;  %2588 = vrot.lane.b32.xlu1 %v5840_v33, %s5047_s22  ;;  %2620 = vrot.lane.b32.xlu0 %v5840_v33, %s5052_s21  ;;  %v2528_v43 = vrot.slane %v5840_v33, 4  ;;  %v2530_v6 = vrot.slane %v5850_v24, 4  ;;  %v6979_v19 = vmax.f32 %v5836_v32, 0.0 }
 0x58d   : > { %7004 = vst [vmem:[#allocation4_spill] sm:$0xff] %v5843_v27 }
 0x58e   : > { %v2531_v22 = vsel %vm1375_vm5, %v2528_v43, %v2530_v6 }
 0x58f   : > { %v4812_v7 = vpop.f32.mrb[104].mxu0 }
 0x590   : > { %v5852_v26 = vadd.f32 %v4812_v7, %v2355_v63  ;;  %v2443_v59 = vpop.f32.mrb[105].mxu0  ;;  %2556 = vrot.lane.b32.xlu0 %v5840_v33, %s5050_s16  ;;  %2622 = vrot.lane.b32.xlu1 %v5850_v24, %s5052_s21 }
 0x591   : > { %v5859_v12 = vadd.f32 %v2443_v59, %v5790_v21  ;;  %v4813_v0 = vpop.f32.mrb[106].mxu0  ;;  %v5004_v21 = vld [vmem:[%s6966_s9 + $0x8] sm:$0xff]  }
 0x592   : > { %7005 = vst [vmem:[#allocation5_spill] sm:$0xff] %v5852_v26  ;;  %v5864_v62 = vadd.f32 %v4813_v0, %v2358_v2  ;;  %v2446_v1 = vpop.f32.mrb[107].mxu0  ;;  %v6981_v2 = vmax.f32 %v5843_v27, 0.0  ;;  %3006 = vmatpush1.bf16.msra.mxu1 %v5004_v21  ;;  %v6976_v30 = vmax.f32 %v5852_v26, 0.0  ;;  %v5012_v0 = vld [vmem:[%s6966_s9 + $0x48] sm:$0xff]  }
 0x593   : > { %7006 = vst [vmem:[#allocation6_spill] sm:$0xff] %v5859_v12  ;;  %v5867_v63 = vadd.f32 %v2446_v1, %v5793_v56  ;;  %v2529_v56 = vsel %vm1375_vm5, %v5320_v58, %v2528_v43  ;;  %3007 = vmatprep.subr.bf16.mxu1 %v5048_v57  ;;  %v5013_v43 = vld [vmem:[%s6966_s9 + $0x50] sm:$0xff]  }
 0x594   : > { %7007 = vst [vmem:[#allocation7_spill] sm:$0xff] %v5864_v62  ;;  %2590 = vrot.lane.b32.xlu0 %v5850_v24, %s5047_s22  ;;  %2558 = vrot.lane.b32.xlu1 %v5850_v24, %s5050_s16  ;;  %v2492_v53 = vpack.c.bf16 %v6981_v2, %v6982_v14  ;;  %v6975_v3 = vmax.f32 %v5864_v62, 0.0 }
 0x595   : > { %7008 = vst [vmem:[#allocation8_spill] sm:$0xff] %v5867_v63  ;;  %v6977_v39 = vmax.f32 %v5867_v63, 0.0 }
 0x596   : > { %3008 = vmatpush1.bf16.msra.mxu1 %v5005_v46  ;;  %v2509_v60 = vrot.slane %v2492_v53, 4  ;;  %v5016_v53 = vld [vmem:[%s6966_s9 + $0x68] sm:$0xff]  }
 0x597   : > { %v4816_v5 = vpop.f32.mrb[108].mxu0  ;;  %3009 = vmatprep.subr.bf16.mxu1 %v5048_v57 }
 0x598   : > { %v5882_v47 = vadd.f32 %v4816_v5, %v2371_v42  ;;  %v2459_v13 = vpop.f32.mrb[109].mxu0  ;;  %2604 = vrot.lane.b32.xlu0 %v2529_v56, %s5053_s29  ;;  %2572 = vrot.lane.b32.xlu1 %v2529_v56, %s5051_s17  ;;  %v5923_v8 = vsel %vm1375_vm5, %v2507_v37, %v2509_v60  ;;  %v2495_v37 = vpack.c.bf16 %v6975_v3, %v6976_v30  ;;  %v5014_v5 = vld [vmem:[%s6966_s9 + $0x58] sm:$0xff]  }
 0x599   : > { %v5888_v15 = vadd.f32 %v2459_v13, %v5798_v20  ;;  %v4817_v41 = vpop.f32.mrb[110].mxu0  ;;  %v2532_v42 = vrot.slane %v5923_v8, 4 }
 0x59a   : > { %7009 = vst [vmem:[#allocation9_spill] sm:$0xff] %v5882_v47  ;;  %v5894_v18 = vadd.f32 %v4817_v41, %v2374_v55  ;;  %v2462_v10 = vpop.f32.mrb[111].mxu0  ;;  %3010 = vmatpush1.bf16.msra.mxu1 %v5006_v23  ;;  %v6978_v55 = vmax.f32 %v5859_v12, 0.0  ;;  %v2515_v34 = vrot.slane %v2495_v37, 4  ;;  %v6065_v37 = vpop.permute.xlu0 %2540 }
 0x59b   : > { %7010 = vst [vmem:[#allocation10_spill] sm:$0xff] %v5888_v15  ;;  %v5902_v20 = vadd.f32 %v2462_v10, %v5801_v11  ;;  %v2493_v11 = vpack.c.bf16 %v6979_v19, %v6980_v29  ;;  %3011 = vmatprep.subr.bf16.mxu1 %v5048_v57  ;;  %v2533_v25 = vsel %vm1375_vm5, %v2530_v6, %v2532_v42  ;;  %v5015_v6 = vld [vmem:[%s6966_s9 + $0x60] sm:$0xff]   ;;  %v6974_v10 = vmax.f32 %v5888_v15, 0.0 }
 0x59c   : > { %7011 = vst [vmem:[#allocation11_spill] sm:$0xff] %v5894_v18  ;;  %2606 = vrot.lane.b32.xlu1 %v2531_v22, %s5053_s29  ;;  %2639 = vrot.lane.b32.xlu0 %v2531_v22, %s5045_s20  ;;  %v2494_v45 = vpack.c.bf16 %v6977_v39, %v6978_v55 }
 0x59d   : > { %7012 = vst [vmem:[#allocation12_spill] sm:$0xff] %v5902_v20  ;;  %v2511_v31 = vrot.slane %v2493_v11, 4  ;;  %v6973_v13 = vmax.f32 %v5902_v20, 0.0 }
 0x59e   : > { %3012 = vmatpush1.bf16.msra.mxu1 %v5007_v28  ;;  %v2513_v7 = vrot.slane %v2494_v45, 4  ;;  %v5017_v28 = vld [vmem:[%s6966_s9 + $0x70] sm:$0xff]  }
 0x59f   : > { %3013 = vmatprep.subr.bf16.mxu1 %v5048_v57  ;;  %v5933_v38 = vsel %vm1375_vm5, %v2509_v60, %v2511_v31  ;;  %v2496_v23 = vpack.c.bf16 %v6973_v13, %v6974_v10  ;;  %v6972_v60 = vmax.f32 %v5882_v47, 0.0 }
 0x5a0   : > { %2544 = vrot.lane.b32.xlu1 %v2531_v22, %s5049_s15  ;;  %2542 = vrot.lane.b32.xlu0 %v2529_v56, %s5049_s15  ;;  %v2534_v48 = vrot.slane %v5933_v38, 4  ;;  %v5981_v1 = vsel %vm1375_vm5, %v2511_v31, %v2513_v7  ;;  %v5991_v21 = vsel %vm1375_vm5, %v2513_v7, %v2515_v34 }
 0x5a1   : > { %v2536_v56 = vrot.slane %v5981_v1, 4  ;;  %v2538_v46 = vrot.slane %v5991_v21, 4 }
 0x5a2   : > { %3014 = vmatpush1.bf16.msra.mxu1 %v5008_v36  ;;  %v2535_v59 = vsel %vm1375_vm5, %v2532_v42, %v2534_v48  ;;  %v2517_v36 = vrot.slane %v2496_v23, 4 }
 0x5a3   : > { %3015 = vmatprep.subr.bf16.mxu1 %v5048_v57  ;;  %v2537_v41 = vsel %vm1375_vm5, %v2534_v48, %v2536_v56  ;;  %v2539_v11 = vsel %vm1375_vm5, %v2536_v56, %v2538_v46 }
 0x5a4   : > { %2560 = vrot.lane.b32.xlu1 %v5923_v8, %s5050_s16  ;;  %2574 = vrot.lane.b32.xlu0 %v2531_v22, %s5051_s17  ;;  %v6971_v22 = vmax.f32 %v5894_v18, 0.0  ;;  %v6039_v42 = vsel %vm1375_vm5, %v2515_v34, %v2517_v36  ;;  %v2692_v18 = vsel %vm2690_vm6, 0, %v6065_v37 }
 0x5a5   : > { %v2568_v45 = vrot.slane %v6039_v42, 4 }
 0x5a6   : > { %3016 = vmatpush1.bf16.msra.mxu1 %v5009_v44  ;;  %v2497_v31 = vpack.c.bf16 %v6971_v22, %v6972_v60 }
 0x5a7   : > { %3017 = vmatprep.subr.bf16.mxu1 %v5048_v57 }
 0x5a8   : > { %2594 = vrot.lane.b32.xlu1 %v5933_v38, %s5047_s22  ;;  %2562 = vrot.lane.b32.xlu0 %v5933_v38, %s5050_s16  ;;  %v2519_v44 = vrot.slane %v2497_v31, 4 }
 0x5aa   : > { %3018 = vmatpush1.bf16.msra.mxu1 %v5010_v52  ;;  %v6046_v52 = vsel %vm1375_vm5, %v2517_v36, %v2519_v44  ;;  %v6068_v7 = vsel %vm1375_vm5, %v2519_v44, 0 }
 0x5ab   : > { %3019 = vmatprep.subr.bf16.mxu1 %v5048_v57  ;;  %v2602_v48 = vrot.slane %v6046_v52, 4 }
 0x5ac   : > { %2592 = vrot.lane.b32.xlu1 %v5923_v8, %s5047_s22  ;;  %2624 = vrot.lane.b32.xlu0 %v5923_v8, %s5052_s21 }
 0x5ae   : > { %3020 = vmatpush1.bf16.msra.mxu1 %v5011_v49  ;;  %v2603_v49 = vsel %vm1375_vm5, %v2568_v45, %v2602_v48 }
 0x5af   : > { %3021 = vmatprep.subr.bf16.mxu1 %v5048_v57 }
 0x5b0   : > { %2626 = vrot.lane.b32.xlu1 %v5933_v38, %s5052_s21  ;;  %2608 = vrot.lane.b32.xlu0 %v2533_v25, %s5053_s29 }
 0x5b2   : > { %3022 = vmatpush1.bf16.msra.mxu1 %v5012_v0  ;;  %v6077_v0 = vpop.permute.xlu0 %2554 }
 0x5b3   : > { %3023 = vmatprep.subr.bf16.mxu1 %v5048_v57  ;;  %v6147_v47 = vsel %vm2709_vm7, %v2692_v18, %v6077_v0 }
 0x5b4   : > { %2546 = vrot.lane.b32.xlu1 %v2533_v25, %s5049_s15  ;;  %2643 = vrot.lane.b32.xlu0 %v2535_v59, %s5045_s20 }
 0x5b6   : > { %3024 = vmatpush1.bf16.msra.mxu1 %v5013_v43  ;;  %v6082_v43 = vpop.permute.xlu0 %2570 }
 0x5b7   : > { %3025 = vmatprep.subr.bf16.mxu1 %v5048_v57  ;;  %v2726_v63 = vsel %vm2724_vm8, %v6147_v47, %v6082_v43 }
 0x5b8   : > { %2578 = vrot.lane.b32.xlu1 %v2535_v59, %s5051_s17  ;;  %2596 = vrot.lane.b32.xlu0 %v5981_v1, %s5047_s22 }
 0x5ba   : > { %3026 = vmatpush1.bf16.msra.mxu1 %v5014_v5  ;;  %v6092_v5 = vpop.permute.xlu0 %2586 }
 0x5bb   : > { %3027 = vmatprep.subr.bf16.mxu1 %v5048_v57 }
 0x5bc   : > { %2548 = vrot.lane.b32.xlu1 %v2535_v59, %s5049_s15  ;;  %2630 = vrot.lane.b32.xlu0 %v5991_v21, %s5052_s21 }
 0x5be   : > { %3028 = vmatpush1.bf16.msra.mxu1 %v5015_v6 }
 0x5bf   : > { %3029 = vmatprep.subr.bf16.mxu1 %v5048_v57 }
 0x5c0   : > { %2641 = vrot.lane.b32.xlu1 %v2533_v25, %s5045_s20  ;;  %2566 = vrot.lane.b32.xlu0 %v5991_v21, %s5050_s16 }
 0x5c2   : > { %3030 = vmatpush1.bf16.msra.mxu1 %v5016_v53 }
 0x5c3   : > { %3031 = vmatprep.subr.bf16.mxu1 %v5048_v57 }
 0x5c4   : > { %2576 = vrot.lane.b32.xlu1 %v2533_v25, %s5051_s17  ;;  %2580 = vrot.lane.b32.xlu0 %v2537_v41, %s5051_s17  ;;  %v2569_v25 = vsel %vm1375_vm5, %v2538_v46, %v2568_v45 }
 0x5c6   : > { %3032 = vmatpush1.bf16.msra.mxu1 %v5017_v28 }
 0x5c8   : > { %2610 = vrot.lane.b32.xlu1 %v2535_v59, %s5053_s29  ;;  %2614 = vrot.lane.b32.xlu0 %v2539_v11, %s5053_s29  ;;  %v2637_v59 = vrot.slane %v6068_v7, 4 }
 0x5ca   : > { %v2638_v34 = vsel %vm1375_vm5, %v2602_v48, %v2637_v59  ;;  %v2655_v56 = vsel %vm1375_vm5, %v2637_v59, %v5320_v58 }
 0x5cc   : > { %2628 = vrot.lane.b32.xlu1 %v5981_v1, %s5052_s21  ;;  %2552 = vrot.lane.b32.xlu0 %v2539_v11, %s5049_s15 }
 0x5d0   : > { %2564 = vrot.lane.b32.xlu1 %v5981_v1, %s5050_s16  ;;  %2600 = vrot.lane.b32.xlu0 %v6039_v42, %s5047_s22 }
 0x5d4   : > { %2598 = vrot.lane.b32.xlu1 %v5991_v21, %s5047_s22  ;;  %2634 = vrot.lane.b32.xlu0 %v6046_v52, %s5052_s21 }
 0x5d8   : > { %2612 = vrot.lane.b32.xlu1 %v2537_v41, %s5053_s29  ;;  %2647 = vrot.lane.b32.xlu0 %v2539_v11, %s5045_s20 }
 0x5dc   : > { %2550 = vrot.lane.b32.xlu1 %v2537_v41, %s5049_s15  ;;  %2666 = vrot.lane.b32.xlu0 %v6046_v52, %s5050_s16 }
 0x5e0   : > { %2582 = vrot.lane.b32.xlu1 %v2539_v11, %s5051_s17  ;;  %2584 = vrot.lane.b32.xlu0 %v2569_v25, %s5051_s17 }
 0x5e4   : > { %2645 = vrot.lane.b32.xlu1 %v2537_v41, %s5045_s20  ;;  %2618 = vrot.lane.b32.xlu0 %v2603_v49, %s5053_s29 }
 0x5e8   : > { %2632 = vrot.lane.b32.xlu1 %v6039_v42, %s5052_s21  ;;  %2656 = vrot.lane.b32.xlu0 %v2569_v25, %s5049_s15 }
 0x5ec   : > { %2664 = vrot.lane.b32.xlu1 %v6039_v42, %s5050_s16  ;;  %2670 = vrot.lane.b32.xlu0 %v2603_v49, %s5051_s17 }
 0x5f0   : > { %2616 = vrot.lane.b32.xlu1 %v2569_v25, %s5053_s29  ;;  %2680 = vrot.lane.b32.xlu0 %v2638_v34, %s5053_s29 }
 0x5f4   : > { %2676 = vrot.lane.b32.xlu1 %v6046_v52, %s5047_s22  ;;  %2678 = vrot.lane.b32.xlu0 %v6068_v7, %s5047_s22 }
 0x5f8   : > { %2686 = vrot.lane.b32.xlu1 %v6068_v7, %s5052_s21  ;;  %2688 = vrot.lane.b32.xlu0 %v5048_v57, %s5052_s21 }
 0x5fc   : > { %2682 = vrot.lane.b32.xlu1 %v2655_v56, %s5053_s29  ;;  %2660 = vrot.lane.b32.xlu0 %v2638_v34, %s5049_s15 }
 0x5fe   : > { %v6098_v6 = vpop.permute.xlu1 %2588  ;;  %v6100_v41 = vpop.permute.xlu0 %2620 }
 0x600   : > { %2658 = vrot.lane.b32.xlu1 %v2603_v49, %s5049_s15  ;;  %2674 = vrot.lane.b32.xlu0 %v2655_v56, %s5051_s17 }
 0x602   : > { %v6104_v46 = vpop.permute.xlu0 %2556  ;;  %v6106_v57 = vpop.permute.xlu1 %2622 }
 0x604   : > { %2672 = vrot.lane.b32.xlu1 %v2638_v34, %s5051_s17  ;;  %2651 = vrot.lane.b32.xlu0 %v2603_v49, %s5045_s20 }
 0x606   : > { %v6110_v53 = vpop.permute.xlu0 %2590  ;;  %v6112_v23 = vpop.permute.xlu1 %2558 }
 0x608   : > { %2649 = vrot.lane.b32.xlu1 %v2569_v25, %s5045_s20  ;;  %2653 = vrot.lane.b32.xlu0 %v2638_v34, %s5045_s20 }
 0x60a   : > { %v2605_v11 = vpop.permute.xlu0 %2604  ;;  %v2573_v28 = vpop.permute.xlu1 %2572 }
 0x60c   : > { %2668 = vrot.lane.b32.xlu1 %v6068_v7, %s5050_s16 }
 0x60e   : > { %v6118_v31 = vpop.permute.xlu1 %2606  ;;  %v2640_v36 = vpop.permute.xlu0 %2639 }
 0x610   : > { %2684 = vrot.lane.b32.xlu1 %v5320_v58, %s5053_s29 }
 0x612   : > { %v6122_v44 = vpop.permute.xlu1 %2544  ;;  %v6124_v45 = vpop.permute.xlu0 %2542 }
 0x614   : > { %2662 = vrot.lane.b32.xlu1 %v2655_v56, %s5049_s15 }
 0x616   : > { %v2561_v25 = vpop.permute.xlu1 %2560  ;;  %v6127_v48 = vpop.permute.xlu0 %2574 }
 0x61a   : > { %v2595_v49 = vpop.permute.xlu1 %2594  ;;  %v2563_v59 = vpop.permute.xlu0 %2562 }
 0x61e   : > { %v6129_v34 = vpop.permute.xlu1 %2592  ;;  %v6131_v22 = vpop.permute.xlu0 %2624 }
 0x622   : > { %v6133_v60 = vpop.permute.xlu1 %2626  ;;  %v6135_v13 = vpop.permute.xlu0 %2608 }
 0x626   : > { %v2547_v10 = vpop.permute.xlu1 %2546  ;;  %v6137_v3 = vpop.permute.xlu0 %2643 }
 0x627   : > { %v2699_v62 = vsel %vm2690_vm6, %v5850_v24, %v2547_v10  ;;  %v6164_v24 = vsel %vm1342_vm4, %v2726_v63, %v6092_v5 }
 0x628   : > { %v2717_v37 = vsel %vm2709_vm7, %v2699_v62, %v2561_v25 }
 0x62a   : > { %v2579_v30 = vpop.permute.xlu1 %2578  ;;  %v2597_v39 = vpop.permute.xlu0 %2596 }
 0x62b   : > { %v2734_v17 = vsel %vm2724_vm8, %v2717_v37, %v2579_v30  ;;  %v2694_v37 = vsel %vm2690_vm6, 0, %v6124_v45 }
 0x62e   : > { %v2549_v55 = vpop.permute.xlu1 %2548  ;;  %v2631_v56 = vpop.permute.xlu0 %2630 }
 0x62f   : > { %v2702_v26 = vsel %vm2690_vm6, %v5923_v8, %v2549_v55  ;;  %v2759_v8 = vsel %vm2757_vm9, %v6164_v24, %v2605_v11  ;;  %v2728_v11 = vsel %vm2724_vm8, %v6147_v47, %v2573_v28 }
 0x630   : > { %v2719_v12 = vsel %vm2709_vm7, %v2702_v26, %v2563_v59  ;;  %v2750_v26 = vsel %vm1342_vm4, %v2734_v17, %v2595_v49  ;;  %v2776_v63 = vsel %vm2774_vm10, %v2759_v8, %v6100_v41 }
 0x632   : > { %v2642_v19 = vpop.permute.xlu1 %2641  ;;  %v2567_v29 = vpop.permute.xlu0 %2566 }
 0x636   : > { %v6139_v2 = vpop.permute.xlu1 %2576  ;;  %v2581_v14 = vpop.permute.xlu0 %2580 }
 0x637   : > { %v2736_v27 = vsel %vm2724_vm8, %v2719_v12, %v2581_v14 }
 0x638   : > { %v2752_v62 = vsel %vm1342_vm4, %v2736_v27, %v2597_v39  ;;  %v2793_v27 = vsel %vm2791_vm11, %v2776_v63, %v2640_v36 }
 0x63a   : > { %v6141_v35 = vpop.permute.xlu1 %2610  ;;  %v2615_v40 = vpop.permute.xlu0 %2614 }
 0x63b   : > { %v2769_v30 = vsel %vm2757_vm9, %v2752_v62, %v2615_v40 }
 0x63c   : > { %v6187_v40 = vsel %vm2774_vm10, %v2769_v30, %v2631_v56 }
 0x63e   : > { %v2629_v51 = vpop.permute.xlu1 %2628  ;;  %v2553_v61 = vpop.permute.xlu0 %2552 }
 0x642   : > { %v2565_v20 = vpop.permute.xlu1 %2564  ;;  %v2601_v15 = vpop.permute.xlu0 %2600 }
 0x646   : > { %v2599_v18 = vpop.permute.xlu1 %2598  ;;  %v6158_v32 = vpop.permute.xlu0 %2634 }
 0x64a   : > { %v2613_v55 = vpop.permute.xlu1 %2612  ;;  %v6170_v10 = vpop.permute.xlu0 %2647 }
 0x64b   : > { %v2767_v12 = vsel %vm2757_vm9, %v2750_v26, %v2613_v55  ;;  %v2713_v26 = vsel %vm2709_vm7, %v2694_v37, %v6104_v46 }
 0x64c   : > { %v6177_v14 = vsel %vm2774_vm10, %v2767_v12, %v2629_v51  ;;  %v2744_v51 = vsel %vm1342_vm4, %v2728_v11, %v6098_v6  ;;  %v2708_v6 = vsel %vm2690_vm6, %v5981_v1, %v2553_v61 }
 0x64d   : > { %4231 = vmatprep.mubr.msk.bf16.mxu1 %vm2791_vm11, %v6177_v14  ;;  %v2761_v41 = vsel %vm2757_vm9, %v2744_v51, %v6118_v31  ;;  %v2723_v55 = vsel %vm2709_vm7, %v2708_v6, %v2567_v29 }
 0x64e   : > { %v2551_v17 = vpop.permute.xlu1 %2550  ;;  %3036 = vmatmul.mubr.bf16.vlgmr.msra.gmra.mrb[96].mxu1 %v2793_v27  ;;  %v6184_v39 = vpop.permute.xlu0 %2666  ;;  %v2778_v25 = vsel %vm2774_vm10, %v2761_v41, %v6106_v57 }
 0x64f   : > { %4232 = vmatprep.mubr.msk.bf16.mxu1 %vm2791_vm11, %v6187_v40  ;;  %v2796_v49 = vsel %vm2791_vm11, %v2778_v25, %v2642_v19  ;;  %v2705_v31 = vsel %vm2690_vm6, %v5933_v38, %v2551_v17  ;;  %v2730_v19 = vsel %vm2724_vm8, %v2713_v26, %v6127_v48  ;;  %v2696_v38 = vsel %vm2690_vm6, %v5840_v33, %v6122_v44 }
 0x650   : > { %v2721_v57 = vsel %vm2709_vm7, %v2705_v31, %v2565_v20  ;;  %v2746_v61 = vsel %vm1342_vm4, %v2730_v19, %v6110_v53  ;;  %v2715_v27 = vsel %vm2709_vm7, %v2696_v38, %v6112_v23 }
 0x651   : > { %v2763_v1 = vsel %vm2757_vm9, %v2746_v61, %v6135_v13  ;;  %v2732_v13 = vsel %vm2724_vm8, %v2715_v27, %v6139_v2 }
 0x652   : > { %v2583_v28 = vpop.permute.xlu1 %2582  ;;  %v2585_v36 = vpop.permute.xlu0 %2584  ;;  %v2780_v33 = vsel %vm2774_vm10, %v2763_v1, %v6131_v22  ;;  %v2748_v2 = vsel %vm1342_vm4, %v2732_v13, %v6129_v34 }
 0x653   : > { %v2738_v12 = vsel %vm2724_vm8, %v2721_v57, %v2583_v28  ;;  %v2740_v63 = vsel %vm2724_vm8, %v2723_v55, %v2585_v36  ;;  %v2799_v44 = vsel %vm2791_vm11, %v2780_v33, %v6137_v3 }
 0x654   : > { %v2756_v20 = vsel %vm1342_vm4, %v2740_v63, %v2601_v15  ;;  %v2754_v29 = vsel %vm1342_vm4, %v2738_v12, %v2599_v18 }
 0x656   : > { %v2646_v59 = vpop.permute.xlu1 %2645  ;;  %3044 = vmatmul.mubr.bf16.gmra.mrb[100].mxu1 %v2796_v49  ;;  %v2619_v56 = vpop.permute.xlu0 %2618 }
 0x657   : > { %v2773_v48 = vsel %vm2757_vm9, %v2756_v20, %v2619_v56 }
 0x658   : > { %v2790_v51 = vsel %vm2774_vm10, %v2773_v48, %v6158_v32 }
 0x65a   : > { %v2633_v8 = vpop.permute.xlu1 %2632  ;;  %v2657_v62 = vpop.permute.xlu0 %2656 }
 0x65b   : > { %v2818_v15 = vsel %vm2690_vm6, %v5991_v21, %v2657_v62  ;;  %v2765_v21 = vsel %vm2757_vm9, %v2748_v2, %v6141_v35 }
 0x65c   : > { %v2782_v36 = vsel %vm2774_vm10, %v2765_v21, %v6133_v60  ;;  %v2805_v60 = vsel %vm2791_vm11, %v6177_v14, %v6170_v10 }
 0x65d   : > { %v2802_v32 = vsel %vm2791_vm11, %v2782_v36, %v2646_v59 }
 0x65e   : > { %v2665_v30 = vpop.permute.xlu1 %2664  ;;  %v2671_v45 = vpop.permute.xlu0 %2670 }
 0x65f   : > { %v2828_v18 = vsel %vm2709_vm7, %v2818_v15, %v2665_v30 }
 0x660   : > { %v2835_v22 = vsel %vm2724_vm8, %v2828_v18, %v2671_v45 }
 0x662   : > { %v2617_v46 = vpop.permute.xlu1 %2616  ;;  %v2681_v53 = vpop.permute.xlu0 %2680 }
 0x663   : > { %v2771_v11 = vsel %vm2757_vm9, %v2754_v29, %v2617_v46 }
 0x664   : > { %v2788_v17 = vsel %vm2774_vm10, %v2771_v11, %v2633_v8 }
 0x665   : > { %4233 = vmatprep.mubr.msk.bf16.mxu1 %vm2791_vm11, %v2788_v17 }
 0x666   : > { %v2677_v23 = vpop.permute.xlu1 %2676  ;;  %3052 = vmatmul.mubr.bf16.gmra.mrb[104].mxu1 %v2799_v44  ;;  %v2679_v3 = vpop.permute.xlu0 %2678 }
 0x667   : > { %4234 = vmatprep.mubr.msk.bf16.mxu1 %vm2791_vm11, %v2790_v51  ;;  %v2842_v41 = vsel %vm1342_vm4, %v2835_v22, %v2677_v23 }
 0x668   : > { %v2848_v25 = vsel %vm2757_vm9, %v2842_v41, %v2681_v53  ;;  %v6299_v53 = vld [vmem:[%s6967_s10] ss:$0 sm:$0xff] }
 0x66a   : > { %v2687_v28 = vpop.permute.xlu1 %2686  ;;  %v6251_v35 = vpop.permute.xlu0 %2688 }
 0x66b   : > { %v2855_v49 = vsel %vm2774_vm10, %v2848_v25, %v2687_v28 }
 0x66e   : > { %v2683_v56 = vpop.permute.xlu1 %2682  ;;  %3060 = vmatmul.mubr.bf16.gmra.mrb[108].mxu1 %v2802_v32  ;;  %v2661_v8 = vpop.permute.xlu0 %2660 }
 0x66f   : > { %4235 = vmatprep.mubr.msk.bf16.mxu1 %vm2791_vm11, %v2855_v49  ;;  %v2824_v14 = vsel %vm2690_vm6, %v6046_v52, %v2661_v8 }
 0x672   : > { %v2659_v34 = vpop.permute.xlu1 %2658  ;;  %v2675_v57 = vpop.permute.xlu0 %2674 }
 0x673   : > { %v2821_v37 = vsel %vm2690_vm6, %v6039_v42, %v2659_v34 }
 0x674   : > { %v2830_v59 = vsel %vm2709_vm7, %v2821_v37, %v6184_v39 }
 0x676   : > { %v2673_v62 = vpop.permute.xlu1 %2672  ;;  %3068 = vmatmul.mubr.bf16.gmra.mrb[112].mxu1 %v2805_v60  ;;  %v2652_v12 = vpop.permute.xlu0 %2651 }
 0x677   : > { %v2837_v6 = vsel %vm2724_vm8, %v2830_v59, %v2673_v62  ;;  %v2811_v52 = vsel %vm2791_vm11, %v2788_v17, %v2652_v12 }
 0x678   : > { %v2844_v31 = vsel %vm1342_vm4, %v2837_v6, %v2679_v3 }
 0x679   : > { %v2850_v26 = vsel %vm2757_vm9, %v2844_v31, %v2683_v56 }
 0x67a   : > { %v2650_v19 = vpop.permute.xlu1 %2649  ;;  %v2857_v42 = vsel %vm2774_vm10, %v2850_v26, %v6251_v35  ;;  %v2654_v46 = vpop.permute.xlu0 %2653 }
 0x67b   : > { %4236 = vmatprep.mubr.msk.bf16.mxu1 %vm2791_vm11, %v2857_v42  ;;  %v2808_v10 = vsel %vm2791_vm11, %v6187_v40, %v2650_v19 }
 0x67e   : > { %v2669_v39 = vpop.permute.xlu1 %2668  ;;  %3076 = vmatmul.mubr.bf16.gmra.mrb[116].mxu1 %v2808_v10 }
 0x67f   : > { %v2832_v55 = vsel %vm2709_vm7, %v2824_v14, %v2669_v39 }
 0x680   : > { %v2839_v30 = vsel %vm2724_vm8, %v2832_v55, %v2675_v57 }
 0x681   : > { %v2845_v45 = vsel %vm1342_vm4, %v2839_v30, %v6092_v5 }
 0x682   : > { %v6274_v63 = vpop.permute.xlu1 %2684 }
 0x683   : > { %v2852_v61 = vsel %vm2757_vm9, %v2845_v45, %v6274_v63 }
 0x684   : > { %v2858_v40 = vsel %vm2774_vm10, %v2852_v61, %v6251_v35 }
 0x685   : > { %4237 = vmatprep.mubr.msk.bf16.mxu1 %vm2791_vm11, %v2858_v40 }
 0x686   : > { %v2663_v38 = vpop.permute.xlu1 %2662  ;;  %3084 = vmatmul.mubr.bf16.gmra.mrb[120].mxu1 %v2811_v52 }
 0x687   : > { %v2826_v1 = vsel %vm2690_vm6, %v6068_v7, %v2663_v38  ;;  %v2814_v7 = vsel %vm2791_vm11, %v2790_v51, %v2654_v46 }
 0x688   : > { %v2833_v20 = vsel %vm2709_vm7, %v2826_v1, %v6077_v0 }
 0x689   : > { %v2840_v29 = vsel %vm2724_vm8, %v2833_v20, %v6082_v43 }
 0x68a   : > { %v2846_v48 = vsel %vm1342_vm4, %v2840_v29, %v6092_v5 }
 0x68b   : > { %v2853_v11 = vsel %vm2757_vm9, %v2846_v48, %v6274_v63 }
 0x68c   : > { %v2859_v27 = vsel %vm2774_vm10, %v2853_v11, %v6251_v35 }
 0x68d   : > { %4238 = vmatprep.mubr.msk.bf16.mxu1 %vm2791_vm11, %v2859_v27  ;;  %v5018_v27 = vld [vmem:[%s6968_s11 + $0x40] sm:$0xff]  }
 0x68e   : > { %3092 = vmatmul.mubr.bf16.gmra.mrb[124].mxu1 %v2814_v7  ;;  %4599 = vmatprep.subr.bf16.mxu0 %v5018_v27 }
 0x721   : > { %v3037_v43 = vpop.f32.mrb[96].mxu1 }
 0x722   : > { %v6302_v17 = vadd.f32 %v6299_v53, %v3037_v43  ;;  %v3039_v33 = vpop.f32.mrb[97].mxu1 }
 0x723   : > { %v3040_v13 = vpop.f32.mrb[98].mxu1  ;;  %v5019_v33 = vld [vmem:[%s6968_s11] sm:$0xff]  }
 0x724   : > { %v6305_v15 = vadd.f32 %v6299_v53, %v3040_v13  ;;  %v3042_v44 = vpop.f32.mrb[99].mxu1  ;;  %v3100_v18 = vmax.f32 %v6302_v17, 0.0  ;;  %4600 = vmatpush3.bf16.msra.mxu0 %v5019_v33  ;;  %v5028_v33 = vld [vmem:[%s6968_s11 + $0x68] sm:$0xff]  }
 0x726   : > { %v3101_v23 = vmax.f32 %v6305_v15, 0.0 }
 0x728   : > { %v3116_v51 = vpack.c.bf16 %v3101_v23, %v3100_v18 }
 0x729   : > { %v3045_v2 = vpop.f32.mrb[100].mxu1 }
 0x72a   : > { %v3132_v21 = vrot.slane %v3116_v51, 4  ;;  %v6314_v22 = vadd.f32 %v6299_v53, %v3045_v2  ;;  %v3047_v41 = vpop.f32.mrb[101].mxu1 }
 0x72b   : > { %v3048_v3 = vpop.f32.mrb[102].mxu1 }
 0x72c   : > { %v6317_v28 = vsel %vm1375_vm5, 0, %v3132_v21  ;;  %v6320_v36 = vadd.f32 %v6299_v53, %v3048_v3  ;;  %v3050_v25 = vpop.f32.mrb[103].mxu1  ;;  %v3102_v32 = vmax.f32 %v6314_v22, 0.0  ;;  %v5020_v3 = vld [vmem:[%s6968_s11 + $0x48] sm:$0xff]  }
 0x72d   : > { %3224 = vrot.lane.b32.xlu0 %v6317_v28, %s5052_s21  ;;  %v3152_v60 = vrot.slane %v6317_v28, 4  ;;  %v5021_v25 = vld [vmem:[%s6968_s11 + $0x8] sm:$0xff]   ;;  %4601 = vmatprep.subr.bf16.mxu0 %v5020_v3  ;;  %v5031_v3 = vld [vmem:[%s6968_s11 + $0x30] sm:$0xff]  }
 0x72e   : > { %v3103_v49 = vmax.f32 %v6320_v36, 0.0  ;;  %4602 = vmatpush3.bf16.msra.mxu0 %v5021_v25 }
 0x72f   : > { %v3153_v59 = vsel %vm1375_vm5, %v5320_v58, %v3152_v60 }
 0x730   : > { %v3117_v56 = vpack.c.bf16 %v3103_v49, %v3102_v32 }
 0x731   : > { %3196 = vrot.lane.b32.xlu0 %v6317_v28, %s5047_s22 }
 0x732   : > { %v3133_v34 = vrot.slane %v3117_v56, 4 }
 0x734   : > { %v6333_v37 = vsel %vm1375_vm5, %v3132_v21, %v3133_v34 }
 0x735   : > { %3172 = vrot.lane.b32.xlu0 %v6317_v28, %s5050_s16  ;;  %v3154_v8 = vrot.slane %v6333_v37, 4 }
 0x737   : > { %v6340_v62 = vsel %vm1375_vm5, %v3152_v60, %v3154_v8 }
 0x738   : > { %3164 = vrot.lane.b32.xlu1 %v6340_v62, %s5049_s15 }
 0x739   : > { %3240 = vrot.lane.b32.xlu0 %v3153_v59, %s5045_s20  ;;  %v3053_v6 = vpop.f32.mrb[104].mxu1 }
 0x73a   : > { %v6348_v31 = vadd.f32 %v6299_v53, %v3053_v6  ;;  %v3055_v26 = vpop.f32.mrb[105].mxu1 }
 0x73b   : > { %v3056_v19 = vpop.f32.mrb[106].mxu1  ;;  %v5023_v26 = vld [vmem:[%s6968_s11 + $0x10] sm:$0xff]  }
 0x73c   : > { %v6351_v42 = vadd.f32 %v6299_v53, %v3056_v19  ;;  %v3058_v57 = vpop.f32.mrb[107].mxu1  ;;  %v3104_v10 = vmax.f32 %v6348_v31, 0.0 }
 0x73d   : > { %3210 = vrot.lane.b32.xlu0 %v3153_v59, %s5053_s29 }
 0x73e   : > { %v3105_v14 = vmax.f32 %v6351_v42, 0.0 }
 0x740   : > { %v3118_v39 = vpack.c.bf16 %v3105_v14, %v3104_v10 }
 0x741   : > { %3184 = vrot.lane.b32.xlu0 %v3153_v59, %s5051_s17  ;;  %v3061_v55 = vpop.f32.mrb[108].mxu1 }
 0x742   : > { %v3135_v30 = vrot.slane %v3118_v39, 4  ;;  %v6362_v45 = vadd.f32 %v6299_v53, %v3061_v55  ;;  %v3063_v12 = vpop.f32.mrb[109].mxu1  ;;  %v5024_v55 = vld [vmem:[%s6968_s11 + $0x58] sm:$0xff]  }
 0x743   : > { %v3064_v61 = vpop.f32.mrb[110].mxu1 }
 0x744   : > { %v6365_v40 = vsel %vm1375_vm5, %v3133_v34, %v3135_v30  ;;  %v6368_v52 = vadd.f32 %v6299_v53, %v3064_v61  ;;  %v3066_v38 = vpop.f32.mrb[111].mxu1  ;;  %v3106_v20 = vmax.f32 %v6362_v45, 0.0 }
 0x745   : > { %3162 = vrot.lane.b32.xlu0 %v3153_v59, %s5049_s15  ;;  %v3156_v1 = vrot.slane %v6365_v40, 4  ;;  %v5022_v59 = vld [vmem:[%s6968_s11 + $0x50] sm:$0xff]   ;;  %v5026_v38 = vld [vmem:[%s6968_s11 + $0x60] sm:$0xff]  }
 0x746   : > { %v3107_v29 = vmax.f32 %v6368_v52, 0.0  ;;  %4603 = vmatprep.subr.bf16.mxu0 %v5022_v59 }
 0x747   : > { %v6375_v46 = vsel %vm1375_vm5, %v3154_v8, %v3156_v1  ;;  %4604 = vmatpush3.bf16.msra.mxu0 %v5023_v26  ;;  %v5032_v26 = vld [vmem:[%s6968_s11 + $0x78] sm:$0xff]  }
 0x748   : > { %v3119_v48 = vpack.c.bf16 %v3107_v29, %v3106_v20  ;;  %3188 = vrot.lane.b32.xlu1 %v6375_v46, %s5051_s17  ;;  %4605 = vmatprep.subr.bf16.mxu0 %v5024_v55 }
 0x749   : > { %3174 = vrot.lane.b32.xlu0 %v6333_v37, %s5050_s16  ;;  %v3069_v11 = vpop.f32.mrb[112].mxu1 }
 0x74a   : > { %v3137_v7 = vrot.slane %v3119_v48, 4  ;;  %v3071_v43 = vpop.f32.mrb[113].mxu1  ;;  %v6400_v21 = vadd.f32 %v6299_v53, %v3069_v11  ;;  %v5027_v48 = vld [vmem:[%s6968_s11 + $0x20] sm:$0xff]  }
 0x74b   : > { %v3072_v13 = vpop.f32.mrb[114].mxu1 }
 0x74c   : > { %v6392_v44 = vsel %vm1375_vm5, %v3135_v30, %v3137_v7  ;;  %v6395_v51 = vadd.f32 %v6299_v53, %v3072_v13  ;;  %3166 = vrot.lane.b32.xlu1 %v6375_v46, %s5049_s15  ;;  %v3074_v2 = vpop.f32.mrb[115].mxu1  ;;  %v7001_v60 = vmax.f32 %v6400_v21, 0.0  ;;  %v5025_v30 = vld [vmem:[%s6968_s11 + $0x18] sm:$0xff]   ;;  %v5029_v13 = vld [vmem:[%s6968_s11 + $0x28] sm:$0xff]  }
 0x74d   : > { %3226 = vrot.lane.b32.xlu0 %v6333_v37, %s5052_s21  ;;  %v3158_v41 = vrot.slane %v6392_v44, 4  ;;  %4606 = vmatpush3.bf16.msra.mxu0 %v5025_v30 }
 0x74e   : > { %v3109_v56 = vmax.f32 %v6395_v51, 0.0  ;;  %4607 = vmatprep.subr.bf16.mxu0 %v5026_v38 }
 0x74f   : > { %v6413_v34 = vsel %vm1375_vm5, %v3156_v1, %v3158_v41 }
 0x750   : > { %3216 = vrot.lane.b32.xlu1 %v6413_v34, %s5053_s29  ;;  %v6430_v19 = vpack.c.bf16 %v3109_v56, %v7001_v60 }
 0x751   : > { %3198 = vrot.lane.b32.xlu0 %v6333_v37, %s5047_s22  ;;  %v3077_v8 = vpop.f32.mrb[116].mxu1  ;;  %4608 = vmatpush3.bf16.msra.mxu0 %v5027_v48 }
 0x752   : > { %v3079_v6 = vpop.f32.mrb[117].mxu1  ;;  %v3139_v12 = vrot.slane %v6430_v19, 4  ;;  %4609 = vmatprep.subr.bf16.mxu0 %v5028_v33  ;;  %v5033_v19 = vld [vmem:[%s6968_s11 + $0x38] sm:$0xff]   ;;  %v6493_v30 = vadd.f32 %v6299_v53, %v3077_v8 }
 0x753   : > { %v3080_v57 = vpop.f32.mrb[118].mxu1 }
 0x754   : > { %3190 = vrot.lane.b32.xlu1 %v6413_v34, %s5051_s17  ;;  %v3082_v39 = vpop.f32.mrb[119].mxu1  ;;  %v6454_v27 = vsel %vm1375_vm5, %v3137_v7, %v3139_v12 }
 0x755   : > { %3242 = vrot.lane.b32.xlu0 %v6340_v62, %s5045_s20  ;;  %4610 = vmatpush3.bf16.msra.mxu0 %v5029_v13  ;;  %v3160_v59 = vrot.slane %v6454_v27, 4  ;;  %v6488_v39 = vadd.f32 %v6299_v53, %v3080_v57 }
 0x757   : > { %v3161_v55 = vsel %vm1375_vm5, %v3158_v41, %v3160_v59  ;;  %v3111_v38 = vmax.f32 %v6488_v39, 0.0  ;;  %v5034_v41 = vld [vmem:[%s6968_s11 + $0x80] sm:$0xff]  }
 0x758   : > { %3168 = vrot.lane.b32.xlu1 %v6413_v34, %s5049_s15  ;;  %4818 = vmatprep.subr.bf16.mxu1 %v5034_v41 }
 0x759   : > { %3212 = vrot.lane.b32.xlu0 %v6340_v62, %s5053_s29  ;;  %v3085_v61 = vpop.f32.mrb[120].mxu1  ;;  %4819 = vmatpush3.bf16.msra.mxu1 %v5034_v41 }
 0x75a   : > { %v3087_v1 = vpop.f32.mrb[121].mxu1 }
 0x75b   : > { %v3088_v11 = vpop.f32.mrb[122].mxu1  ;;  %v7000_v1 = vmax.f32 %v6493_v30, 0.0 }
 0x75c   : > { %3232 = vrot.lane.b32.xlu1 %v6454_v27, %s5052_s21  ;;  %v3090_v43 = vpop.f32.mrb[123].mxu1  ;;  %v6514_v48 = vadd.f32 %v6299_v53, %v3088_v11 }
 0x75d   : > { %3186 = vrot.lane.b32.xlu0 %v6340_v62, %s5051_s17  ;;  %v5030_v62 = vld [vmem:[%s6968_s11 + $0x70] sm:$0xff]   ;;  %v3121_v8 = vpack.c.bf16 %v3111_v38, %v7000_v1  ;;  %v6519_v43 = vadd.f32 %v6299_v53, %v3085_v61  ;;  %v5035_v61 = vld [vmem:[%s6968_s11 + $0x88] sm:$0xff]  }
 0x75e   : > { %4611 = vmatprep.subr.bf16.mxu0 %v5030_v62  ;;  %4820 = vmatprep.subr.bf16.mxu1 %v5035_v61 }
 0x75f   : > { %4612 = vmatpush3.bf16.msra.mxu0 %v5031_v3  ;;  %v3141_v57 = vrot.slane %v3121_v8, 4  ;;  %v6999_v11 = vmax.f32 %v6519_v43, 0.0  ;;  %4821 = vmatpush3.bf16.msra.mxu1 %v5035_v61 }
 0x760   : > { %3204 = vrot.lane.b32.xlu1 %v6454_v27, %s5047_s22  ;;  %4613 = vmatprep.subr.bf16.mxu0 %v5032_v26  ;;  %v5036_v26 = vld [vmem:[%s6968_s11 + $0x90] sm:$0xff]  }
 0x761   : > { %3200 = vrot.lane.b32.xlu0 %v6365_v40, %s5047_s22  ;;  %v3093_v7 = vpop.f32.mrb[124].mxu1  ;;  %v6522_v33 = vsel %vm1375_vm5, %v3139_v12, %v3141_v57  ;;  %4822 = vmatprep.subr.bf16.mxu1 %v5036_v26 }
 0x762   : > { %v3095_v2 = vpop.f32.mrb[125].mxu1  ;;  %v3182_v13 = vrot.slane %v6522_v33, 4 }
 0x763   : > { %v3096_v25 = vpop.f32.mrb[126].mxu1  ;;  %4614 = vmatpush3.bf16.msra.mxu0 %v5033_v19  ;;  %4823 = vmatpush3.bf16.msra.mxu1 %v5036_v26 }
 0x764   : > { %3180 = vrot.lane.b32.xlu1 %v6454_v27, %s5050_s16  ;;  %v3098_v6 = vpop.f32.mrb[127].mxu1  ;;  %v3183_v62 = vsel %vm1375_vm5, %v3160_v59, %v3182_v13  ;;  %v6544_v2 = vadd.f32 %v6299_v53, %v3096_v25 }
 0x765   : > { %3176 = vrot.lane.b32.xlu0 %v6365_v40, %s5050_s16  ;;  %v6550_v6 = vadd.f32 %v6299_v53, %v3093_v7 }
 0x766   : > { %v3115_v59 = vmax.f32 %v6544_v2, 0.0 }
 0x768   : > { %3248 = vrot.lane.b32.xlu1 %v3161_v55, %s5045_s20 }
 0x769   : > { %3228 = vrot.lane.b32.xlu0 %v6365_v40, %s5052_s21 }
 0x76c   : > { %3218 = vrot.lane.b32.xlu1 %v3161_v55, %s5053_s29 }
 0x76d   : > { %3244 = vrot.lane.b32.xlu0 %v6375_v46, %s5045_s20 }
 0x770   : > { %3192 = vrot.lane.b32.xlu1 %v3161_v55, %s5051_s17 }
 0x771   : > { %3214 = vrot.lane.b32.xlu0 %v6375_v46, %s5053_s29  ;;  %v3113_v46 = vmax.f32 %v6514_v48, 0.0 }
 0x773   : > { %v3122_v12 = vpack.c.bf16 %v3113_v46, %v6999_v11 }
 0x774   : > { %3170 = vrot.lane.b32.xlu1 %v3161_v55, %s5049_s15 }
 0x775   : > { %3230 = vrot.lane.b32.xlu0 %v6392_v44, %s5052_s21  ;;  %v3143_v3 = vrot.slane %v3122_v12, 4 }
 0x777   : > { %v6560_v25 = vsel %vm1375_vm5, %v3141_v57, %v3143_v3 }
 0x778   : > { %3234 = vrot.lane.b32.xlu1 %v6522_v33, %s5052_s21  ;;  %v3208_v7 = vrot.slane %v6560_v25, 4 }
 0x779   : > { %3202 = vrot.lane.b32.xlu0 %v6392_v44, %s5047_s22 }
 0x77a   : > { %v3209_v55 = vsel %vm1375_vm5, %v3182_v13, %v3208_v7 }
 0x77c   : > { %3206 = vrot.lane.b32.xlu1 %v6522_v33, %s5047_s22 }
 0x77d   : > { %3178 = vrot.lane.b32.xlu0 %v6392_v44, %s5050_s16 }
 0x780   : > { %3250 = vrot.lane.b32.xlu1 %v3183_v62, %s5045_s20 }
 0x781   : > { %3246 = vrot.lane.b32.xlu0 %v6413_v34, %s5045_s20  ;;  %v6998_v34 = vmax.f32 %v6550_v6, 0.0 }
 0x783   : > { %v3123_v53 = vpack.c.bf16 %v3115_v59, %v6998_v34 }
 0x784   : > { %3220 = vrot.lane.b32.xlu1 %v3183_v62, %s5053_s29 }
 0x785   : > { %3267 = vrot.lane.b32.xlu0 %v6522_v33, %s5050_s16  ;;  %v3145_v19 = vrot.slane %v3123_v53, 4 }
 0x787   : > { %v6577_v41 = vsel %vm1375_vm5, %v3143_v3, %v3145_v19  ;;  %v6586_v8 = vsel %vm1375_vm5, %v3145_v19, 0 }
 0x788   : > { %3194 = vrot.lane.b32.xlu1 %v3183_v62, %s5051_s17  ;;  %v3238_v57 = vrot.slane %v6577_v41, 4  ;;  %v3257_v12 = vrot.slane %v6586_v8, 4 }
 0x789   : > { %3284 = vrot.lane.b32.xlu0 %v6560_v25, %s5047_s22 }
 0x78a   : > { %v3239_v13 = vsel %vm1375_vm5, %v3208_v7, %v3238_v57  ;;  %v3275_v26 = vsel %vm1375_vm5, %v3257_v12, %v5320_v58 }
 0x78c   : > { %3259 = vrot.lane.b32.xlu1 %v3183_v62, %s5049_s15  ;;  %v3258_v62 = vsel %vm1375_vm5, %v3238_v57, %v3257_v12 }
 0x78d   : > { %3261 = vrot.lane.b32.xlu0 %v3209_v55, %s5049_s15 }
 0x790   : > { %3236 = vrot.lane.b32.xlu1 %v6560_v25, %s5052_s21 }
 0x791   : > { %3296 = vrot.lane.b32.xlu0 %v6577_v41, %s5052_s21 }
 0x794   : > { %3269 = vrot.lane.b32.xlu1 %v6560_v25, %s5050_s16 }
 0x795   : > { %3271 = vrot.lane.b32.xlu0 %v6577_v41, %s5050_s16 }
 0x798   : > { %3252 = vrot.lane.b32.xlu1 %v3209_v55, %s5045_s20 }
 0x799   : > { %3288 = vrot.lane.b32.xlu0 %v6586_v8, %s5047_s22 }
 0x79c   : > { %3222 = vrot.lane.b32.xlu1 %v3209_v55, %s5053_s29 }
 0x79d   : > { %3278 = vrot.lane.b32.xlu0 %v3239_v13, %s5051_s17 }
 0x79f   : > { %v6596_v61 = vpop.permute.xlu0 %3224 }
 0x7a0   : > { %3276 = vrot.lane.b32.xlu1 %v3209_v55, %s5051_s17 }
 0x7a1   : > { %3292 = vrot.lane.b32.xlu0 %v3258_v62, %s5053_s29 }
 0x7a3   : > { %v3197_v3 = vpop.permute.xlu0 %3196 }
 0x7a4   : > { %3286 = vrot.lane.b32.xlu1 %v6577_v41, %s5047_s22 }
 0x7a5   : > { %3302 = vrot.lane.b32.xlu0 %v3275_v26, %s5045_s20 }
 0x7a7   : > { %v3173_v53 = vpop.permute.xlu0 %3172 }
 0x7a8   : > { %3298 = vrot.lane.b32.xlu1 %v6586_v8, %s5052_s21 }
 0x7a9   : > { %3280 = vrot.lane.b32.xlu0 %v3258_v62, %s5051_s17 }
 0x7aa   : > { %v3165_v34 = vpop.permute.xlu1 %3164 }
 0x7ab   : > { %v6609_v7 = vpop.permute.xlu0 %3240 }
 0x7ac   : > { %3254 = vrot.lane.b32.xlu1 %v3239_v13, %s5045_s20 }
 0x7ad   : > { %3304 = vrot.lane.b32.xlu0 %v5320_v58, %s5045_s20 }
 0x7af   : > { %v6614_v19 = vpop.permute.xlu0 %3210 }
 0x7b0   : > { %3290 = vrot.lane.b32.xlu1 %v3239_v13, %s5053_s29 }
 0x7b1   : > { %3282 = vrot.lane.b32.xlu0 %v3275_v26, %s5051_s17 }
 0x7b3   : > { %v3185_v55 = vpop.permute.xlu0 %3184 }
 0x7b4   : > { %v3330_v57 = vsel %vm2724_vm8, %v6147_v47, %v3185_v55  ;;  %3300 = vrot.lane.b32.xlu1 %v3258_v62, %s5045_s20 }
 0x7b5   : > { %3870 = vrot.lane.b32.xlu0 %v3101_v23, %s5049_s15  ;;  %v3342_v12 = vsel %vm1342_vm4, %v3330_v57, %v3197_v3 }
 0x7b7   : > { %v3163_v58 = vpop.permute.xlu0 %3162 }
 0x7b8   : > { %v3307_v11 = vsel %vm2690_vm6, 0, %v3163_v58  ;;  %3273 = vrot.lane.b32.xlu1 %v6586_v8, %s5050_s16 }
 0x7b9   : > { %v3320_v1 = vsel %vm2709_vm7, %v3307_v11, %v3173_v53  ;;  %3874 = vrot.lane.b32.xlu0 %v3103_v49, %s5049_s15  ;;  %v7015_v53 = vmax.f32 %v6519_v43, 0.0  ;;  %v7016_v43 = vmax.f32 %v6550_v6, 0.0 }
 0x7ba   : > { %v3189_v55 = vpop.permute.xlu1 %3188 }
 0x7bb   : > { %v3175_v60 = vpop.permute.xlu0 %3174 }
 0x7bc   : > { %3263 = vrot.lane.b32.xlu1 %v3239_v13, %s5049_s15 }
 0x7bd   : > { %3878 = vrot.lane.b32.xlu0 %v3105_v14, %s5049_s15 }
 0x7be   : > { %v3167_v15 = vpop.permute.xlu1 %3166 }
 0x7bf   : > { %v3227_v23 = vpop.permute.xlu0 %3226 }
 0x7c0   : > { %3265 = vrot.lane.b32.xlu1 %v3258_v62, %s5049_s15 }
 0x7c1   : > { %3882 = vrot.lane.b32.xlu0 %v3107_v29, %s5049_s15 }
 0x7c2   : > { %v3217_v11 = vpop.permute.xlu1 %3216 }
 0x7c3   : > { %v3199_v3 = vpop.permute.xlu0 %3198 }
 0x7c4   : > { %3294 = vrot.lane.b32.xlu1 %v3275_v26, %s5053_s29 }
 0x7c5   : > { %3886 = vrot.lane.b32.xlu0 %v3109_v56, %s5049_s15 }
 0x7c6   : > { %v3191_v36 = vpop.permute.xlu1 %3190 }
 0x7c7   : > { %v6644_v49 = vpop.permute.xlu0 %3242 }
 0x7c8   : > { %3466 = vrot.lane.b32.xlu1 %v3275_v26, %s5049_s15 }
 0x7c9   : > { %3890 = vrot.lane.b32.xlu0 %v3111_v38, %s5049_s15 }
 0x7ca   : > { %v6650_v42 = vpop.permute.xlu1 %3168 }
 0x7cb   : > { %v3213_v14 = vpop.permute.xlu0 %3212 }
 0x7cc   : > { %v3357_v52 = vsel %vm2757_vm9, %v3342_v12, %v3213_v14  ;;  %3868 = vrot.lane.b32.xlu1 %v3100_v18, %s5049_s15 }
 0x7cd   : > { %3894 = vrot.lane.b32.xlu0 %v3113_v46, %s5049_s15  ;;  %v6660_v29 = vsel %vm2774_vm10, %v3357_v52, %v3227_v23  ;;  %v7013_v46 = vmax.f32 %v6400_v21, 0.0 }
 0x7ce   : > { %v3233_v51 = vpop.permute.xlu1 %3232 }
 0x7cf   : > { %v3187_v56 = vpop.permute.xlu0 %3186 }
 0x7d0   : > { %v3332_v39 = vsel %vm2724_vm8, %v3320_v1, %v3187_v56  ;;  %3872 = vrot.lane.b32.xlu1 %v3102_v32, %s5049_s15 }
 0x7d1   : > { %3898 = vrot.lane.b32.xlu0 %v3115_v59, %s5049_s15  ;;  %v3344_v17 = vsel %vm1342_vm4, %v3332_v39, %v3199_v3  ;;  %v3309_v59 = vsel %vm2690_vm6, %v6317_v28, %v3165_v34  ;;  %v3312_v34 = vsel %vm2690_vm6, %v6333_v37, %v3167_v15 }
 0x7d2   : > { %v6670_v18 = vpop.permute.xlu1 %3204  ;;  %v3322_v31 = vsel %vm2709_vm7, %v3309_v59, %v3175_v60  ;;  %v3353_v60 = vsel %vm2757_vm9, %v6164_v24, %v6274_v63 }
 0x7d3   : > { %v3201_v38 = vpop.permute.xlu0 %3200  ;;  %v3368_v23 = vsel %vm2774_vm10, %v3353_v60, %v6251_v35 }
 0x7d4   : > { %3876 = vrot.lane.b32.xlu1 %v3104_v10, %s5049_s15  ;;  %v7014_v10 = vmax.f32 %v6493_v30, 0.0  ;;  %v3384_v37 = vsel %vm2791_vm11, %v3368_v23, %v6609_v7 }
 0x7d6   : > { %v6675_v48 = vpop.permute.xlu1 %3180 }
 0x7d7   : > { %v3177_v1 = vpop.permute.xlu0 %3176 }
 0x7d8   : > { %3880 = vrot.lane.b32.xlu1 %v3106_v20, %s5049_s15  ;;  %v3334_v20 = vsel %vm2724_vm8, %v3322_v31, %v3189_v55  ;;  %v3324_v58 = vsel %vm2709_vm7, %v3312_v34, %v3177_v1 }
 0x7d9   : > { %v3346_v26 = vsel %vm1342_vm4, %v3334_v20, %v3201_v38 }
 0x7da   : > { %v3249_v22 = vpop.permute.xlu1 %3248  ;;  %v3361_v57 = vsel %vm2757_vm9, %v3346_v26, %v3217_v11  ;;  %v3336_v11 = vsel %vm2724_vm8, %v3324_v58, %v3191_v36 }
 0x7db   : > { %v3229_v32 = vpop.permute.xlu0 %3228 }
 0x7dc   : > { %3884 = vrot.lane.b32.xlu1 %v7013_v46, %s5049_s15 }
 0x7de   : > { %v3219_v2 = vpop.permute.xlu1 %3218 }
 0x7df   : > { %v6685_v13 = vpop.permute.xlu0 %3244 }
 0x7e0   : > { %3888 = vrot.lane.b32.xlu1 %v7014_v10, %s5049_s15 }
 0x7e2   : > { %v3193_v45 = vpop.permute.xlu1 %3192 }
 0x7e3   : > { %v3215_v62 = vpop.permute.xlu0 %3214 }
 0x7e4   : > { %v3359_v21 = vsel %vm2757_vm9, %v3344_v17, %v3215_v62  ;;  %3892 = vrot.lane.b32.xlu1 %v7015_v53, %s5049_s15  ;;  %v3355_v17 = vsel %vm2757_vm9, %v6164_v24, %v6614_v19 }
 0x7e5   : > { %v6698_v28 = vsel %vm2774_vm10, %v3359_v21, %v3229_v32  ;;  %v3370_v36 = vsel %vm2774_vm10, %v3355_v17, %v6596_v61 }
 0x7e6   : > { %v3171_v30 = vpop.permute.xlu1 %3170  ;;  %v3387_v32 = vsel %vm2791_vm11, %v3370_v36, %v6644_v49 }
 0x7e7   : > { %v3231_v12 = vpop.permute.xlu0 %3230 }
 0x7e8   : > { %v3376_v55 = vsel %vm2774_vm10, %v3361_v57, %v3231_v12  ;;  %3896 = vrot.lane.b32.xlu1 %v7016_v43, %s5049_s15  ;;  %s4270_s15 = sshll.u32 %s7045_s26, 7 }
 0x7e9   : > { %v6714_v3 = vsel %vm2791_vm11, %v3376_v55, %v3249_v22  ;;  %v3318_v55 = vsel %vm2690_vm6, %v6392_v44, %v3171_v30 }
 0x7ea   : > { %v3235_v15 = vpop.permute.xlu1 %3234  ;;  %3674 = vmatprep.mubr.bf16.mxu0 %v6714_v3  ;;  %v3328_v43 = vsel %vm2709_vm7, %v3318_v55, %v6675_v48 }
 0x7eb   : > { %3675 = vmatmul.mubr.bf16.vlgmr.msra.gmra.mrb[112].mxu0 %v3384_v37  ;;  %v3203_v14 = vpop.permute.xlu0 %3202 }
 0x7ec   : > { %v3348_v52 = vsel %vm1342_vm4, %v3336_v11, %v3203_v14 }
 0x7ed   : > { %v3363_v56 = vsel %vm2757_vm9, %v3348_v52, %v3219_v2 }
 0x7ee   : > { %v3207_v6 = vpop.permute.xlu1 %3206  ;;  %v3378_v7 = vsel %vm2774_vm10, %v3363_v56, %v3233_v51  ;;  %v3315_v51 = vsel %vm2690_vm6, %v6365_v40, %v6650_v42 }
 0x7ef   : > { %v3179_v39 = vpop.permute.xlu0 %3178 }
 0x7f0   : > { %v3326_v61 = vsel %vm2709_vm7, %v3315_v51, %v3179_v39 }
 0x7f1   : > { %v3338_v62 = vsel %vm2724_vm8, %v3326_v61, %v3193_v45 }
 0x7f2   : > { %v3251_v38 = vpop.permute.xlu1 %3250  ;;  %v3350_v21 = vsel %vm1342_vm4, %v3338_v62, %v6670_v18 }
 0x7f3   : > { %v3247_v1 = vpop.permute.xlu0 %3246  ;;  %v6727_v22 = vsel %vm2791_vm11, %v3378_v7, %v3251_v38 }
 0x7f4   : > { %3682 = vmatprep.mubr.bf16.mxu0 %v6727_v22  ;;  %v3393_v48 = vsel %vm2791_vm11, %v6698_v28, %v3247_v1 }
 0x7f5   : > { %3683 = vmatmul.mubr.bf16.gmra.mrb[116].mxu0 %v3387_v32 }
 0x7f6   : > { %v3221_v46 = vpop.permute.xlu1 %3220 }
 0x7f7   : > { %v3268_v2 = vpop.permute.xlu0 %3267 }
 0x7fa   : > { %v3195_v59 = vpop.permute.xlu1 %3194 }
 0x7fb   : > { %v3285_v24 = vpop.permute.xlu0 %3284 }
 0x7fe   : > { %v3260_v19 = vpop.permute.xlu1 %3259 }
 0x7ff   : > { %v3409_v31 = vsel %vm2690_vm6, %v6454_v27, %v3260_v19  ;;  %v3262_v10 = vpop.permute.xlu0 %3261  ;;  %v3365_v27 = vsel %vm2757_vm9, %v3350_v21, %v3221_v46 }
 0x800   : > { %v3420_v20 = vsel %vm2709_vm7, %v3409_v31, %v3268_v2  ;;  %v3412_v40 = vsel %vm2690_vm6, %v6522_v33, %v3262_v10  ;;  %v3380_v57 = vsel %vm2774_vm10, %v3365_v27, %v3235_v15  ;;  %v3390_v33 = vsel %vm2791_vm11, %v6660_v29, %v6685_v13 }
 0x801   : > { %4824 = vmatprep.mubr.msk.bf16.mxu1 %vm2724_vm8, %v3420_v20  ;;  %v3340_v15 = vsel %vm2724_vm8, %v3328_v43, %v3195_v59 }
 0x802   : > { %v3237_v49 = vpop.permute.xlu1 %3236  ;;  %v3352_v11 = vsel %vm1342_vm4, %v3340_v15, %v3207_v6  ;;  %v6818_v15 = vld [vmem:[%s6969_s12] ss:$0 sm:$0xff] }
 0x803   : > { %v3297_v26 = vpop.permute.xlu0 %3296 }
 0x806   : > { %v3270_v42 = vpop.permute.xlu1 %3269 }
 0x807   : > { %v3422_v53 = vsel %vm2709_vm7, %v3412_v40, %v3270_v42  ;;  %v3272_v60 = vpop.permute.xlu0 %3271 }
 0x808   : > { %4825 = vmatmul.mubr.msk.bf16.vlgmr.msra.gmra.mrb[128].mxu1 %vm2724_vm8, %v3422_v53 }
 0x80a   : > { %v3253_v34 = vpop.permute.xlu1 %3252 }
 0x80b   : > { %v6752_v45 = vsel %vm2791_vm11, %v3380_v57, %v3253_v34  ;;  %v3289_v12 = vpop.permute.xlu0 %3288 }
 0x80c   : > { %3690 = vmatprep.mubr.bf16.mxu0 %v6752_v45 }
 0x80d   : > { %3691 = vmatmul.mubr.bf16.gmra.mrb[120].mxu0 %v3390_v33 }
 0x80e   : > { %v3223_v18 = vpop.permute.xlu1 %3222 }
 0x80f   : > { %v3279_v23 = vpop.permute.xlu0 %3278  ;;  %v3367_v52 = vsel %vm2757_vm9, %v3352_v11, %v3223_v18 }
 0x810   : > { %v3382_v56 = vsel %vm2774_vm10, %v3367_v52, %v3237_v49  ;;  %v3430_v30 = vsel %vm2724_vm8, %v3422_v53, %v3279_v23 }
 0x812   : > { %v3277_v58 = vpop.permute.xlu1 %3276 }
 0x813   : > { %v3293_v29 = vpop.permute.xlu0 %3292  ;;  %v3428_v39 = vsel %vm2724_vm8, %v3420_v20, %v3277_v58 }
 0x814   : > { %v3436_v7 = vsel %vm1342_vm4, %v3428_v39, %v3285_v24 }
 0x816   : > { %v3287_v37 = vpop.permute.xlu1 %3286 }
 0x817   : > { %v3438_v6 = vsel %vm1342_vm4, %v3430_v30, %v3287_v37  ;;  %v3303_v17 = vpop.permute.xlu0 %3302 }
 0x818   : > { %v3445_v32 = vsel %vm2757_vm9, %v3438_v6, %v3293_v29 }
 0x81a   : > { %v3299_v14 = vpop.permute.xlu1 %3298 }
 0x81b   : > { %v3452_v46 = vsel %vm2774_vm10, %v3445_v32, %v3299_v14  ;;  %v3281_v1 = vpop.permute.xlu0 %3280 }
 0x81c   : > { %v3459_v19 = vsel %vm2791_vm11, %v3452_v46, %v3303_v17 }
 0x81e   : > { %v3255_v13 = vpop.permute.xlu1 %3254 }
 0x81f   : > { %v3405_v44 = vsel %vm2791_vm11, %v3382_v56, %v3255_v13  ;;  %v3305_v24 = vpop.permute.xlu0 %3304 }
 0x820   : > { %3698 = vmatprep.mubr.bf16.mxu0 %v3405_v44 }
 0x821   : > { %3699 = vmatmul.mubr.bf16.gmra.mrb[124].mxu0 %v3393_v48 }
 0x822   : > { %v3291_v38 = vpop.permute.xlu1 %3290 }
 0x823   : > { %v3443_v36 = vsel %vm2757_vm9, %v3436_v7, %v3291_v38  ;;  %v3283_v62 = vpop.permute.xlu0 %3282 }
 0x824   : > { %v3450_v59 = vsel %vm2774_vm10, %v3443_v36, %v3297_v26 }
 0x826   : > { %v3301_v2 = vpop.permute.xlu1 %3300 }
 0x827   : > { %v3456_v28 = vsel %vm2791_vm11, %v3450_v59, %v3301_v2 }
 0x828   : > { %3706 = vmatprep.mubr.bf16.mxu0 %v3456_v28 }
 0x829   : > { %3707 = vmatmul.mubr.bf16.gmra.mrb[128].mxu0 %v6714_v3 }
 0x82a   : > { %v3274_v51 = vpop.permute.xlu1 %3273  ;;  %3714 = vmatprep.mubr.bf16.mxu0 %v3459_v19 }
 0x82e   : > { %v3264_v31 = vpop.permute.xlu1 %3263 }
 0x82f   : > { %v3415_v10 = vsel %vm2690_vm6, %v6560_v25, %v3264_v31 }
 0x830   : > { %v3424_v61 = vsel %vm2709_vm7, %v3415_v10, %v3272_v60 }
 0x831   : > { %3715 = vmatmul.mubr.bf16.gmra.mrb[132].mxu0 %v6727_v22  ;;  %4828 = vmatprep.mubr.msk.bf16.mxu1 %vm2724_vm8, %v3424_v61  ;;  %v3432_v49 = vsel %vm2724_vm8, %v3424_v61, %v3281_v1 }
 0x832   : > { %v3266_v20 = vpop.permute.xlu1 %3265  ;;  %v3440_v22 = vsel %vm1342_vm4, %v3432_v49, %v3289_v12 }
 0x833   : > { %v3418_v3 = vsel %vm2690_vm6, %v6577_v41, %v3266_v20 }
 0x834   : > { %v3426_v26 = vsel %vm2709_vm7, %v3418_v3, %v3274_v51 }
 0x835   : > { %v3434_v21 = vsel %vm2724_vm8, %v3426_v26, %v3283_v62  ;;  %4829 = vmatmul.mubr.msk.bf16.gmra.mrb[132].mxu1 %vm2724_vm8, %v3426_v26 }
 0x836   : > { %v3441_v25 = vsel %vm1342_vm4, %v3434_v21, %v6092_v5  ;;  %v3295_v40 = vpop.permute.xlu1 %3294 }
 0x837   : > { %v3447_v42 = vsel %vm2757_vm9, %v3440_v22, %v3295_v40  ;;  %v3448_v27 = vsel %vm2757_vm9, %v3441_v25, %v6274_v63 }
 0x838   : > { %v3453_v41 = vsel %vm2774_vm10, %v3447_v42, %v6251_v35  ;;  %v3454_v53 = vsel %vm2774_vm10, %v3448_v27, %v6251_v35 }
 0x839   : > { %v3462_v60 = vsel %vm2791_vm11, %v3453_v41, %v3305_v24  ;;  %v3464_v57 = vsel %vm2791_vm11, %v3454_v53, %v3305_v24 }
 0x83a   : > { %v3467_v34 = vpop.permute.xlu1 %3466  ;;  %3722 = vmatprep.mubr.bf16.mxu0 %v3462_v60 }
 0x83b   : > { %v3469_v5 = vsel %vm2690_vm6, %v6586_v8, %v3467_v34  ;;  %3723 = vmatmul.mubr.bf16.gmra.mrb[136].mxu0 %v6752_v45 }
 0x83c   : > { %3730 = vmatprep.mubr.bf16.mxu0 %v3464_v57  ;;  %v3470_v63 = vsel %vm2709_vm7, %v3469_v5, %v6077_v0 }
 0x83d   : > { %4832 = vmatprep.mubr.msk.bf16.mxu1 %vm2724_vm8, %v3470_v63 }
 0x83e   : > { %4833 = vmatmul.mubr.msk.bf16.gmra.mrb[136].mxu1 %vm2724_vm8, %v6147_v47 }
 0x83f   : > { %4836 = vmatprep.mubr.msk.bf16.mxu1 %vm2724_vm8, %v6147_v47 }
 0x843   : > { %3731 = vmatmul.mubr.bf16.gmra.mrb[140].mxu0 %v3405_v44 }
 0x846   : > { %4837 = vmatmul.mubr.msk.bf16.gmra.mrb[140].mxu1 %vm2724_vm8, %v6147_v47 }
 0x8be   : > { %v4615_v35 = vpop.f32.mrb[112].mxu0 }
 0x8bf   : > { %v4616_v8 = vpop.f32.mrb[113].mxu0 }
 0x8c0   : > { %v4617_v45 = vadd.f32 %v4616_v8, %v4615_v35  ;;  %v4618_v33 = vpop.f32.mrb[114].mxu0 }
 0x8c1   : > { %v4619_v18 = vpop.f32.mrb[115].mxu0 }
 0x8c2   : > { %v4620_v12 = vadd.f32 %v4619_v18, %v4618_v33  ;;  %v3677_v14 = vadd.f32 %v4617_v45, %v6818_v15 }
 0x8c4   : > { %v3680_v44 = vadd.f32 %v4620_v12, %v6818_v15 }
 0x8c8   : > { %v4621_v58 = vpop.f32.mrb[116].mxu0 }
 0x8c9   : > { %v4622_v0 = vpop.f32.mrb[117].mxu0 }
 0x8ca   : > { %v4623_v55 = vadd.f32 %v4622_v0, %v4621_v58  ;;  %v4624_v43 = vpop.f32.mrb[118].mxu0 }
 0x8cb   : > { %v4625_v23 = vpop.f32.mrb[119].mxu0 }
 0x8cc   : > { %v4626_v37 = vadd.f32 %v4625_v23, %v4624_v43  ;;  %v3685_v11 = vadd.f32 %v4623_v55, %v6818_v15 }
 0x8ce   : > { %v3688_v13 = vadd.f32 %v4626_v37, %v6818_v15 }
 0x8db   : > { %v4826_v47 = vpop.f32.mrb[128].mxu1 }
 0x8dc   : > { %v3782_v52 = vadd.f32 %v4826_v47, %v3685_v11  ;;  %v3773_v29 = vpop.f32.mrb[129].mxu1 }
 0x8dd   : > { %v3774_v56 = vadd.f32 %v3773_v29, %v3677_v14  ;;  %v4827_v39 = vpop.f32.mrb[130].mxu1 }
 0x8de   : > { %v3838_v48 = vmax.f32 %v3782_v52, 0.0  ;;  %v3785_v30 = vadd.f32 %v4827_v39, %v3688_v13  ;;  %v3776_v6 = vpop.f32.mrb[131].mxu1 }
 0x8df   : > { %v3777_v17 = vadd.f32 %v3776_v6, %v3680_v44  ;;  %v3836_v32 = vmax.f32 %v3774_v56, 0.0 }
 0x8e0   : > { %v3839_v38 = vmax.f32 %v3785_v30, 0.0  ;;  %v4627_v7 = vpop.f32.mrb[120].mxu0  ;;  %3936 = vrot.lane.b32.xlu1 %v3838_v48, %s5050_s16 }
 0x8e1   : > { %v4628_v36 = vpop.f32.mrb[121].mxu0  ;;  %v3837_v28 = vmax.f32 %v3777_v17, 0.0 }
 0x8e2   : > { %v4629_v46 = vadd.f32 %v4628_v36, %v4627_v7  ;;  %v4630_v2 = vpop.f32.mrb[122].mxu0  ;;  %3938 = vrot.lane.b32.xlu0 %v3839_v38, %s5050_s16 }
 0x8e3   : > { %v4631_v59 = vpop.f32.mrb[123].mxu0 }
 0x8e4   : > { %v4632_v1 = vadd.f32 %v4631_v59, %v4630_v2  ;;  %3932 = vrot.lane.b32.xlu1 %v3836_v32, %s5050_s16  ;;  %v3693_v34 = vadd.f32 %v4629_v46, %v6818_v15 }
 0x8e6   : > { %3934 = vrot.lane.b32.xlu0 %v3837_v28, %s5050_s16  ;;  %v3696_v45 = vadd.f32 %v4632_v1, %v6818_v15 }
 0x8f4   : > { %v4633_v19 = vpop.f32.mrb[124].mxu0 }
 0x8f5   : > { %v4634_v51 = vpop.f32.mrb[125].mxu0 }
 0x8f6   : > { %v4635_v24 = vadd.f32 %v4634_v51, %v4633_v19  ;;  %v4636_v31 = vpop.f32.mrb[126].mxu0 }
 0x8f7   : > { %v4637_v10 = vpop.f32.mrb[127].mxu0 }
 0x8f8   : > { %v4638_v61 = vadd.f32 %v4637_v10, %v4636_v31  ;;  %v3701_v41 = vadd.f32 %v4635_v24, %v6818_v15 }
 0x8fa   : > { %v3704_v63 = vadd.f32 %v4638_v61, %v6818_v15 }
 0x8fc   : > { %v4639_v20 = vpop.f32.mrb[128].mxu0 }
 0x8fd   : > { %v4640_v49 = vpop.f32.mrb[129].mxu0 }
 0x8fe   : > { %v4641_v3 = vadd.f32 %v4640_v49, %v4639_v20  ;;  %v4642_v62 = vpop.f32.mrb[130].mxu0 }
 0x8ff   : > { %v4643_v26 = vpop.f32.mrb[131].mxu0 }
 0x900   : > { %v4644_v21 = vadd.f32 %v4643_v26, %v4642_v62  ;;  %v3709_v29 = vadd.f32 %v4641_v3, %v6818_v15 }
 0x902   : > { %v3712_v17 = vadd.f32 %v4644_v21, %v6818_v15 }
 0x904   : > { %v4645_v25 = vpop.f32.mrb[132].mxu0 }
 0x905   : > { %v4646_v40 = vpop.f32.mrb[133].mxu0 }
 0x906   : > { %v4647_v22 = vadd.f32 %v4646_v40, %v4645_v25  ;;  %v4648_v42 = vpop.f32.mrb[134].mxu0 }
 0x907   : > { %v4649_v27 = vpop.f32.mrb[135].mxu0 }
 0x908   : > { %v4650_v53 = vadd.f32 %v4649_v27, %v4648_v42  ;;  %v4830_v60 = vpop.f32.mrb[132].mxu1  ;;  %v3717_v47 = vadd.f32 %v4647_v22, %v6818_v15 }
 0x909   : > { %v3798_v5 = vadd.f32 %v4830_v60, %v3701_v41  ;;  %v3789_v57 = vpop.f32.mrb[133].mxu1 }
 0x90a   : > { %v3790_v35 = vadd.f32 %v3789_v57, %v3693_v34  ;;  %v4831_v8 = vpop.f32.mrb[134].mxu1  ;;  %v3720_v48 = vadd.f32 %v4650_v53, %v6818_v15  ;;  %v3869_v34 = vpop.permute.xlu1 %3868 }
 0x90b   : > { %v3801_v33 = vadd.f32 %v4831_v8, %v3704_v63  ;;  %v3792_v18 = vpop.f32.mrb[135].mxu1  ;;  %v3842_v23 = vmax.f32 %v3798_v5, 0.0 }
 0x90c   : > { %v3840_v12 = vmax.f32 %v3790_v35, 0.0  ;;  %v3793_v58 = vadd.f32 %v3792_v18, %v3696_v45 }
 0x90d   : > { %v3843_v13 = vmax.f32 %v3801_v33, 0.0 }
 0x90e   : > { %v3841_v0 = vmax.f32 %v3793_v58, 0.0  ;;  %3940 = vrot.lane.b32.xlu1 %v3840_v12, %s5050_s16  ;;  %v4651_v55 = vpop.f32.mrb[136].mxu0  ;;  %v3873_v5 = vpop.permute.xlu1 %3872 }
 0x90f   : > { %v4652_v43 = vpop.f32.mrb[137].mxu0 }
 0x910   : > { %v4653_v37 = vadd.f32 %v4652_v43, %v4651_v55  ;;  %3942 = vrot.lane.b32.xlu0 %v3841_v0, %s5050_s16  ;;  %v4654_v11 = vpop.f32.mrb[138].mxu0 }
 0x911   : > { %v4655_v14 = vpop.f32.mrb[139].mxu0  ;;  %v4834_v52 = vpop.f32.mrb[136].mxu1 }
 0x912   : > { %v4656_v56 = vadd.f32 %v4655_v14, %v4654_v11  ;;  %v3814_v39 = vadd.f32 %v4834_v52, %v3717_v47  ;;  %v3805_v44 = vpop.f32.mrb[137].mxu1  ;;  %3944 = vrot.lane.b32.xlu1 %v3842_v23, %s5050_s16  ;;  %v3725_v31 = vadd.f32 %v4653_v37, %v6818_v15  ;;  %v3877_v63 = vpop.permute.xlu1 %3876  ;;  %v7017_v37 = vmax.f32 %v5804_v54, 0.0 }
 0x913   : > { %v3806_v30 = vadd.f32 %v3805_v44, %v3709_v29  ;;  %v4835_v6 = vpop.f32.mrb[138].mxu1  ;;  %v7018_v52 = vmax.f32 %v5810_v16, 0.0  ;;  %v7019_v54 = vmax.f32 %v5807_v9, 0.0  ;;  %v7020_v16 = vmax.f32 %v5813_v4, 0.0 }
 0x914   : > { %v3817_v38 = vadd.f32 %v4835_v6, %v3720_v48  ;;  %v3808_v7 = vpop.f32.mrb[139].mxu1  ;;  %3946 = vrot.lane.b32.xlu0 %v3843_v13, %s5050_s16  ;;  %v3846_v19 = vmax.f32 %v3814_v39, 0.0  ;;  %v3728_v26 = vadd.f32 %v4656_v56, %v6818_v15  ;;  %v3982_v11 = vsel %vm2690_vm6, %v7017_v37, %v3873_v5  ;;  %v7034_v5 = vld [vmem:[#allocation7_spill] sm:$0xff] }
 0x915   : > { %v3844_v36 = vmax.f32 %v3806_v30, 0.0  ;;  %v3809_v32 = vadd.f32 %v3808_v7, %v3712_v17  ;;  %v3980_v39 = vsel %vm2690_vm6, %v7019_v54, %v3869_v34  ;;  %v7021_v9 = vmax.f32 %v5833_v50, 0.0 }
 0x916   : > { %v4657_v46 = vpop.f32.mrb[140].mxu0  ;;  %v3847_v49 = vmax.f32 %v3817_v38, 0.0  ;;  %v3881_v8 = vpop.permute.xlu1 %3880 }
 0x917   : > { %v3845_v2 = vmax.f32 %v3809_v32, 0.0  ;;  %3948 = vrot.lane.b32.xlu1 %v3844_v36, %s5050_s16  ;;  %v4658_v59 = vpop.f32.mrb[141].mxu0  ;;  %v3984_v38 = vsel %vm2690_vm6, %v7021_v9, %v3877_v63  ;;  %v7022_v32 = vld [vmem:[#allocation4_spill] sm:$0xff] }
 0x918   : > { %v4659_v28 = vadd.f32 %v4658_v59, %v4657_v46  ;;  %v4660_v1 = vpop.f32.mrb[142].mxu0  ;;  %v7023_v4 = vmax.f32 %v7022_v32, 0.0 }
 0x919   : > { %v4838_v51 = vpop.f32.mrb[140].mxu1  ;;  %3950 = vrot.lane.b32.xlu0 %v3845_v2, %s5050_s16  ;;  %v4661_v24 = vpop.f32.mrb[143].mxu0 }
 0x91a   : > { %v3733_v10 = vadd.f32 %v4659_v28, %v6818_v15  ;;  %v4662_v61 = vadd.f32 %v4661_v24, %v4660_v1  ;;  %v3821_v20 = vpop.f32.mrb[141].mxu1  ;;  %v3885_v33 = vpop.permute.xlu1 %3884  ;;  %v7024_v28 = vld [vmem:[#allocation2_spill] sm:$0xff]  ;;  %v7026_v24 = vld [vmem:[#allocation3_spill] sm:$0xff] }
 0x91b   : > { %v3822_v3 = vadd.f32 %v3821_v20, %v3725_v31  ;;  %v4839_v62 = vpop.f32.mrb[142].mxu1  ;;  %3952 = vrot.lane.b32.xlu1 %v3846_v19, %s5050_s16  ;;  %v7025_v1 = vmax.f32 %v7024_v28, 0.0  ;;  %v7027_v31 = vmax.f32 %v7026_v24, 0.0 }
 0x91c   : > { %v3830_v21 = vadd.f32 %v4838_v51, %v3733_v10  ;;  %v3736_v25 = vadd.f32 %v4662_v61, %v6818_v15  ;;  %v3824_v40 = vpop.f32.mrb[143].mxu1  ;;  %v3871_v15 = vpop.permute.xlu0 %3870 }
 0x91d   : > { %v3848_v22 = vmax.f32 %v3822_v3, 0.0  ;;  %v3825_v42 = vadd.f32 %v3824_v40, %v3728_v26  ;;  %3954 = vrot.lane.b32.xlu0 %v3847_v49, %s5050_s16  ;;  %v3981_v30 = vsel %vm2690_vm6, %v7020_v16, %v3871_v15  ;;  %v3986_v50 = vsel %vm2690_vm6, %v7025_v1, %v3881_v8  ;;  %v7028_v49 = vld [vmem:[#allocation6_spill] sm:$0xff] }
 0x91e   : > { %v3833_v27 = vadd.f32 %v4839_v62, %v3736_v25  ;;  %v3850_v53 = vmax.f32 %v3830_v21, 0.0  ;;  %v3889_v12 = vpop.permute.xlu1 %3888  ;;  %v7029_v3 = vmax.f32 %v7028_v49, 0.0  ;;  %v7030_v25 = vld [vmem:[#allocation8_spill] sm:$0xff] }
 0x91f   : > { %v3849_v41 = vmax.f32 %v3825_v42, 0.0  ;;  %3956 = vrot.lane.b32.xlu1 %v3848_v22, %s5050_s16  ;;  %v7031_v40 = vmax.f32 %v7030_v25, 0.0 }
 0x920   : > { %v3851_v60 = vmax.f32 %v3833_v27, 0.0  ;;  %v3875_v57 = vpop.permute.xlu0 %3874  ;;  %v3988_v62 = vsel %vm2690_vm6, %v7029_v3, %v3885_v33 }
 0x921   : > { %3958 = vrot.lane.b32.xlu0 %v3849_v41, %s5050_s16  ;;  %v3983_v29 = vsel %vm2690_vm6, %v7018_v52, %v3875_v57  ;;  %v7032_v41 = vld [vmem:[#allocation5_spill] sm:$0xff]  ;;  %v7035_v57 = vmax.f32 %v7034_v5, 0.0 }
 0x922   : > { %v3893_v0 = vpop.permute.xlu1 %3892 }
 0x923   : > { %3960 = vrot.lane.b32.xlu1 %v3850_v53, %s5050_s16  ;;  %v7033_v53 = vmax.f32 %v7032_v41, 0.0 }
 0x924   : > { %v3879_v35 = vpop.permute.xlu0 %3878 }
 0x925   : > { %3962 = vrot.lane.b32.xlu0 %v3851_v60, %s5050_s16  ;;  %s6856_s16 = scalar_lea.vmem %s6970_s13, %s4270_s15  ;;  %v3985_v46 = vsel %vm2690_vm6, %v7023_v4, %v3879_v35  ;;  %v3990_v60 = vsel %vm2690_vm6, %v7033_v53, %v3889_v12 }
 0x926   : > { %v3897_v43 = vpop.permute.xlu1 %3896 }
 0x928   : > { %v3883_v45 = vpop.permute.xlu0 %3882 }
 0x929   : > { %v3987_v10 = vsel %vm2690_vm6, %v7027_v31, %v3883_v45  ;;  %v7036_v45 = vld [vmem:[#allocation10_spill] sm:$0xff] }
 0x92a   : > { %v7037_v33 = vmax.f32 %v7036_v45, 0.0 }
 0x92c   : > { %v3887_v18 = vpop.permute.xlu0 %3886 }
 0x92d   : > { %v3989_v22 = vsel %vm2690_vm6, %v7031_v40, %v3887_v18  ;;  %v3992_v18 = vsel %vm2690_vm6, %v7037_v33, %v3893_v0 }
 0x930   : > { %v3891_v58 = vpop.permute.xlu0 %3890 }
 0x931   : > { %v3991_v63 = vsel %vm2690_vm6, %v7035_v57, %v3891_v58 }
 0x934   : > { %v3895_v55 = vpop.permute.xlu0 %3894 }
 0x938   : > { %v3899_v23 = vpop.permute.xlu0 %3898 }
 0x952   : > { %v3937_v47 = vpop.permute.xlu1 %3936 }
 0x953   : > { %v3998_v14 = vsel %vm2709_vm7, %v3982_v11, %v3937_v47  ;;  %v7038_v11 = vld [vmem:[#allocation12_spill] sm:$0xff] }
 0x954   : > { %4014 = vst.msk [vmem:[%s6856_s16 + $0x10] sm:$0xff] %vm2724_vm8, %v3998_v14  ;;  %v3939_v13 = vpop.permute.xlu0 %3938  ;;  %v7039_v47 = vmax.f32 %v7038_v11, 0.0 }
 0x955   : > { %v3999_v56 = vsel %vm2709_vm7, %v3983_v29, %v3939_v13  ;;  %v7040_v29 = vld [vmem:[#allocation9_spill] sm:$0xff] }
 0x956   : > { %4015 = vst.msk [vmem:[%s6856_s16 + $0x18] sm:$0xff] %vm2724_vm8, %v3999_v56  ;;  %v3933_v44 = vpop.permute.xlu1 %3932  ;;  %v3993_v58 = vsel %vm2690_vm6, %v7039_v47, %v3895_v55  ;;  %v7041_v13 = vmax.f32 %v7040_v29, 0.0 }
 0x957   : > { %v3996_v48 = vsel %vm2709_vm7, %v3980_v39, %v3933_v44  ;;  %v7042_v39 = vld [vmem:[#allocation11_spill] sm:$0xff] }
 0x958   : > { %4012 = vst.msk [vmem:[%s6856_s16] sm:$0xff] %vm2724_vm8, %v3996_v48  ;;  %v3935_v6 = vpop.permute.xlu0 %3934  ;;  %v3994_v56 = vsel %vm2690_vm6, %v7041_v13, %v3897_v43  ;;  %v7043_v44 = vmax.f32 %v7042_v39, 0.0 }
 0x959   : > { %v3997_v17 = vsel %vm2709_vm7, %v3981_v30, %v3935_v6 }
 0x95a   : > { %4013 = vst.msk [vmem:[%s6856_s16 + $0x8] sm:$0xff] %vm2724_vm8, %v3997_v17  ;;  %v3995_v48 = vsel %vm2690_vm6, %v7043_v44, %v3899_v23 }
 0x980   : > { %v3941_v7 = vpop.permute.xlu1 %3940 }
 0x981   : > { %v4000_v36 = vsel %vm2709_vm7, %v3984_v38, %v3941_v7 }
 0x982   : > { %4016 = vst.msk [vmem:[%s6856_s16 + $0x20] sm:$0xff] %vm2724_vm8, %v4000_v36  ;;  %v3943_v2 = vpop.permute.xlu0 %3942 }
 0x983   : > { %v4001_v59 = vsel %vm2709_vm7, %v3985_v46, %v3943_v2 }
 0x984   : > { %4017 = vst.msk [vmem:[%s6856_s16 + $0x28] sm:$0xff] %vm2724_vm8, %v4001_v59  ;;  %v3945_v19 = vpop.permute.xlu1 %3944 }
 0x985   : > { %v4002_v51 = vsel %vm2709_vm7, %v3986_v50, %v3945_v19 }
 0x986   : > { %4018 = vst.msk [vmem:[%s6856_s16 + $0x30] sm:$0xff] %vm2724_vm8, %v4002_v51  ;;  %v3947_v61 = vpop.permute.xlu0 %3946 }
 0x987   : > { %v4003_v20 = vsel %vm2709_vm7, %v3987_v10, %v3947_v61 }
 0x988   : > { %4019 = vst.msk [vmem:[%s6856_s16 + $0x38] sm:$0xff] %vm2724_vm8, %v4003_v20 }
 0x989   : > { %v3949_v26 = vpop.permute.xlu1 %3948 }
 0x98a   : > { %v4004_v21 = vsel %vm2709_vm7, %v3988_v62, %v3949_v26 }
 0x98b   : > { %4020 = vst.msk [vmem:[%s6856_s16 + $0x40] sm:$0xff] %vm2724_vm8, %v4004_v21  ;;  %v3951_v42 = vpop.permute.xlu0 %3950 }
 0x98c   : > { %v4005_v27 = vsel %vm2709_vm7, %v3989_v22, %v3951_v42 }
 0x98d   : > { %4021 = vst.msk [vmem:[%s6856_s16 + $0x48] sm:$0xff] %vm2724_vm8, %v4005_v27  ;;  %v3953_v34 = vpop.permute.xlu1 %3952 }
 0x98e   : > { %v4006_v15 = vsel %vm2709_vm7, %v3990_v60, %v3953_v34 }
 0x98f   : > { %4022 = vst.msk [vmem:[%s6856_s16 + $0x50] sm:$0xff] %vm2724_vm8, %v4006_v15  ;;  %v3955_v35 = vpop.permute.xlu0 %3954 }
 0x990   : > { %v4007_v8 = vsel %vm2709_vm7, %v3991_v63, %v3955_v35 }
 0x991   : > { %4023 = vst.msk [vmem:[%s6856_s16 + $0x58] sm:$0xff] %vm2724_vm8, %v4007_v8  ;;  %v3957_v12 = vpop.permute.xlu1 %3956 }
 0x992   : > { %v4008_v37 = vsel %vm2709_vm7, %v3992_v18, %v3957_v12 }
 0x993   : > { %4024 = vst.msk [vmem:[%s6856_s16 + $0x60] sm:$0xff] %vm2724_vm8, %v4008_v37  ;;  %v3959_v14 = vpop.permute.xlu0 %3958 }
 0x994   : > { %v4009_v52 = vsel %vm2709_vm7, %v3993_v58, %v3959_v14 }
 0x995   : > { %4025 = vst.msk [vmem:[%s6856_s16 + $0x68] sm:$0xff] %vm2724_vm8, %v4009_v52  ;;  %v3961_v0 = vpop.permute.xlu1 %3960 }
 0x996   : > { %v4010_v54 = vsel %vm2709_vm7, %v3994_v56, %v3961_v0 }
 0x997   : > { %4026 = vst.msk [vmem:[%s6856_s16 + $0x70] sm:$0xff] %vm2724_vm8, %v4010_v54  ;;  %v3963_v55 = vpop.permute.xlu0 %3962 }
 0x998   : > { %v4011_v16 = vsel %vm2709_vm7, %v3995_v48, %v3963_v55 }
 0x999   : > { %4027 = vst.msk [vmem:[%s6856_s16 + $0x78] sm:$0xff] %vm2724_vm8, %v4011_v16 }
 0x99a PF: > { %s23_s25 = sadd.s32 1, %s5043_s25  }
 0x99b   : > { %p20_p4 = scmp.ge.s32.totalorder %s23_s25, 4  }
 0x99d   :  { %22 = sbr.rel (!%p20_p4) target bundleno = 1 (0x1), region = 102 }

</bundles_post_ra>
